<compile_context>
chip_gen: v5e
topology: v5e:2x2
jax: 0.10.0
libtpu: 0.0.40
codegen_flags: <defaults>
</compile_context>

<pallas_src>
import functools

import jax
import jax.numpy as jnp
from jax import lax
from jax.experimental import pallas as pl
from jax.experimental.pallas import tpu as pltpu

EPS = 1e-5
MXU_DTYPE = jnp.bfloat16          # MXU operand dtype; accumulation stays f32.
VMEM_LIMIT = 32 * 1024 * 1024     # explicit scoped-VMEM budget (fits v5e/v6e/v7x)


# ------------------------------ Pallas kernels ------------------------------

def _conv1_bn_relu_kernel(x_ref, w_ref, sc_ref, sh_ref, o_ref, *, F, H, W):
    """3x3x3 conv (stride 1, pad 1, no bias) + BN(eval) + ReLU for one batch.

    Channels-first shift-and-matmul formulation (no im2col):
      x_ref : (1, Cin, (F+2)*PP2)  padded frames flattened over (H+2, W+2), +2 slack
      w_ref : (27, Cout, Cin)      tap-major conv weight
      sc/sh : (Cout, 1)            folded BN scale / shift
      o_ref : (1, Cout, F*RW)      RW = H*(W+2); columns with w >= W are garbage
                                   and are sliced away in the wrapper.
    """
    Wp = W + 2
    RW = H * Wp
    PP2 = (H + 2) * Wp + 2
    Cout = sc_ref.shape[0]
    for f in range(F):                               # n_frames is tiny -> unrolled
        acc = jnp.zeros((Cout, RW), jnp.float32)
        for kf in range(3):
            base = (f + kf) * PP2
            for kh in range(3):
                for kw in range(3):
                    t = (kf * 3 + kh) * 3 + kw
                    start = base + kh * Wp + kw
                    acc = acc + jnp.dot(
                        w_ref[t], x_ref[0, :, start:start + RW],
                        preferred_element_type=jnp.float32)
        y = jnp.maximum(acc * sc_ref[...] + sh_ref[...], 0.0)
        o_ref[0, :, f * RW:(f + 1) * RW] = y.astype(o_ref.dtype)


def _qkv_kernel(x_ref, w_ref, o_ref):
    """Fused q/k/v 1x1x1 Conv3d projections: one (3C, C) left-matmul per batch."""
    o_ref[0] = jnp.dot(w_ref[...], x_ref[0],
                       preferred_element_type=jnp.float32).astype(o_ref.dtype)


def _attn_bn_add_relu_kernel(q_ref, k_ref, v_ref, cp_ref, res_ref,
                             sc_ref, sh_ref, o_ref, *, scale):
    """MHSA3D for one batch (all heads*F slices batched) fused with
    BatchNorm3d(eval) + residual add + final ReLU, in torch's .view layout."""
    q = q_ref[0, 0]                  # (HF, d, HW)  bf16
    k = k_ref[0, 0]
    v = v_ref[0, 0]
    cp = cp_ref[...]                 # (HF, HW, d)  bf16
    # content_content = q^T @ k ; content_position2 = content_position @ q
    cc = jnp.einsum('bds,bdt->bst', q, k, preferred_element_type=jnp.float32)
    cp2 = jnp.einsum('bsd,bdt->bst', cp, q, preferred_element_type=jnp.float32)
    energy = (cc + cp2) * scale
    m = jnp.max(energy, axis=-1, keepdims=True)
    e = jnp.exp(energy - m)
    attn = e * pl.reciprocal(jnp.sum(e, axis=-1, keepdims=True), approx=True)
    out = jnp.einsum('bdt,bst->bds', v, attn.astype(v.dtype),
                     preferred_element_type=jnp.float32)        # v @ attn^T
    y = out * sc_ref[...] + sh_ref[...] + res_ref[0]            # BN2 + residual
    o_ref[0] = jnp.maximum(y, 0.0).astype(o_ref.dtype)          # final ReLU


# ------------------------------ wrappers ------------------------------

def _bn_fold(bn):
    g, b, m, v = bn
    scale = g * lax.rsqrt(v + EPS)
    return scale, b - m * scale


def conv1_bn_relu(x, w1, bn1):
    """conv3x3x3 -> BN -> ReLU. Returns h1 channels-first (N, C, F*H*W), bf16."""
    N, Cin, F, H, W = x.shape
    Cout = w1.shape[0]
    Wp = W + 2
    PP = (H + 2) * Wp
    PP2 = PP + 2                     # +2 slack so the (kh=2, kw=2) tap slice
    RW = H * Wp                      # stays in bounds (feeds garbage cols only)

    xp = jnp.pad(x, ((0, 0), (0, 0), (1, 1), (1, 1), (1, 1)))
    xp = xp.reshape(N, Cin, F + 2, PP)
    xp = jnp.pad(xp, ((0, 0), (0, 0), (0, 0), (0, 2)))
    xp = xp.reshape(N, Cin, (F + 2) * PP2).astype(MXU_DTYPE)

    w27 = jnp.transpose(w1, (2, 3, 4, 0, 1)).reshape(27, Cout, Cin)
    w27 = w27.astype(MXU_DTYPE)
    sc, sh = _bn_fold(bn1)
    sc = sc.reshape(Cout, 1).astype(jnp.float32)
    sh = sh.reshape(Cout, 1).astype(jnp.float32)

    flops = 2 * N * F * RW * 27 * Cin * Cout
    bytes_accessed = (xp.size + w27.size + N * Cout * F * RW) * 2 \
        + (sc.size + sh.size) * 4

    kernel = functools.partial(_conv1_bn_relu_kernel, F=F, H=H, W=W)
    h1_raw = pl.pallas_call(
        kernel,
        out_shape=jax.ShapeDtypeStruct((N, Cout, F * RW), MXU_DTYPE),
        grid=(N,),
        in_specs=[pl.BlockSpec((1, Cin, (F + 2) * PP2), lambda n: (n, 0, 0)),
                  pl.BlockSpec((27, Cout, Cin), lambda n: (0, 0, 0)),
                  pl.BlockSpec((Cout, 1), lambda n: (0, 0)),
                  pl.BlockSpec((Cout, 1), lambda n: (0, 0))],
        out_specs=pl.BlockSpec((1, Cout, F * RW), lambda n: (n, 0, 0)),
        compiler_params=pltpu.CompilerParams(
            dimension_semantics=("parallel",), vmem_limit_bytes=VMEM_LIMIT),
        cost_estimate=pl.CostEstimate(flops=flops, transcendentals=0,
                                      bytes_accessed=bytes_accessed),
    )(xp, w27, sc, sh)

    # drop the W-padding garbage columns -> (N, C, F*H*W) channels-first.
    return h1_raw.reshape(N, Cout, F, H, Wp)[..., :W].reshape(N, Cout, F * H * W)


def mhsa_bn2_add_relu(h1_cf, x, wq, wk, wv, rel_h, rel_w, rel_t, bn2, heads):
    """conv2 = MHSA3D -> BN, fused with residual add + final ReLU."""
    N, C, F, H, W = x.shape
    d = C // heads
    HW = H * W
    HF = heads * F
    scale = float(d) ** (-0.5)

    # fused q/k/v projection (single (3C, C) left-matmul per batch).
    wqkv = jnp.concatenate([wq, wk, wv], axis=0).astype(MXU_DTYPE)
    qkv = pl.pallas_call(
        _qkv_kernel,
        out_shape=jax.ShapeDtypeStruct((N, 3 * C, F * HW), MXU_DTYPE),
        grid=(N,),
        in_specs=[pl.BlockSpec((1, C, F * HW), lambda n: (n, 0, 0)),
                  pl.BlockSpec((3 * C, C), lambda n: (0, 0))],
        out_specs=pl.BlockSpec((1, 3 * C, F * HW), lambda n: (n, 0, 0)),
        compiler_params=pltpu.CompilerParams(
            dimension_semantics=("parallel",), vmem_limit_bytes=VMEM_LIMIT),
        cost_estimate=pl.CostEstimate(
            flops=2 * N * 3 * C * C * F * HW, transcendentals=0,
            bytes_accessed=(h1_cf.size + wqkv.size + N * 3 * C * F * HW) * 2),
    )(h1_cf, wqkv)

    # torch's .view(N, heads, F, d, -1) of an NCFHW tensor is a row-major
    # regrouping -> pure reshapes, no transposes.
    qkv_view = qkv.reshape(N, 3, HF, d, HW)
    res_view = x.reshape(N, HF, d, HW)          # residual in the same view layout

    # content_position = (rel_h+rel_w+rel_t).view(1,heads,d,F,-1).permute(0,1,3,4,2)
    crp = rel_h + rel_w + rel_t                                  # (1,heads,d,F,W,H)
    cp = jnp.transpose(crp.reshape(1, heads, d, F, W * H), (0, 1, 3, 4, 2))
    cp = cp.reshape(HF, W * H, d).astype(MXU_DTYPE)              # no N-broadcast

    # BN2 per-channel params gathered into the view layout (HF, d, 1):
    # view row (head h, f_v, dd) <-> channel h*d + (f_v*d + dd)//F.
    hd_i = jnp.arange(heads)[:, None, None]
    fv_i = jnp.arange(F)[None, :, None]
    dd_i = jnp.arange(d)[None, None, :]
    ch_map = (hd_i * d + (fv_i * d + dd_i) // F).reshape(HF, d)
    sc2, sh2 = _bn_fold(bn2)
    sc2 = sc2[ch_map][..., None].astype(jnp.float32)             # (HF, d, 1)
    sh2 = sh2[ch_map][..., None].astype(jnp.float32)

    kernel = functools.partial(_attn_bn_add_relu_kernel, scale=scale)
    out_view = pl.pallas_call(
        kernel,
        out_shape=jax.ShapeDtypeStruct((N, HF, d, HW), jnp.float32),
        grid=(N,),
        in_specs=[
            pl.BlockSpec((1, 1, HF, d, HW), lambda n: (n, 0, 0, 0, 0)),  # q
            pl.BlockSpec((1, 1, HF, d, HW), lambda n: (n, 1, 0, 0, 0)),  # k
            pl.BlockSpec((1, 1, HF, d, HW), lambda n: (n, 2, 0, 0, 0)),  # v
            pl.BlockSpec((HF, W * H, d), lambda n: (0, 0, 0)),           # content_position
            pl.BlockSpec((1, HF, d, HW), lambda n: (n, 0, 0, 0)),        # residual
            pl.BlockSpec((HF, d, 1), lambda n: (0, 0, 0)),               # bn2 scale
            pl.BlockSpec((HF, d, 1), lambda n: (0, 0, 0)),               # bn2 shift
        ],
        out_specs=pl.BlockSpec((1, HF, d, HW), lambda n: (n, 0, 0, 0)),
        compiler_params=pltpu.CompilerParams(
            dimension_semantics=("parallel",), vmem_limit_bytes=VMEM_LIMIT),
    )(qkv_view, qkv_view, qkv_view, cp, res_view, sc2, sh2)

    # torch's final out.view(N, C, F, H, W) -> plain reshape back.
    return out_view.reshape(N, C, F, H, W)


def basic_block_forward(x, y, params, heads):
    """BasicBlock.forward(x, y) with mhsa=True, stride=1, downsample=None."""
    del y  # unused by the reference forward
    h1 = conv1_bn_relu(x, params["w1"], params["bn1"])
    return mhsa_bn2_add_relu(h1, x, params["wq"], params["wk"], params["wv"],
                             params["rel_h"], params["rel_w"], params["rel_t"],
                             params["bn2"], heads)


# ------------------------------ main ------------------------------

if __name__ == "__main__":
    # inplanes = planes = 16 (residual matches without downsample),
    # n_frames_last_layer = 2, input_last_layer = (8, 8), heads = 4.
    N, C, F, H, W = 2, 16, 2, 8, 8
    heads = 4
    d = C // heads

    key = jax.random.PRNGKey(0)
    ks = jax.random.split(key, 16)
    params = {
        "w1": 0.05 * jax.random.normal(ks[0], (C, C, 3, 3, 3), jnp.float32),
        "bn1": (1.0 + 0.1 * jax.random.normal(ks[1], (C,), jnp.float32),   # gamma
                0.1 * jax.random.normal(ks[2], (C,), jnp.float32),         # beta
                0.1 * jax.random.normal(ks[3], (C,), jnp.float32),         # running_mean
                0.5 + jax.random.uniform(ks[4], (C,), jnp.float32)),       # running_var
        "wq": 0.1 * jax.random.normal(ks[5], (C, C), jnp.float32),         # Conv3d 1x1x1
        "wk": 0.1 * jax.random.normal(ks[6], (C, C), jnp.float32),
        "wv": 0.1 * jax.random.normal(ks[7], (C, C), jnp.float32),
        "rel_h": jax.random.normal(ks[8], (1, heads, d, 1, 1, H), jnp.float32),
        "rel_w": jax.random.normal(ks[9], (1, heads, d, 1, W, 1), jnp.float32),
        "rel_t": jax.random.normal(ks[10], (1, heads, d, F, 1, 1), jnp.float32),
        "bn2": (1.0 + 0.1 * jax.random.normal(ks[11], (C,), jnp.float32),
                0.1 * jax.random.normal(ks[12], (C,), jnp.float32),
                0.1 * jax.random.normal(ks[13], (C,), jnp.float32),
                0.5 + jax.random.uniform(ks[14], (C,), jnp.float32)),
    }
    x = jax.random.normal(ks[15], (N, C, F, H, W), jnp.float32)
    y = jnp.zeros((1,), jnp.float32)  # second forward arg; unused by reference

    fwd = jax.jit(functools.partial(basic_block_forward, heads=heads))
    out = fwd(x, y, params)
    jax.block_until_ready(out)

    assert out.shape == (N, C, F, H, W), out.shape
    assert bool(jnp.all(jnp.isfinite(out)))
    print("KERNEL_OK")
</pallas_src>

<mosaic_0001>
module attributes {stable_mosaic.version = 11 : i64} {
  func.func @_conv1_bn_relu_kernel(%arg0: i32, %arg1: memref<1x16x408xbf16, #tpu.memory_space<vmem>>, %arg2: memref<27x16x16xbf16, #tpu.memory_space<vmem>>, %arg3: memref<16x1xf32, #tpu.memory_space<vmem>>, %arg4: memref<16x1xf32, #tpu.memory_space<vmem>>, %arg5: memref<1x16x160xbf16, #tpu.memory_space<vmem>>) attributes {dimension_semantics = [#tpu.dimension_semantics<parallel>], iteration_bounds = array<i64: 2>, scalar_prefetch = 0 : i64, scratch_operands = 0 : i64, tpu.core_type = #tpu.core_type<tc>, window_params = [{transform_indices = @transform_0, window_bounds = array<i64: 1, 16, 408>}, {pipeline_mode = #tpu.pipeline_mode<synchronous>, transform_indices = @transform_1, window_bounds = array<i64: 27, 16, 16>}, {pipeline_mode = #tpu.pipeline_mode<synchronous>, transform_indices = @transform_2, window_bounds = array<i64: 16, 1>}, {pipeline_mode = #tpu.pipeline_mode<synchronous>, transform_indices = @transform_3, window_bounds = array<i64: 16, 1>}, {transform_indices = @transform_4, window_bounds = array<i64: 1, 16, 160>}]} {
    %cst = arith.constant 0.000000e+00 : f32
    %0 = vector.broadcast %cst : f32 to vector<16x80xf32>
    %c0 = arith.constant 0 : index
    %c0_0 = arith.constant 0 : index
    %c0_1 = arith.constant 0 : index
    %1 = vector.load %arg2[%c0, %c0_0, %c0_1] : memref<27x16x16xbf16, #tpu.memory_space<vmem>>, vector<1x16x16xbf16>
    %2 = vector.shape_cast %1 : vector<1x16x16xbf16> to vector<16x16xbf16>
    %c0_2 = arith.constant 0 : index
    %c0_3 = arith.constant 0 : index
    %c0_4 = arith.constant 0 : index
    %3 = vector.load %arg1[%c0_2, %c0_3, %c0_4] : memref<1x16x408xbf16, #tpu.memory_space<vmem>>, vector<1x16x80xbf16>
    %4 = vector.shape_cast %3 : vector<1x16x80xbf16> to vector<16x80xbf16>
    %cst_5 = arith.constant dense<0.000000e+00> : vector<16x80xf32>
    %5 = tpu.matmul %2, %4, %cst_5 {dimension_numbers = #tpu.dot_dimension_numbers<[1], [0], [0], [1], [0, 0, 1, 1], [], []>} : vector<16x16xbf16>, vector<16x80xbf16>, vector<16x80xf32> -> vector<16x80xf32>
    %6 = arith.addf %0, %5 : vector<16x80xf32>
    %c1 = arith.constant 1 : index
    %c0_6 = arith.constant 0 : index
    %c0_7 = arith.constant 0 : index
    %7 = vector.load %arg2[%c1, %c0_6, %c0_7] : memref<27x16x16xbf16, #tpu.memory_space<vmem>>, vector<1x16x16xbf16>
    %8 = vector.shape_cast %7 : vector<1x16x16xbf16> to vector<16x16xbf16>
    %c0_8 = arith.constant 0 : index
    %c0_9 = arith.constant 0 : index
    %c1_10 = arith.constant 1 : index
    %9 = vector.load %arg1[%c0_8, %c0_9, %c1_10] : memref<1x16x408xbf16, #tpu.memory_space<vmem>>, vector<1x16x80xbf16>
    %10 = vector.shape_cast %9 : vector<1x16x80xbf16> to vector<16x80xbf16>
    %cst_11 = arith.constant dense<0.000000e+00> : vector<16x80xf32>
    %11 = tpu.matmul %8, %10, %cst_11 {dimension_numbers = #tpu.dot_dimension_numbers<[1], [0], [0], [1], [0, 0, 1, 1], [], []>} : vector<16x16xbf16>, vector<16x80xbf16>, vector<16x80xf32> -> vector<16x80xf32>
    %12 = arith.addf %6, %11 : vector<16x80xf32>
    %c2 = arith.constant 2 : index
    %c0_12 = arith.constant 0 : index
    %c0_13 = arith.constant 0 : index
    %13 = vector.load %arg2[%c2, %c0_12, %c0_13] : memref<27x16x16xbf16, #tpu.memory_space<vmem>>, vector<1x16x16xbf16>
    %14 = vector.shape_cast %13 : vector<1x16x16xbf16> to vector<16x16xbf16>
    %c0_14 = arith.constant 0 : index
    %c0_15 = arith.constant 0 : index
    %c2_16 = arith.constant 2 : index
    %15 = vector.load %arg1[%c0_14, %c0_15, %c2_16] : memref<1x16x408xbf16, #tpu.memory_space<vmem>>, vector<1x16x80xbf16>
    %16 = vector.shape_cast %15 : vector<1x16x80xbf16> to vector<16x80xbf16>
    %cst_17 = arith.constant dense<0.000000e+00> : vector<16x80xf32>
    %17 = tpu.matmul %14, %16, %cst_17 {dimension_numbers = #tpu.dot_dimension_numbers<[1], [0], [0], [1], [0, 0, 1, 1], [], []>} : vector<16x16xbf16>, vector<16x80xbf16>, vector<16x80xf32> -> vector<16x80xf32>
    %18 = arith.addf %12, %17 : vector<16x80xf32>
    %c3 = arith.constant 3 : index
    %c0_18 = arith.constant 0 : index
    %c0_19 = arith.constant 0 : index
    %19 = vector.load %arg2[%c3, %c0_18, %c0_19] : memref<27x16x16xbf16, #tpu.memory_space<vmem>>, vector<1x16x16xbf16>
    %20 = vector.shape_cast %19 : vector<1x16x16xbf16> to vector<16x16xbf16>
    %c0_20 = arith.constant 0 : index
    %c0_21 = arith.constant 0 : index
    %c10 = arith.constant 10 : index
    %21 = vector.load %arg1[%c0_20, %c0_21, %c10] : memref<1x16x408xbf16, #tpu.memory_space<vmem>>, vector<1x16x80xbf16>
    %22 = vector.shape_cast %21 : vector<1x16x80xbf16> to vector<16x80xbf16>
    %cst_22 = arith.constant dense<0.000000e+00> : vector<16x80xf32>
    %23 = tpu.matmul %20, %22, %cst_22 {dimension_numbers = #tpu.dot_dimension_numbers<[1], [0], [0], [1], [0, 0, 1, 1], [], []>} : vector<16x16xbf16>, vector<16x80xbf16>, vector<16x80xf32> -> vector<16x80xf32>
    %24 = arith.addf %18, %23 : vector<16x80xf32>
    %c4 = arith.constant 4 : index
    %c0_23 = arith.constant 0 : index
    %c0_24 = arith.constant 0 : index
    %25 = vector.load %arg2[%c4, %c0_23, %c0_24] : memref<27x16x16xbf16, #tpu.memory_space<vmem>>, vector<1x16x16xbf16>
    %26 = vector.shape_cast %25 : vector<1x16x16xbf16> to vector<16x16xbf16>
    %c0_25 = arith.constant 0 : index
    %c0_26 = arith.constant 0 : index
    %c11 = arith.constant 11 : index
    %27 = vector.load %arg1[%c0_25, %c0_26, %c11] : memref<1x16x408xbf16, #tpu.memory_space<vmem>>, vector<1x16x80xbf16>
    %28 = vector.shape_cast %27 : vector<1x16x80xbf16> to vector<16x80xbf16>
    %cst_27 = arith.constant dense<0.000000e+00> : vector<16x80xf32>
    %29 = tpu.matmul %26, %28, %cst_27 {dimension_numbers = #tpu.dot_dimension_numbers<[1], [0], [0], [1], [0, 0, 1, 1], [], []>} : vector<16x16xbf16>, vector<16x80xbf16>, vector<16x80xf32> -> vector<16x80xf32>
    %30 = arith.addf %24, %29 : vector<16x80xf32>
    %c5 = arith.constant 5 : index
    %c0_28 = arith.constant 0 : index
    %c0_29 = arith.constant 0 : index
    %31 = vector.load %arg2[%c5, %c0_28, %c0_29] : memref<27x16x16xbf16, #tpu.memory_space<vmem>>, vector<1x16x16xbf16>
    %32 = vector.shape_cast %31 : vector<1x16x16xbf16> to vector<16x16xbf16>
    %c0_30 = arith.constant 0 : index
    %c0_31 = arith.constant 0 : index
    %c12 = arith.constant 12 : index
    %33 = vector.load %arg1[%c0_30, %c0_31, %c12] : memref<1x16x408xbf16, #tpu.memory_space<vmem>>, vector<1x16x80xbf16>
    %34 = vector.shape_cast %33 : vector<1x16x80xbf16> to vector<16x80xbf16>
    %cst_32 = arith.constant dense<0.000000e+00> : vector<16x80xf32>
    %35 = tpu.matmul %32, %34, %cst_32 {dimension_numbers = #tpu.dot_dimension_numbers<[1], [0], [0], [1], [0, 0, 1, 1], [], []>} : vector<16x16xbf16>, vector<16x80xbf16>, vector<16x80xf32> -> vector<16x80xf32>
    %36 = arith.addf %30, %35 : vector<16x80xf32>
    %c6 = arith.constant 6 : index
    %c0_33 = arith.constant 0 : index
    %c0_34 = arith.constant 0 : index
    %37 = vector.load %arg2[%c6, %c0_33, %c0_34] : memref<27x16x16xbf16, #tpu.memory_space<vmem>>, vector<1x16x16xbf16>
    %38 = vector.shape_cast %37 : vector<1x16x16xbf16> to vector<16x16xbf16>
    %c0_35 = arith.constant 0 : index
    %c0_36 = arith.constant 0 : index
    %c20 = arith.constant 20 : index
    %39 = vector.load %arg1[%c0_35, %c0_36, %c20] : memref<1x16x408xbf16, #tpu.memory_space<vmem>>, vector<1x16x80xbf16>
    %40 = vector.shape_cast %39 : vector<1x16x80xbf16> to vector<16x80xbf16>
    %cst_37 = arith.constant dense<0.000000e+00> : vector<16x80xf32>
    %41 = tpu.matmul %38, %40, %cst_37 {dimension_numbers = #tpu.dot_dimension_numbers<[1], [0], [0], [1], [0, 0, 1, 1], [], []>} : vector<16x16xbf16>, vector<16x80xbf16>, vector<16x80xf32> -> vector<16x80xf32>
    %42 = arith.addf %36, %41 : vector<16x80xf32>
    %c7 = arith.constant 7 : index
    %c0_38 = arith.constant 0 : index
    %c0_39 = arith.constant 0 : index
    %43 = vector.load %arg2[%c7, %c0_38, %c0_39] : memref<27x16x16xbf16, #tpu.memory_space<vmem>>, vector<1x16x16xbf16>
    %44 = vector.shape_cast %43 : vector<1x16x16xbf16> to vector<16x16xbf16>
    %c0_40 = arith.constant 0 : index
    %c0_41 = arith.constant 0 : index
    %c21 = arith.constant 21 : index
    %45 = vector.load %arg1[%c0_40, %c0_41, %c21] : memref<1x16x408xbf16, #tpu.memory_space<vmem>>, vector<1x16x80xbf16>
    %46 = vector.shape_cast %45 : vector<1x16x80xbf16> to vector<16x80xbf16>
    %cst_42 = arith.constant dense<0.000000e+00> : vector<16x80xf32>
    %47 = tpu.matmul %44, %46, %cst_42 {dimension_numbers = #tpu.dot_dimension_numbers<[1], [0], [0], [1], [0, 0, 1, 1], [], []>} : vector<16x16xbf16>, vector<16x80xbf16>, vector<16x80xf32> -> vector<16x80xf32>
    %48 = arith.addf %42, %47 : vector<16x80xf32>
    %c8 = arith.constant 8 : index
    %c0_43 = arith.constant 0 : index
    %c0_44 = arith.constant 0 : index
    %49 = vector.load %arg2[%c8, %c0_43, %c0_44] : memref<27x16x16xbf16, #tpu.memory_space<vmem>>, vector<1x16x16xbf16>
    %50 = vector.shape_cast %49 : vector<1x16x16xbf16> to vector<16x16xbf16>
    %c0_45 = arith.constant 0 : index
    %c0_46 = arith.constant 0 : index
    %c22 = arith.constant 22 : index
    %51 = vector.load %arg1[%c0_45, %c0_46, %c22] : memref<1x16x408xbf16, #tpu.memory_space<vmem>>, vector<1x16x80xbf16>
    %52 = vector.shape_cast %51 : vector<1x16x80xbf16> to vector<16x80xbf16>
    %cst_47 = arith.constant dense<0.000000e+00> : vector<16x80xf32>
    %53 = tpu.matmul %50, %52, %cst_47 {dimension_numbers = #tpu.dot_dimension_numbers<[1], [0], [0], [1], [0, 0, 1, 1], [], []>} : vector<16x16xbf16>, vector<16x80xbf16>, vector<16x80xf32> -> vector<16x80xf32>
    %54 = arith.addf %48, %53 : vector<16x80xf32>
    %c9 = arith.constant 9 : index
    %c0_48 = arith.constant 0 : index
    %c0_49 = arith.constant 0 : index
    %55 = vector.load %arg2[%c9, %c0_48, %c0_49] : memref<27x16x16xbf16, #tpu.memory_space<vmem>>, vector<1x16x16xbf16>
    %56 = vector.shape_cast %55 : vector<1x16x16xbf16> to vector<16x16xbf16>
    %c0_50 = arith.constant 0 : index
    %c0_51 = arith.constant 0 : index
    %c102 = arith.constant 102 : index
    %57 = vector.load %arg1[%c0_50, %c0_51, %c102] : memref<1x16x408xbf16, #tpu.memory_space<vmem>>, vector<1x16x80xbf16>
    %58 = vector.shape_cast %57 : vector<1x16x80xbf16> to vector<16x80xbf16>
    %cst_52 = arith.constant dense<0.000000e+00> : vector<16x80xf32>
    %59 = tpu.matmul %56, %58, %cst_52 {dimension_numbers = #tpu.dot_dimension_numbers<[1], [0], [0], [1], [0, 0, 1, 1], [], []>} : vector<16x16xbf16>, vector<16x80xbf16>, vector<16x80xf32> -> vector<16x80xf32>
    %60 = arith.addf %54, %59 : vector<16x80xf32>
    %c10_53 = arith.constant 10 : index
    %c0_54 = arith.constant 0 : index
    %c0_55 = arith.constant 0 : index
    %61 = vector.load %arg2[%c10_53, %c0_54, %c0_55] : memref<27x16x16xbf16, #tpu.memory_space<vmem>>, vector<1x16x16xbf16>
    %62 = vector.shape_cast %61 : vector<1x16x16xbf16> to vector<16x16xbf16>
    %c0_56 = arith.constant 0 : index
    %c0_57 = arith.constant 0 : index
    %c103 = arith.constant 103 : index
    %63 = vector.load %arg1[%c0_56, %c0_57, %c103] : memref<1x16x408xbf16, #tpu.memory_space<vmem>>, vector<1x16x80xbf16>
    %64 = vector.shape_cast %63 : vector<1x16x80xbf16> to vector<16x80xbf16>
    %cst_58 = arith.constant dense<0.000000e+00> : vector<16x80xf32>
    %65 = tpu.matmul %62, %64, %cst_58 {dimension_numbers = #tpu.dot_dimension_numbers<[1], [0], [0], [1], [0, 0, 1, 1], [], []>} : vector<16x16xbf16>, vector<16x80xbf16>, vector<16x80xf32> -> vector<16x80xf32>
    %66 = arith.addf %60, %65 : vector<16x80xf32>
    %c11_59 = arith.constant 11 : index
    %c0_60 = arith.constant 0 : index
    %c0_61 = arith.constant 0 : index
    %67 = vector.load %arg2[%c11_59, %c0_60, %c0_61] : memref<27x16x16xbf16, #tpu.memory_space<vmem>>, vector<1x16x16xbf16>
    %68 = vector.shape_cast %67 : vector<1x16x16xbf16> to vector<16x16xbf16>
    %c0_62 = arith.constant 0 : index
    %c0_63 = arith.constant 0 : index
    %c104 = arith.constant 104 : index
    %69 = vector.load %arg1[%c0_62, %c0_63, %c104] : memref<1x16x408xbf16, #tpu.memory_space<vmem>>, vector<1x16x80xbf16>
    %70 = vector.shape_cast %69 : vector<1x16x80xbf16> to vector<16x80xbf16>
    %cst_64 = arith.constant dense<0.000000e+00> : vector<16x80xf32>
    %71 = tpu.matmul %68, %70, %cst_64 {dimension_numbers = #tpu.dot_dimension_numbers<[1], [0], [0], [1], [0, 0, 1, 1], [], []>} : vector<16x16xbf16>, vector<16x80xbf16>, vector<16x80xf32> -> vector<16x80xf32>
    %72 = arith.addf %66, %71 : vector<16x80xf32>
    %c12_65 = arith.constant 12 : index
    %c0_66 = arith.constant 0 : index
    %c0_67 = arith.constant 0 : index
    %73 = vector.load %arg2[%c12_65, %c0_66, %c0_67] : memref<27x16x16xbf16, #tpu.memory_space<vmem>>, vector<1x16x16xbf16>
    %74 = vector.shape_cast %73 : vector<1x16x16xbf16> to vector<16x16xbf16>
    %c0_68 = arith.constant 0 : index
    %c0_69 = arith.constant 0 : index
    %c112 = arith.constant 112 : index
    %75 = vector.load %arg1[%c0_68, %c0_69, %c112] : memref<1x16x408xbf16, #tpu.memory_space<vmem>>, vector<1x16x80xbf16>
    %76 = vector.shape_cast %75 : vector<1x16x80xbf16> to vector<16x80xbf16>
    %cst_70 = arith.constant dense<0.000000e+00> : vector<16x80xf32>
    %77 = tpu.matmul %74, %76, %cst_70 {dimension_numbers = #tpu.dot_dimension_numbers<[1], [0], [0], [1], [0, 0, 1, 1], [], []>} : vector<16x16xbf16>, vector<16x80xbf16>, vector<16x80xf32> -> vector<16x80xf32>
    %78 = arith.addf %72, %77 : vector<16x80xf32>
    %c13 = arith.constant 13 : index
    %c0_71 = arith.constant 0 : index
    %c0_72 = arith.constant 0 : index
    %79 = vector.load %arg2[%c13, %c0_71, %c0_72] : memref<27x16x16xbf16, #tpu.memory_space<vmem>>, vector<1x16x16xbf16>
    %80 = vector.shape_cast %79 : vector<1x16x16xbf16> to vector<16x16xbf16>
    %c0_73 = arith.constant 0 : index
    %c0_74 = arith.constant 0 : index
    %c113 = arith.constant 113 : index
    %81 = vector.load %arg1[%c0_73, %c0_74, %c113] : memref<1x16x408xbf16, #tpu.memory_space<vmem>>, vector<1x16x80xbf16>
    %82 = vector.shape_cast %81 : vector<1x16x80xbf16> to vector<16x80xbf16>
    %cst_75 = arith.constant dense<0.000000e+00> : vector<16x80xf32>
    %83 = tpu.matmul %80, %82, %cst_75 {dimension_numbers = #tpu.dot_dimension_numbers<[1], [0], [0], [1], [0, 0, 1, 1], [], []>} : vector<16x16xbf16>, vector<16x80xbf16>, vector<16x80xf32> -> vector<16x80xf32>
    %84 = arith.addf %78, %83 : vector<16x80xf32>
    %c14 = arith.constant 14 : index
    %c0_76 = arith.constant 0 : index
    %c0_77 = arith.constant 0 : index
    %85 = vector.load %arg2[%c14, %c0_76, %c0_77] : memref<27x16x16xbf16, #tpu.memory_space<vmem>>, vector<1x16x16xbf16>
    %86 = vector.shape_cast %85 : vector<1x16x16xbf16> to vector<16x16xbf16>
    %c0_78 = arith.constant 0 : index
    %c0_79 = arith.constant 0 : index
    %c114 = arith.constant 114 : index
    %87 = vector.load %arg1[%c0_78, %c0_79, %c114] : memref<1x16x408xbf16, #tpu.memory_space<vmem>>, vector<1x16x80xbf16>
    %88 = vector.shape_cast %87 : vector<1x16x80xbf16> to vector<16x80xbf16>
    %cst_80 = arith.constant dense<0.000000e+00> : vector<16x80xf32>
    %89 = tpu.matmul %86, %88, %cst_80 {dimension_numbers = #tpu.dot_dimension_numbers<[1], [0], [0], [1], [0, 0, 1, 1], [], []>} : vector<16x16xbf16>, vector<16x80xbf16>, vector<16x80xf32> -> vector<16x80xf32>
    %90 = arith.addf %84, %89 : vector<16x80xf32>
    %c15 = arith.constant 15 : index
    %c0_81 = arith.constant 0 : index
    %c0_82 = arith.constant 0 : index
    %91 = vector.load %arg2[%c15, %c0_81, %c0_82] : memref<27x16x16xbf16, #tpu.memory_space<vmem>>, vector<1x16x16xbf16>
    %92 = vector.shape_cast %91 : vector<1x16x16xbf16> to vector<16x16xbf16>
    %c0_83 = arith.constant 0 : index
    %c0_84 = arith.constant 0 : index
    %c122 = arith.constant 122 : index
    %93 = vector.load %arg1[%c0_83, %c0_84, %c122] : memref<1x16x408xbf16, #tpu.memory_space<vmem>>, vector<1x16x80xbf16>
    %94 = vector.shape_cast %93 : vector<1x16x80xbf16> to vector<16x80xbf16>
    %cst_85 = arith.constant dense<0.000000e+00> : vector<16x80xf32>
    %95 = tpu.matmul %92, %94, %cst_85 {dimension_numbers = #tpu.dot_dimension_numbers<[1], [0], [0], [1], [0, 0, 1, 1], [], []>} : vector<16x16xbf16>, vector<16x80xbf16>, vector<16x80xf32> -> vector<16x80xf32>
    %96 = arith.addf %90, %95 : vector<16x80xf32>
    %c16 = arith.constant 16 : index
    %c0_86 = arith.constant 0 : index
    %c0_87 = arith.constant 0 : index
    %97 = vector.load %arg2[%c16, %c0_86, %c0_87] : memref<27x16x16xbf16, #tpu.memory_space<vmem>>, vector<1x16x16xbf16>
    %98 = vector.shape_cast %97 : vector<1x16x16xbf16> to vector<16x16xbf16>
    %c0_88 = arith.constant 0 : index
    %c0_89 = arith.constant 0 : index
    %c123 = arith.constant 123 : index
    %99 = vector.load %arg1[%c0_88, %c0_89, %c123] : memref<1x16x408xbf16, #tpu.memory_space<vmem>>, vector<1x16x80xbf16>
    %100 = vector.shape_cast %99 : vector<1x16x80xbf16> to vector<16x80xbf16>
    %cst_90 = arith.constant dense<0.000000e+00> : vector<16x80xf32>
    %101 = tpu.matmul %98, %100, %cst_90 {dimension_numbers = #tpu.dot_dimension_numbers<[1], [0], [0], [1], [0, 0, 1, 1], [], []>} : vector<16x16xbf16>, vector<16x80xbf16>, vector<16x80xf32> -> vector<16x80xf32>
    %102 = arith.addf %96, %101 : vector<16x80xf32>
    %c17 = arith.constant 17 : index
    %c0_91 = arith.constant 0 : index
    %c0_92 = arith.constant 0 : index
    %103 = vector.load %arg2[%c17, %c0_91, %c0_92] : memref<27x16x16xbf16, #tpu.memory_space<vmem>>, vector<1x16x16xbf16>
    %104 = vector.shape_cast %103 : vector<1x16x16xbf16> to vector<16x16xbf16>
    %c0_93 = arith.constant 0 : index
    %c0_94 = arith.constant 0 : index
    %c124 = arith.constant 124 : index
    %105 = vector.load %arg1[%c0_93, %c0_94, %c124] : memref<1x16x408xbf16, #tpu.memory_space<vmem>>, vector<1x16x80xbf16>
    %106 = vector.shape_cast %105 : vector<1x16x80xbf16> to vector<16x80xbf16>
    %cst_95 = arith.constant dense<0.000000e+00> : vector<16x80xf32>
    %107 = tpu.matmul %104, %106, %cst_95 {dimension_numbers = #tpu.dot_dimension_numbers<[1], [0], [0], [1], [0, 0, 1, 1], [], []>} : vector<16x16xbf16>, vector<16x80xbf16>, vector<16x80xf32> -> vector<16x80xf32>
    %108 = arith.addf %102, %107 : vector<16x80xf32>
    %c18 = arith.constant 18 : index
    %c0_96 = arith.constant 0 : index
    %c0_97 = arith.constant 0 : index
    %109 = vector.load %arg2[%c18, %c0_96, %c0_97] : memref<27x16x16xbf16, #tpu.memory_space<vmem>>, vector<1x16x16xbf16>
    %110 = vector.shape_cast %109 : vector<1x16x16xbf16> to vector<16x16xbf16>
    %c0_98 = arith.constant 0 : index
    %c0_99 = arith.constant 0 : index
    %c204 = arith.constant 204 : index
    %111 = vector.load %arg1[%c0_98, %c0_99, %c204] : memref<1x16x408xbf16, #tpu.memory_space<vmem>>, vector<1x16x80xbf16>
    %112 = vector.shape_cast %111 : vector<1x16x80xbf16> to vector<16x80xbf16>
    %cst_100 = arith.constant dense<0.000000e+00> : vector<16x80xf32>
    %113 = tpu.matmul %110, %112, %cst_100 {dimension_numbers = #tpu.dot_dimension_numbers<[1], [0], [0], [1], [0, 0, 1, 1], [], []>} : vector<16x16xbf16>, vector<16x80xbf16>, vector<16x80xf32> -> vector<16x80xf32>
    %114 = arith.addf %108, %113 : vector<16x80xf32>
    %c19 = arith.constant 19 : index
    %c0_101 = arith.constant 0 : index
    %c0_102 = arith.constant 0 : index
    %115 = vector.load %arg2[%c19, %c0_101, %c0_102] : memref<27x16x16xbf16, #tpu.memory_space<vmem>>, vector<1x16x16xbf16>
    %116 = vector.shape_cast %115 : vector<1x16x16xbf16> to vector<16x16xbf16>
    %c0_103 = arith.constant 0 : index
    %c0_104 = arith.constant 0 : index
    %c205 = arith.constant 205 : index
    %117 = vector.load %arg1[%c0_103, %c0_104, %c205] : memref<1x16x408xbf16, #tpu.memory_space<vmem>>, vector<1x16x80xbf16>
    %118 = vector.shape_cast %117 : vector<1x16x80xbf16> to vector<16x80xbf16>
    %cst_105 = arith.constant dense<0.000000e+00> : vector<16x80xf32>
    %119 = tpu.matmul %116, %118, %cst_105 {dimension_numbers = #tpu.dot_dimension_numbers<[1], [0], [0], [1], [0, 0, 1, 1], [], []>} : vector<16x16xbf16>, vector<16x80xbf16>, vector<16x80xf32> -> vector<16x80xf32>
    %120 = arith.addf %114, %119 : vector<16x80xf32>
    %c20_106 = arith.constant 20 : index
    %c0_107 = arith.constant 0 : index
    %c0_108 = arith.constant 0 : index
    %121 = vector.load %arg2[%c20_106, %c0_107, %c0_108] : memref<27x16x16xbf16, #tpu.memory_space<vmem>>, vector<1x16x16xbf16>
    %122 = vector.shape_cast %121 : vector<1x16x16xbf16> to vector<16x16xbf16>
    %c0_109 = arith.constant 0 : index
    %c0_110 = arith.constant 0 : index
    %c206 = arith.constant 206 : index
    %123 = vector.load %arg1[%c0_109, %c0_110, %c206] : memref<1x16x408xbf16, #tpu.memory_space<vmem>>, vector<1x16x80xbf16>
    %124 = vector.shape_cast %123 : vector<1x16x80xbf16> to vector<16x80xbf16>
    %cst_111 = arith.constant dense<0.000000e+00> : vector<16x80xf32>
    %125 = tpu.matmul %122, %124, %cst_111 {dimension_numbers = #tpu.dot_dimension_numbers<[1], [0], [0], [1], [0, 0, 1, 1], [], []>} : vector<16x16xbf16>, vector<16x80xbf16>, vector<16x80xf32> -> vector<16x80xf32>
    %126 = arith.addf %120, %125 : vector<16x80xf32>
    %c21_112 = arith.constant 21 : index
    %c0_113 = arith.constant 0 : index
    %c0_114 = arith.constant 0 : index
    %127 = vector.load %arg2[%c21_112, %c0_113, %c0_114] : memref<27x16x16xbf16, #tpu.memory_space<vmem>>, vector<1x16x16xbf16>
    %128 = vector.shape_cast %127 : vector<1x16x16xbf16> to vector<16x16xbf16>
    %c0_115 = arith.constant 0 : index
    %c0_116 = arith.constant 0 : index
    %c214 = arith.constant 214 : index
    %129 = vector.load %arg1[%c0_115, %c0_116, %c214] : memref<1x16x408xbf16, #tpu.memory_space<vmem>>, vector<1x16x80xbf16>
    %130 = vector.shape_cast %129 : vector<1x16x80xbf16> to vector<16x80xbf16>
    %cst_117 = arith.constant dense<0.000000e+00> : vector<16x80xf32>
    %131 = tpu.matmul %128, %130, %cst_117 {dimension_numbers = #tpu.dot_dimension_numbers<[1], [0], [0], [1], [0, 0, 1, 1], [], []>} : vector<16x16xbf16>, vector<16x80xbf16>, vector<16x80xf32> -> vector<16x80xf32>
    %132 = arith.addf %126, %131 : vector<16x80xf32>
    %c22_118 = arith.constant 22 : index
    %c0_119 = arith.constant 0 : index
    %c0_120 = arith.constant 0 : index
    %133 = vector.load %arg2[%c22_118, %c0_119, %c0_120] : memref<27x16x16xbf16, #tpu.memory_space<vmem>>, vector<1x16x16xbf16>
    %134 = vector.shape_cast %133 : vector<1x16x16xbf16> to vector<16x16xbf16>
    %c0_121 = arith.constant 0 : index
    %c0_122 = arith.constant 0 : index
    %c215 = arith.constant 215 : index
    %135 = vector.load %arg1[%c0_121, %c0_122, %c215] : memref<1x16x408xbf16, #tpu.memory_space<vmem>>, vector<1x16x80xbf16>
    %136 = vector.shape_cast %135 : vector<1x16x80xbf16> to vector<16x80xbf16>
    %cst_123 = arith.constant dense<0.000000e+00> : vector<16x80xf32>
    %137 = tpu.matmul %134, %136, %cst_123 {dimension_numbers = #tpu.dot_dimension_numbers<[1], [0], [0], [1], [0, 0, 1, 1], [], []>} : vector<16x16xbf16>, vector<16x80xbf16>, vector<16x80xf32> -> vector<16x80xf32>
    %138 = arith.addf %132, %137 : vector<16x80xf32>
    %c23 = arith.constant 23 : index
    %c0_124 = arith.constant 0 : index
    %c0_125 = arith.constant 0 : index
    %139 = vector.load %arg2[%c23, %c0_124, %c0_125] : memref<27x16x16xbf16, #tpu.memory_space<vmem>>, vector<1x16x16xbf16>
    %140 = vector.shape_cast %139 : vector<1x16x16xbf16> to vector<16x16xbf16>
    %c0_126 = arith.constant 0 : index
    %c0_127 = arith.constant 0 : index
    %c216 = arith.constant 216 : index
    %141 = vector.load %arg1[%c0_126, %c0_127, %c216] : memref<1x16x408xbf16, #tpu.memory_space<vmem>>, vector<1x16x80xbf16>
    %142 = vector.shape_cast %141 : vector<1x16x80xbf16> to vector<16x80xbf16>
    %cst_128 = arith.constant dense<0.000000e+00> : vector<16x80xf32>
    %143 = tpu.matmul %140, %142, %cst_128 {dimension_numbers = #tpu.dot_dimension_numbers<[1], [0], [0], [1], [0, 0, 1, 1], [], []>} : vector<16x16xbf16>, vector<16x80xbf16>, vector<16x80xf32> -> vector<16x80xf32>
    %144 = arith.addf %138, %143 : vector<16x80xf32>
    %c24 = arith.constant 24 : index
    %c0_129 = arith.constant 0 : index
    %c0_130 = arith.constant 0 : index
    %145 = vector.load %arg2[%c24, %c0_129, %c0_130] : memref<27x16x16xbf16, #tpu.memory_space<vmem>>, vector<1x16x16xbf16>
    %146 = vector.shape_cast %145 : vector<1x16x16xbf16> to vector<16x16xbf16>
    %c0_131 = arith.constant 0 : index
    %c0_132 = arith.constant 0 : index
    %c224 = arith.constant 224 : index
    %147 = vector.load %arg1[%c0_131, %c0_132, %c224] : memref<1x16x408xbf16, #tpu.memory_space<vmem>>, vector<1x16x80xbf16>
    %148 = vector.shape_cast %147 : vector<1x16x80xbf16> to vector<16x80xbf16>
    %cst_133 = arith.constant dense<0.000000e+00> : vector<16x80xf32>
    %149 = tpu.matmul %146, %148, %cst_133 {dimension_numbers = #tpu.dot_dimension_numbers<[1], [0], [0], [1], [0, 0, 1, 1], [], []>} : vector<16x16xbf16>, vector<16x80xbf16>, vector<16x80xf32> -> vector<16x80xf32>
    %150 = arith.addf %144, %149 : vector<16x80xf32>
    %c25 = arith.constant 25 : index
    %c0_134 = arith.constant 0 : index
    %c0_135 = arith.constant 0 : index
    %151 = vector.load %arg2[%c25, %c0_134, %c0_135] : memref<27x16x16xbf16, #tpu.memory_space<vmem>>, vector<1x16x16xbf16>
    %152 = vector.shape_cast %151 : vector<1x16x16xbf16> to vector<16x16xbf16>
    %c0_136 = arith.constant 0 : index
    %c0_137 = arith.constant 0 : index
    %c225 = arith.constant 225 : index
    %153 = vector.load %arg1[%c0_136, %c0_137, %c225] : memref<1x16x408xbf16, #tpu.memory_space<vmem>>, vector<1x16x80xbf16>
    %154 = vector.shape_cast %153 : vector<1x16x80xbf16> to vector<16x80xbf16>
    %cst_138 = arith.constant dense<0.000000e+00> : vector<16x80xf32>
    %155 = tpu.matmul %152, %154, %cst_138 {dimension_numbers = #tpu.dot_dimension_numbers<[1], [0], [0], [1], [0, 0, 1, 1], [], []>} : vector<16x16xbf16>, vector<16x80xbf16>, vector<16x80xf32> -> vector<16x80xf32>
    %156 = arith.addf %150, %155 : vector<16x80xf32>
    %c26 = arith.constant 26 : index
    %c0_139 = arith.constant 0 : index
    %c0_140 = arith.constant 0 : index
    %157 = vector.load %arg2[%c26, %c0_139, %c0_140] : memref<27x16x16xbf16, #tpu.memory_space<vmem>>, vector<1x16x16xbf16>
    %158 = vector.shape_cast %157 : vector<1x16x16xbf16> to vector<16x16xbf16>
    %c0_141 = arith.constant 0 : index
    %c0_142 = arith.constant 0 : index
    %c226 = arith.constant 226 : index
    %159 = vector.load %arg1[%c0_141, %c0_142, %c226] : memref<1x16x408xbf16, #tpu.memory_space<vmem>>, vector<1x16x80xbf16>
    %160 = vector.shape_cast %159 : vector<1x16x80xbf16> to vector<16x80xbf16>
    %cst_143 = arith.constant dense<0.000000e+00> : vector<16x80xf32>
    %161 = tpu.matmul %158, %160, %cst_143 {dimension_numbers = #tpu.dot_dimension_numbers<[1], [0], [0], [1], [0, 0, 1, 1], [], []>} : vector<16x16xbf16>, vector<16x80xbf16>, vector<16x80xf32> -> vector<16x80xf32>
    %162 = arith.addf %156, %161 : vector<16x80xf32>
    %c0_144 = arith.constant 0 : index
    %c0_145 = arith.constant 0 : index
    %163 = vector.load %arg3[%c0_144, %c0_145] : memref<16x1xf32, #tpu.memory_space<vmem>>, vector<16x1xf32>
    %164 = vector.broadcast %163 : vector<16x1xf32> to vector<16x80xf32>
    %165 = arith.mulf %162, %164 : vector<16x80xf32>
    %c0_146 = arith.constant 0 : index
    %c0_147 = arith.constant 0 : index
    %166 = vector.load %arg4[%c0_146, %c0_147] : memref<16x1xf32, #tpu.memory_space<vmem>>, vector<16x1xf32>
    %167 = vector.broadcast %166 : vector<16x1xf32> to vector<16x80xf32>
    %168 = arith.addf %165, %167 : vector<16x80xf32>
    %cst_148 = arith.constant 0.000000e+00 : f32
    %169 = vector.broadcast %cst_148 : f32 to vector<16x80xf32>
    %170 = arith.maximumf %168, %169 : vector<16x80xf32>
    %171 = arith.truncf %170 : vector<16x80xf32> to vector<16x80xbf16>
    %c0_149 = arith.constant 0 : index
    %c0_150 = arith.constant 0 : index
    %c0_151 = arith.constant 0 : index
    %172 = vector.load %arg5[%c0_149, %c0_150, %c0_151] : memref<1x16x160xbf16, #tpu.memory_space<vmem>>, vector<1x16x80xbf16>
    %173 = vector.shape_cast %172 : vector<1x16x80xbf16> to vector<16x80xbf16>
    %174 = vector.shape_cast %171 : vector<16x80xbf16> to vector<1x16x80xbf16>
    tpu.vector_store %arg5[%c0_149, %c0_150, %c0_151], %174 {strides = array<i32>} : memref<1x16x160xbf16, #tpu.memory_space<vmem>>, vector<1x16x80xbf16>,
    %cst_152 = arith.constant 0.000000e+00 : f32
    %175 = vector.broadcast %cst_152 : f32 to vector<16x80xf32>
    %c0_153 = arith.constant 0 : index
    %c0_154 = arith.constant 0 : index
    %c0_155 = arith.constant 0 : index
    %176 = vector.load %arg2[%c0_153, %c0_154, %c0_155] : memref<27x16x16xbf16, #tpu.memory_space<vmem>>, vector<1x16x16xbf16>
    %177 = vector.shape_cast %176 : vector<1x16x16xbf16> to vector<16x16xbf16>
    %c0_156 = arith.constant 0 : index
    %c0_157 = arith.constant 0 : index
    %c102_158 = arith.constant 102 : index
    %178 = vector.load %arg1[%c0_156, %c0_157, %c102_158] : memref<1x16x408xbf16, #tpu.memory_space<vmem>>, vector<1x16x80xbf16>
    %179 = vector.shape_cast %178 : vector<1x16x80xbf16> to vector<16x80xbf16>
    %cst_159 = arith.constant dense<0.000000e+00> : vector<16x80xf32>
    %180 = tpu.matmul %177, %179, %cst_159 {dimension_numbers = #tpu.dot_dimension_numbers<[1], [0], [0], [1], [0, 0, 1, 1], [], []>} : vector<16x16xbf16>, vector<16x80xbf16>, vector<16x80xf32> -> vector<16x80xf32>
    %181 = arith.addf %175, %180 : vector<16x80xf32>
    %c1_160 = arith.constant 1 : index
    %c0_161 = arith.constant 0 : index
    %c0_162 = arith.constant 0 : index
    %182 = vector.load %arg2[%c1_160, %c0_161, %c0_162] : memref<27x16x16xbf16, #tpu.memory_space<vmem>>, vector<1x16x16xbf16>
    %183 = vector.shape_cast %182 : vector<1x16x16xbf16> to vector<16x16xbf16>
    %c0_163 = arith.constant 0 : index
    %c0_164 = arith.constant 0 : index
    %c103_165 = arith.constant 103 : index
    %184 = vector.load %arg1[%c0_163, %c0_164, %c103_165] : memref<1x16x408xbf16, #tpu.memory_space<vmem>>, vector<1x16x80xbf16>
    %185 = vector.shape_cast %184 : vector<1x16x80xbf16> to vector<16x80xbf16>
    %cst_166 = arith.constant dense<0.000000e+00> : vector<16x80xf32>
    %186 = tpu.matmul %183, %185, %cst_166 {dimension_numbers = #tpu.dot_dimension_numbers<[1], [0], [0], [1], [0, 0, 1, 1], [], []>} : vector<16x16xbf16>, vector<16x80xbf16>, vector<16x80xf32> -> vector<16x80xf32>
    %187 = arith.addf %181, %186 : vector<16x80xf32>
    %c2_167 = arith.constant 2 : index
    %c0_168 = arith.constant 0 : index
    %c0_169 = arith.constant 0 : index
    %188 = vector.load %arg2[%c2_167, %c0_168, %c0_169] : memref<27x16x16xbf16, #tpu.memory_space<vmem>>, vector<1x16x16xbf16>
    %189 = vector.shape_cast %188 : vector<1x16x16xbf16> to vector<16x16xbf16>
    %c0_170 = arith.constant 0 : index
    %c0_171 = arith.constant 0 : index
    %c104_172 = arith.constant 104 : index
    %190 = vector.load %arg1[%c0_170, %c0_171, %c104_172] : memref<1x16x408xbf16, #tpu.memory_space<vmem>>, vector<1x16x80xbf16>
    %191 = vector.shape_cast %190 : vector<1x16x80xbf16> to vector<16x80xbf16>
    %cst_173 = arith.constant dense<0.000000e+00> : vector<16x80xf32>
    %192 = tpu.matmul %189, %191, %cst_173 {dimension_numbers = #tpu.dot_dimension_numbers<[1], [0], [0], [1], [0, 0, 1, 1], [], []>} : vector<16x16xbf16>, vector<16x80xbf16>, vector<16x80xf32> -> vector<16x80xf32>
    %193 = arith.addf %187, %192 : vector<16x80xf32>
    %c3_174 = arith.constant 3 : index
    %c0_175 = arith.constant 0 : index
    %c0_176 = arith.constant 0 : index
    %194 = vector.load %arg2[%c3_174, %c0_175, %c0_176] : memref<27x16x16xbf16, #tpu.memory_space<vmem>>, vector<1x16x16xbf16>
    %195 = vector.shape_cast %194 : vector<1x16x16xbf16> to vector<16x16xbf16>
    %c0_177 = arith.constant 0 : index
    %c0_178 = arith.constant 0 : index
    %c112_179 = arith.constant 112 : index
    %196 = vector.load %arg1[%c0_177, %c0_178, %c112_179] : memref<1x16x408xbf16, #tpu.memory_space<vmem>>, vector<1x16x80xbf16>
    %197 = vector.shape_cast %196 : vector<1x16x80xbf16> to vector<16x80xbf16>
    %cst_180 = arith.constant dense<0.000000e+00> : vector<16x80xf32>
    %198 = tpu.matmul %195, %197, %cst_180 {dimension_numbers = #tpu.dot_dimension_numbers<[1], [0], [0], [1], [0, 0, 1, 1], [], []>} : vector<16x16xbf16>, vector<16x80xbf16>, vector<16x80xf32> -> vector<16x80xf32>
    %199 = arith.addf %193, %198 : vector<16x80xf32>
    %c4_181 = arith.constant 4 : index
    %c0_182 = arith.constant 0 : index
    %c0_183 = arith.constant 0 : index
    %200 = vector.load %arg2[%c4_181, %c0_182, %c0_183] : memref<27x16x16xbf16, #tpu.memory_space<vmem>>, vector<1x16x16xbf16>
    %201 = vector.shape_cast %200 : vector<1x16x16xbf16> to vector<16x16xbf16>
    %c0_184 = arith.constant 0 : index
    %c0_185 = arith.constant 0 : index
    %c113_186 = arith.constant 113 : index
    %202 = vector.load %arg1[%c0_184, %c0_185, %c113_186] : memref<1x16x408xbf16, #tpu.memory_space<vmem>>, vector<1x16x80xbf16>
    %203 = vector.shape_cast %202 : vector<1x16x80xbf16> to vector<16x80xbf16>
    %cst_187 = arith.constant dense<0.000000e+00> : vector<16x80xf32>
    %204 = tpu.matmul %201, %203, %cst_187 {dimension_numbers = #tpu.dot_dimension_numbers<[1], [0], [0], [1], [0, 0, 1, 1], [], []>} : vector<16x16xbf16>, vector<16x80xbf16>, vector<16x80xf32> -> vector<16x80xf32>
    %205 = arith.addf %199, %204 : vector<16x80xf32>
    %c5_188 = arith.constant 5 : index
    %c0_189 = arith.constant 0 : index
    %c0_190 = arith.constant 0 : index
    %206 = vector.load %arg2[%c5_188, %c0_189, %c0_190] : memref<27x16x16xbf16, #tpu.memory_space<vmem>>, vector<1x16x16xbf16>
    %207 = vector.shape_cast %206 : vector<1x16x16xbf16> to vector<16x16xbf16>
    %c0_191 = arith.constant 0 : index
    %c0_192 = arith.constant 0 : index
    %c114_193 = arith.constant 114 : index
    %208 = vector.load %arg1[%c0_191, %c0_192, %c114_193] : memref<1x16x408xbf16, #tpu.memory_space<vmem>>, vector<1x16x80xbf16>
    %209 = vector.shape_cast %208 : vector<1x16x80xbf16> to vector<16x80xbf16>
    %cst_194 = arith.constant dense<0.000000e+00> : vector<16x80xf32>
    %210 = tpu.matmul %207, %209, %cst_194 {dimension_numbers = #tpu.dot_dimension_numbers<[1], [0], [0], [1], [0, 0, 1, 1], [], []>} : vector<16x16xbf16>, vector<16x80xbf16>, vector<16x80xf32> -> vector<16x80xf32>
    %211 = arith.addf %205, %210 : vector<16x80xf32>
    %c6_195 = arith.constant 6 : index
    %c0_196 = arith.constant 0 : index
    %c0_197 = arith.constant 0 : index
    %212 = vector.load %arg2[%c6_195, %c0_196, %c0_197] : memref<27x16x16xbf16, #tpu.memory_space<vmem>>, vector<1x16x16xbf16>
    %213 = vector.shape_cast %212 : vector<1x16x16xbf16> to vector<16x16xbf16>
    %c0_198 = arith.constant 0 : index
    %c0_199 = arith.constant 0 : index
    %c122_200 = arith.constant 122 : index
    %214 = vector.load %arg1[%c0_198, %c0_199, %c122_200] : memref<1x16x408xbf16, #tpu.memory_space<vmem>>, vector<1x16x80xbf16>
    %215 = vector.shape_cast %214 : vector<1x16x80xbf16> to vector<16x80xbf16>
    %cst_201 = arith.constant dense<0.000000e+00> : vector<16x80xf32>
    %216 = tpu.matmul %213, %215, %cst_201 {dimension_numbers = #tpu.dot_dimension_numbers<[1], [0], [0], [1], [0, 0, 1, 1], [], []>} : vector<16x16xbf16>, vector<16x80xbf16>, vector<16x80xf32> -> vector<16x80xf32>
    %217 = arith.addf %211, %216 : vector<16x80xf32>
    %c7_202 = arith.constant 7 : index
    %c0_203 = arith.constant 0 : index
    %c0_204 = arith.constant 0 : index
    %218 = vector.load %arg2[%c7_202, %c0_203, %c0_204] : memref<27x16x16xbf16, #tpu.memory_space<vmem>>, vector<1x16x16xbf16>
    %219 = vector.shape_cast %218 : vector<1x16x16xbf16> to vector<16x16xbf16>
    %c0_205 = arith.constant 0 : index
    %c0_206 = arith.constant 0 : index
    %c123_207 = arith.constant 123 : index
    %220 = vector.load %arg1[%c0_205, %c0_206, %c123_207] : memref<1x16x408xbf16, #tpu.memory_space<vmem>>, vector<1x16x80xbf16>
    %221 = vector.shape_cast %220 : vector<1x16x80xbf16> to vector<16x80xbf16>
    %cst_208 = arith.constant dense<0.000000e+00> : vector<16x80xf32>
    %222 = tpu.matmul %219, %221, %cst_208 {dimension_numbers = #tpu.dot_dimension_numbers<[1], [0], [0], [1], [0, 0, 1, 1], [], []>} : vector<16x16xbf16>, vector<16x80xbf16>, vector<16x80xf32> -> vector<16x80xf32>
    %223 = arith.addf %217, %222 : vector<16x80xf32>
    %c8_209 = arith.constant 8 : index
    %c0_210 = arith.constant 0 : index
    %c0_211 = arith.constant 0 : index
    %224 = vector.load %arg2[%c8_209, %c0_210, %c0_211] : memref<27x16x16xbf16, #tpu.memory_space<vmem>>, vector<1x16x16xbf16>
    %225 = vector.shape_cast %224 : vector<1x16x16xbf16> to vector<16x16xbf16>
    %c0_212 = arith.constant 0 : index
    %c0_213 = arith.constant 0 : index
    %c124_214 = arith.constant 124 : index
    %226 = vector.load %arg1[%c0_212, %c0_213, %c124_214] : memref<1x16x408xbf16, #tpu.memory_space<vmem>>, vector<1x16x80xbf16>
    %227 = vector.shape_cast %226 : vector<1x16x80xbf16> to vector<16x80xbf16>
    %cst_215 = arith.constant dense<0.000000e+00> : vector<16x80xf32>
    %228 = tpu.matmul %225, %227, %cst_215 {dimension_numbers = #tpu.dot_dimension_numbers<[1], [0], [0], [1], [0, 0, 1, 1], [], []>} : vector<16x16xbf16>, vector<16x80xbf16>, vector<16x80xf32> -> vector<16x80xf32>
    %229 = arith.addf %223, %228 : vector<16x80xf32>
    %c9_216 = arith.constant 9 : index
    %c0_217 = arith.constant 0 : index
    %c0_218 = arith.constant 0 : index
    %230 = vector.load %arg2[%c9_216, %c0_217, %c0_218] : memref<27x16x16xbf16, #tpu.memory_space<vmem>>, vector<1x16x16xbf16>
    %231 = vector.shape_cast %230 : vector<1x16x16xbf16> to vector<16x16xbf16>
    %c0_219 = arith.constant 0 : index
    %c0_220 = arith.constant 0 : index
    %c204_221 = arith.constant 204 : index
    %232 = vector.load %arg1[%c0_219, %c0_220, %c204_221] : memref<1x16x408xbf16, #tpu.memory_space<vmem>>, vector<1x16x80xbf16>
    %233 = vector.shape_cast %232 : vector<1x16x80xbf16> to vector<16x80xbf16>
    %cst_222 = arith.constant dense<0.000000e+00> : vector<16x80xf32>
    %234 = tpu.matmul %231, %233, %cst_222 {dimension_numbers = #tpu.dot_dimension_numbers<[1], [0], [0], [1], [0, 0, 1, 1], [], []>} : vector<16x16xbf16>, vector<16x80xbf16>, vector<16x80xf32> -> vector<16x80xf32>
    %235 = arith.addf %229, %234 : vector<16x80xf32>
    %c10_223 = arith.constant 10 : index
    %c0_224 = arith.constant 0 : index
    %c0_225 = arith.constant 0 : index
    %236 = vector.load %arg2[%c10_223, %c0_224, %c0_225] : memref<27x16x16xbf16, #tpu.memory_space<vmem>>, vector<1x16x16xbf16>
    %237 = vector.shape_cast %236 : vector<1x16x16xbf16> to vector<16x16xbf16>
    %c0_226 = arith.constant 0 : index
    %c0_227 = arith.constant 0 : index
    %c205_228 = arith.constant 205 : index
    %238 = vector.load %arg1[%c0_226, %c0_227, %c205_228] : memref<1x16x408xbf16, #tpu.memory_space<vmem>>, vector<1x16x80xbf16>
    %239 = vector.shape_cast %238 : vector<1x16x80xbf16> to vector<16x80xbf16>
    %cst_229 = arith.constant dense<0.000000e+00> : vector<16x80xf32>
    %240 = tpu.matmul %237, %239, %cst_229 {dimension_numbers = #tpu.dot_dimension_numbers<[1], [0], [0], [1], [0, 0, 1, 1], [], []>} : vector<16x16xbf16>, vector<16x80xbf16>, vector<16x80xf32> -> vector<16x80xf32>
    %241 = arith.addf %235, %240 : vector<16x80xf32>
    %c11_230 = arith.constant 11 : index
    %c0_231 = arith.constant 0 : index
    %c0_232 = arith.constant 0 : index
    %242 = vector.load %arg2[%c11_230, %c0_231, %c0_232] : memref<27x16x16xbf16, #tpu.memory_space<vmem>>, vector<1x16x16xbf16>
    %243 = vector.shape_cast %242 : vector<1x16x16xbf16> to vector<16x16xbf16>
    %c0_233 = arith.constant 0 : index
    %c0_234 = arith.constant 0 : index
    %c206_235 = arith.constant 206 : index
    %244 = vector.load %arg1[%c0_233, %c0_234, %c206_235] : memref<1x16x408xbf16, #tpu.memory_space<vmem>>, vector<1x16x80xbf16>
    %245 = vector.shape_cast %244 : vector<1x16x80xbf16> to vector<16x80xbf16>
    %cst_236 = arith.constant dense<0.000000e+00> : vector<16x80xf32>
    %246 = tpu.matmul %243, %245, %cst_236 {dimension_numbers = #tpu.dot_dimension_numbers<[1], [0], [0], [1], [0, 0, 1, 1], [], []>} : vector<16x16xbf16>, vector<16x80xbf16>, vector<16x80xf32> -> vector<16x80xf32>
    %247 = arith.addf %241, %246 : vector<16x80xf32>
    %c12_237 = arith.constant 12 : index
    %c0_238 = arith.constant 0 : index
    %c0_239 = arith.constant 0 : index
    %248 = vector.load %arg2[%c12_237, %c0_238, %c0_239] : memref<27x16x16xbf16, #tpu.memory_space<vmem>>, vector<1x16x16xbf16>
    %249 = vector.shape_cast %248 : vector<1x16x16xbf16> to vector<16x16xbf16>
    %c0_240 = arith.constant 0 : index
    %c0_241 = arith.constant 0 : index
    %c214_242 = arith.constant 214 : index
    %250 = vector.load %arg1[%c0_240, %c0_241, %c214_242] : memref<1x16x408xbf16, #tpu.memory_space<vmem>>, vector<1x16x80xbf16>
    %251 = vector.shape_cast %250 : vector<1x16x80xbf16> to vector<16x80xbf16>
    %cst_243 = arith.constant dense<0.000000e+00> : vector<16x80xf32>
    %252 = tpu.matmul %249, %251, %cst_243 {dimension_numbers = #tpu.dot_dimension_numbers<[1], [0], [0], [1], [0, 0, 1, 1], [], []>} : vector<16x16xbf16>, vector<16x80xbf16>, vector<16x80xf32> -> vector<16x80xf32>
    %253 = arith.addf %247, %252 : vector<16x80xf32>
    %c13_244 = arith.constant 13 : index
    %c0_245 = arith.constant 0 : index
    %c0_246 = arith.constant 0 : index
    %254 = vector.load %arg2[%c13_244, %c0_245, %c0_246] : memref<27x16x16xbf16, #tpu.memory_space<vmem>>, vector<1x16x16xbf16>
    %255 = vector.shape_cast %254 : vector<1x16x16xbf16> to vector<16x16xbf16>
    %c0_247 = arith.constant 0 : index
    %c0_248 = arith.constant 0 : index
    %c215_249 = arith.constant 215 : index
    %256 = vector.load %arg1[%c0_247, %c0_248, %c215_249] : memref<1x16x408xbf16, #tpu.memory_space<vmem>>, vector<1x16x80xbf16>
    %257 = vector.shape_cast %256 : vector<1x16x80xbf16> to vector<16x80xbf16>
    %cst_250 = arith.constant dense<0.000000e+00> : vector<16x80xf32>
    %258 = tpu.matmul %255, %257, %cst_250 {dimension_numbers = #tpu.dot_dimension_numbers<[1], [0], [0], [1], [0, 0, 1, 1], [], []>} : vector<16x16xbf16>, vector<16x80xbf16>, vector<16x80xf32> -> vector<16x80xf32>
    %259 = arith.addf %253, %258 : vector<16x80xf32>
    %c14_251 = arith.constant 14 : index
    %c0_252 = arith.constant 0 : index
    %c0_253 = arith.constant 0 : index
    %260 = vector.load %arg2[%c14_251, %c0_252, %c0_253] : memref<27x16x16xbf16, #tpu.memory_space<vmem>>, vector<1x16x16xbf16>
    %261 = vector.shape_cast %260 : vector<1x16x16xbf16> to vector<16x16xbf16>
    %c0_254 = arith.constant 0 : index
    %c0_255 = arith.constant 0 : index
    %c216_256 = arith.constant 216 : index
    %262 = vector.load %arg1[%c0_254, %c0_255, %c216_256] : memref<1x16x408xbf16, #tpu.memory_space<vmem>>, vector<1x16x80xbf16>
    %263 = vector.shape_cast %262 : vector<1x16x80xbf16> to vector<16x80xbf16>
    %cst_257 = arith.constant dense<0.000000e+00> : vector<16x80xf32>
    %264 = tpu.matmul %261, %263, %cst_257 {dimension_numbers = #tpu.dot_dimension_numbers<[1], [0], [0], [1], [0, 0, 1, 1], [], []>} : vector<16x16xbf16>, vector<16x80xbf16>, vector<16x80xf32> -> vector<16x80xf32>
    %265 = arith.addf %259, %264 : vector<16x80xf32>
    %c15_258 = arith.constant 15 : index
    %c0_259 = arith.constant 0 : index
    %c0_260 = arith.constant 0 : index
    %266 = vector.load %arg2[%c15_258, %c0_259, %c0_260] : memref<27x16x16xbf16, #tpu.memory_space<vmem>>, vector<1x16x16xbf16>
    %267 = vector.shape_cast %266 : vector<1x16x16xbf16> to vector<16x16xbf16>
    %c0_261 = arith.constant 0 : index
    %c0_262 = arith.constant 0 : index
    %c224_263 = arith.constant 224 : index
    %268 = vector.load %arg1[%c0_261, %c0_262, %c224_263] : memref<1x16x408xbf16, #tpu.memory_space<vmem>>, vector<1x16x80xbf16>
    %269 = vector.shape_cast %268 : vector<1x16x80xbf16> to vector<16x80xbf16>
    %cst_264 = arith.constant dense<0.000000e+00> : vector<16x80xf32>
    %270 = tpu.matmul %267, %269, %cst_264 {dimension_numbers = #tpu.dot_dimension_numbers<[1], [0], [0], [1], [0, 0, 1, 1], [], []>} : vector<16x16xbf16>, vector<16x80xbf16>, vector<16x80xf32> -> vector<16x80xf32>
    %271 = arith.addf %265, %270 : vector<16x80xf32>
    %c16_265 = arith.constant 16 : index
    %c0_266 = arith.constant 0 : index
    %c0_267 = arith.constant 0 : index
    %272 = vector.load %arg2[%c16_265, %c0_266, %c0_267] : memref<27x16x16xbf16, #tpu.memory_space<vmem>>, vector<1x16x16xbf16>
    %273 = vector.shape_cast %272 : vector<1x16x16xbf16> to vector<16x16xbf16>
    %c0_268 = arith.constant 0 : index
    %c0_269 = arith.constant 0 : index
    %c225_270 = arith.constant 225 : index
    %274 = vector.load %arg1[%c0_268, %c0_269, %c225_270] : memref<1x16x408xbf16, #tpu.memory_space<vmem>>, vector<1x16x80xbf16>
    %275 = vector.shape_cast %274 : vector<1x16x80xbf16> to vector<16x80xbf16>
    %cst_271 = arith.constant dense<0.000000e+00> : vector<16x80xf32>
    %276 = tpu.matmul %273, %275, %cst_271 {dimension_numbers = #tpu.dot_dimension_numbers<[1], [0], [0], [1], [0, 0, 1, 1], [], []>} : vector<16x16xbf16>, vector<16x80xbf16>, vector<16x80xf32> -> vector<16x80xf32>
    %277 = arith.addf %271, %276 : vector<16x80xf32>
    %c17_272 = arith.constant 17 : index
    %c0_273 = arith.constant 0 : index
    %c0_274 = arith.constant 0 : index
    %278 = vector.load %arg2[%c17_272, %c0_273, %c0_274] : memref<27x16x16xbf16, #tpu.memory_space<vmem>>, vector<1x16x16xbf16>
    %279 = vector.shape_cast %278 : vector<1x16x16xbf16> to vector<16x16xbf16>
    %c0_275 = arith.constant 0 : index
    %c0_276 = arith.constant 0 : index
    %c226_277 = arith.constant 226 : index
    %280 = vector.load %arg1[%c0_275, %c0_276, %c226_277] : memref<1x16x408xbf16, #tpu.memory_space<vmem>>, vector<1x16x80xbf16>
    %281 = vector.shape_cast %280 : vector<1x16x80xbf16> to vector<16x80xbf16>
    %cst_278 = arith.constant dense<0.000000e+00> : vector<16x80xf32>
    %282 = tpu.matmul %279, %281, %cst_278 {dimension_numbers = #tpu.dot_dimension_numbers<[1], [0], [0], [1], [0, 0, 1, 1], [], []>} : vector<16x16xbf16>, vector<16x80xbf16>, vector<16x80xf32> -> vector<16x80xf32>
    %283 = arith.addf %277, %282 : vector<16x80xf32>
    %c18_279 = arith.constant 18 : index
    %c0_280 = arith.constant 0 : index
    %c0_281 = arith.constant 0 : index
    %284 = vector.load %arg2[%c18_279, %c0_280, %c0_281] : memref<27x16x16xbf16, #tpu.memory_space<vmem>>, vector<1x16x16xbf16>
    %285 = vector.shape_cast %284 : vector<1x16x16xbf16> to vector<16x16xbf16>
    %c0_282 = arith.constant 0 : index
    %c0_283 = arith.constant 0 : index
    %c306 = arith.constant 306 : index
    %286 = vector.load %arg1[%c0_282, %c0_283, %c306] : memref<1x16x408xbf16, #tpu.memory_space<vmem>>, vector<1x16x80xbf16>
    %287 = vector.shape_cast %286 : vector<1x16x80xbf16> to vector<16x80xbf16>
    %cst_284 = arith.constant dense<0.000000e+00> : vector<16x80xf32>
    %288 = tpu.matmul %285, %287, %cst_284 {dimension_numbers = #tpu.dot_dimension_numbers<[1], [0], [0], [1], [0, 0, 1, 1], [], []>} : vector<16x16xbf16>, vector<16x80xbf16>, vector<16x80xf32> -> vector<16x80xf32>
    %289 = arith.addf %283, %288 : vector<16x80xf32>
    %c19_285 = arith.constant 19 : index
    %c0_286 = arith.constant 0 : index
    %c0_287 = arith.constant 0 : index
    %290 = vector.load %arg2[%c19_285, %c0_286, %c0_287] : memref<27x16x16xbf16, #tpu.memory_space<vmem>>, vector<1x16x16xbf16>
    %291 = vector.shape_cast %290 : vector<1x16x16xbf16> to vector<16x16xbf16>
    %c0_288 = arith.constant 0 : index
    %c0_289 = arith.constant 0 : index
    %c307 = arith.constant 307 : index
    %292 = vector.load %arg1[%c0_288, %c0_289, %c307] : memref<1x16x408xbf16, #tpu.memory_space<vmem>>, vector<1x16x80xbf16>
    %293 = vector.shape_cast %292 : vector<1x16x80xbf16> to vector<16x80xbf16>
    %cst_290 = arith.constant dense<0.000000e+00> : vector<16x80xf32>
    %294 = tpu.matmul %291, %293, %cst_290 {dimension_numbers = #tpu.dot_dimension_numbers<[1], [0], [0], [1], [0, 0, 1, 1], [], []>} : vector<16x16xbf16>, vector<16x80xbf16>, vector<16x80xf32> -> vector<16x80xf32>
    %295 = arith.addf %289, %294 : vector<16x80xf32>
    %c20_291 = arith.constant 20 : index
    %c0_292 = arith.constant 0 : index
    %c0_293 = arith.constant 0 : index
    %296 = vector.load %arg2[%c20_291, %c0_292, %c0_293] : memref<27x16x16xbf16, #tpu.memory_space<vmem>>, vector<1x16x16xbf16>
    %297 = vector.shape_cast %296 : vector<1x16x16xbf16> to vector<16x16xbf16>
    %c0_294 = arith.constant 0 : index
    %c0_295 = arith.constant 0 : index
    %c308 = arith.constant 308 : index
    %298 = vector.load %arg1[%c0_294, %c0_295, %c308] : memref<1x16x408xbf16, #tpu.memory_space<vmem>>, vector<1x16x80xbf16>
    %299 = vector.shape_cast %298 : vector<1x16x80xbf16> to vector<16x80xbf16>
    %cst_296 = arith.constant dense<0.000000e+00> : vector<16x80xf32>
    %300 = tpu.matmul %297, %299, %cst_296 {dimension_numbers = #tpu.dot_dimension_numbers<[1], [0], [0], [1], [0, 0, 1, 1], [], []>} : vector<16x16xbf16>, vector<16x80xbf16>, vector<16x80xf32> -> vector<16x80xf32>
    %301 = arith.addf %295, %300 : vector<16x80xf32>
    %c21_297 = arith.constant 21 : index
    %c0_298 = arith.constant 0 : index
    %c0_299 = arith.constant 0 : index
    %302 = vector.load %arg2[%c21_297, %c0_298, %c0_299] : memref<27x16x16xbf16, #tpu.memory_space<vmem>>, vector<1x16x16xbf16>
    %303 = vector.shape_cast %302 : vector<1x16x16xbf16> to vector<16x16xbf16>
    %c0_300 = arith.constant 0 : index
    %c0_301 = arith.constant 0 : index
    %c316 = arith.constant 316 : index
    %304 = vector.load %arg1[%c0_300, %c0_301, %c316] : memref<1x16x408xbf16, #tpu.memory_space<vmem>>, vector<1x16x80xbf16>
    %305 = vector.shape_cast %304 : vector<1x16x80xbf16> to vector<16x80xbf16>
    %cst_302 = arith.constant dense<0.000000e+00> : vector<16x80xf32>
    %306 = tpu.matmul %303, %305, %cst_302 {dimension_numbers = #tpu.dot_dimension_numbers<[1], [0], [0], [1], [0, 0, 1, 1], [], []>} : vector<16x16xbf16>, vector<16x80xbf16>, vector<16x80xf32> -> vector<16x80xf32>
    %307 = arith.addf %301, %306 : vector<16x80xf32>
    %c22_303 = arith.constant 22 : index
    %c0_304 = arith.constant 0 : index
    %c0_305 = arith.constant 0 : index
    %308 = vector.load %arg2[%c22_303, %c0_304, %c0_305] : memref<27x16x16xbf16, #tpu.memory_space<vmem>>, vector<1x16x16xbf16>
    %309 = vector.shape_cast %308 : vector<1x16x16xbf16> to vector<16x16xbf16>
    %c0_306 = arith.constant 0 : index
    %c0_307 = arith.constant 0 : index
    %c317 = arith.constant 317 : index
    %310 = vector.load %arg1[%c0_306, %c0_307, %c317] : memref<1x16x408xbf16, #tpu.memory_space<vmem>>, vector<1x16x80xbf16>
    %311 = vector.shape_cast %310 : vector<1x16x80xbf16> to vector<16x80xbf16>
    %cst_308 = arith.constant dense<0.000000e+00> : vector<16x80xf32>
    %312 = tpu.matmul %309, %311, %cst_308 {dimension_numbers = #tpu.dot_dimension_numbers<[1], [0], [0], [1], [0, 0, 1, 1], [], []>} : vector<16x16xbf16>, vector<16x80xbf16>, vector<16x80xf32> -> vector<16x80xf32>
    %313 = arith.addf %307, %312 : vector<16x80xf32>
    %c23_309 = arith.constant 23 : index
    %c0_310 = arith.constant 0 : index
    %c0_311 = arith.constant 0 : index
    %314 = vector.load %arg2[%c23_309, %c0_310, %c0_311] : memref<27x16x16xbf16, #tpu.memory_space<vmem>>, vector<1x16x16xbf16>
    %315 = vector.shape_cast %314 : vector<1x16x16xbf16> to vector<16x16xbf16>
    %c0_312 = arith.constant 0 : index
    %c0_313 = arith.constant 0 : index
    %c318 = arith.constant 318 : index
    %316 = vector.load %arg1[%c0_312, %c0_313, %c318] : memref<1x16x408xbf16, #tpu.memory_space<vmem>>, vector<1x16x80xbf16>
    %317 = vector.shape_cast %316 : vector<1x16x80xbf16> to vector<16x80xbf16>
    %cst_314 = arith.constant dense<0.000000e+00> : vector<16x80xf32>
    %318 = tpu.matmul %315, %317, %cst_314 {dimension_numbers = #tpu.dot_dimension_numbers<[1], [0], [0], [1], [0, 0, 1, 1], [], []>} : vector<16x16xbf16>, vector<16x80xbf16>, vector<16x80xf32> -> vector<16x80xf32>
    %319 = arith.addf %313, %318 : vector<16x80xf32>
    %c24_315 = arith.constant 24 : index
    %c0_316 = arith.constant 0 : index
    %c0_317 = arith.constant 0 : index
    %320 = vector.load %arg2[%c24_315, %c0_316, %c0_317] : memref<27x16x16xbf16, #tpu.memory_space<vmem>>, vector<1x16x16xbf16>
    %321 = vector.shape_cast %320 : vector<1x16x16xbf16> to vector<16x16xbf16>
    %c0_318 = arith.constant 0 : index
    %c0_319 = arith.constant 0 : index
    %c326 = arith.constant 326 : index
    %322 = vector.load %arg1[%c0_318, %c0_319, %c326] : memref<1x16x408xbf16, #tpu.memory_space<vmem>>, vector<1x16x80xbf16>
    %323 = vector.shape_cast %322 : vector<1x16x80xbf16> to vector<16x80xbf16>
    %cst_320 = arith.constant dense<0.000000e+00> : vector<16x80xf32>
    %324 = tpu.matmul %321, %323, %cst_320 {dimension_numbers = #tpu.dot_dimension_numbers<[1], [0], [0], [1], [0, 0, 1, 1], [], []>} : vector<16x16xbf16>, vector<16x80xbf16>, vector<16x80xf32> -> vector<16x80xf32>
    %325 = arith.addf %319, %324 : vector<16x80xf32>
    %c25_321 = arith.constant 25 : index
    %c0_322 = arith.constant 0 : index
    %c0_323 = arith.constant 0 : index
    %326 = vector.load %arg2[%c25_321, %c0_322, %c0_323] : memref<27x16x16xbf16, #tpu.memory_space<vmem>>, vector<1x16x16xbf16>
    %327 = vector.shape_cast %326 : vector<1x16x16xbf16> to vector<16x16xbf16>
    %c0_324 = arith.constant 0 : index
    %c0_325 = arith.constant 0 : index
    %c327 = arith.constant 327 : index
    %328 = vector.load %arg1[%c0_324, %c0_325, %c327] : memref<1x16x408xbf16, #tpu.memory_space<vmem>>, vector<1x16x80xbf16>
    %329 = vector.shape_cast %328 : vector<1x16x80xbf16> to vector<16x80xbf16>
    %cst_326 = arith.constant dense<0.000000e+00> : vector<16x80xf32>
    %330 = tpu.matmul %327, %329, %cst_326 {dimension_numbers = #tpu.dot_dimension_numbers<[1], [0], [0], [1], [0, 0, 1, 1], [], []>} : vector<16x16xbf16>, vector<16x80xbf16>, vector<16x80xf32> -> vector<16x80xf32>
    %331 = arith.addf %325, %330 : vector<16x80xf32>
    %c26_327 = arith.constant 26 : index
    %c0_328 = arith.constant 0 : index
    %c0_329 = arith.constant 0 : index
    %332 = vector.load %arg2[%c26_327, %c0_328, %c0_329] : memref<27x16x16xbf16, #tpu.memory_space<vmem>>, vector<1x16x16xbf16>
    %333 = vector.shape_cast %332 : vector<1x16x16xbf16> to vector<16x16xbf16>
    %c0_330 = arith.constant 0 : index
    %c0_331 = arith.constant 0 : index
    %c328 = arith.constant 328 : index
    %334 = vector.load %arg1[%c0_330, %c0_331, %c328] : memref<1x16x408xbf16, #tpu.memory_space<vmem>>, vector<1x16x80xbf16>
    %335 = vector.shape_cast %334 : vector<1x16x80xbf16> to vector<16x80xbf16>
    %cst_332 = arith.constant dense<0.000000e+00> : vector<16x80xf32>
    %336 = tpu.matmul %333, %335, %cst_332 {dimension_numbers = #tpu.dot_dimension_numbers<[1], [0], [0], [1], [0, 0, 1, 1], [], []>} : vector<16x16xbf16>, vector<16x80xbf16>, vector<16x80xf32> -> vector<16x80xf32>
    %337 = arith.addf %331, %336 : vector<16x80xf32>
    %c0_333 = arith.constant 0 : index
    %c0_334 = arith.constant 0 : index
    %338 = vector.load %arg3[%c0_333, %c0_334] : memref<16x1xf32, #tpu.memory_space<vmem>>, vector<16x1xf32>
    %339 = vector.broadcast %338 : vector<16x1xf32> to vector<16x80xf32>
    %340 = arith.mulf %337, %339 : vector<16x80xf32>
    %c0_335 = arith.constant 0 : index
    %c0_336 = arith.constant 0 : index
    %341 = vector.load %arg4[%c0_335, %c0_336] : memref<16x1xf32, #tpu.memory_space<vmem>>, vector<16x1xf32>
    %342 = vector.broadcast %341 : vector<16x1xf32> to vector<16x80xf32>
    %343 = arith.addf %340, %342 : vector<16x80xf32>
    %cst_337 = arith.constant 0.000000e+00 : f32
    %344 = vector.broadcast %cst_337 : f32 to vector<16x80xf32>
    %345 = arith.maximumf %343, %344 : vector<16x80xf32>
    %346 = arith.truncf %345 : vector<16x80xf32> to vector<16x80xbf16>
    %c0_338 = arith.constant 0 : index
    %c0_339 = arith.constant 0 : index
    %c80 = arith.constant 80 : index
    %347 = vector.load %arg5[%c0_338, %c0_339, %c80] : memref<1x16x160xbf16, #tpu.memory_space<vmem>>, vector<1x16x80xbf16>
    %348 = vector.shape_cast %347 : vector<1x16x80xbf16> to vector<16x80xbf16>
    %349 = vector.shape_cast %346 : vector<16x80xbf16> to vector<1x16x80xbf16>
    tpu.vector_store %arg5[%c0_338, %c0_339, %c80], %349 {strides = array<i32>} : memref<1x16x160xbf16, #tpu.memory_space<vmem>>, vector<1x16x80xbf16>,
    return
  }
  func.func @transform_0(%arg0: i32) -> (i32, i32, i32) {
    %c0_i32 = arith.constant 0 : i32
    %c0_i32_0 = arith.constant 0 : i32
    %c0_i32_1 = arith.constant 0 : i32
    return %arg0, %c0_i32, %c0_i32_0 : i32, i32, i32
  }
  func.func @transform_1(%arg0: i32) -> (i32, i32, i32) {
    %c0_i32 = arith.constant 0 : i32
    %c0_i32_0 = arith.constant 0 : i32
    %c0_i32_1 = arith.constant 0 : i32
    %c0_i32_2 = arith.constant 0 : i32
    return %c0_i32, %c0_i32_0, %c0_i32_1 : i32, i32, i32
  }
  func.func @transform_2(%arg0: i32) -> (i32, i32) {
    %c0_i32 = arith.constant 0 : i32
    %c0_i32_0 = arith.constant 0 : i32
    %c0_i32_1 = arith.constant 0 : i32
    return %c0_i32, %c0_i32_0 : i32, i32
  }
  func.func @transform_3(%arg0: i32) -> (i32, i32) {
    %c0_i32 = arith.constant 0 : i32
    %c0_i32_0 = arith.constant 0 : i32
    %c0_i32_1 = arith.constant 0 : i32
    return %c0_i32, %c0_i32_0 : i32, i32
  }
  func.func @transform_4(%arg0: i32) -> (i32, i32, i32) {
    %c0_i32 = arith.constant 0 : i32
    %c0_i32_0 = arith.constant 0 : i32
    %c0_i32_1 = arith.constant 0 : i32
    return %arg0, %c0_i32, %c0_i32_0 : i32, i32, i32
  }
}

module attributes {stable_mosaic.version = 11 : i64} {
  func.func @_qkv_kernel(%arg0: i32, %arg1: memref<1x16x128xbf16, #tpu.memory_space<vmem>>, %arg2: memref<48x16xbf16, #tpu.memory_space<vmem>>, %arg3: memref<1x48x128xbf16, #tpu.memory_space<vmem>>) attributes {dimension_semantics = [#tpu.dimension_semantics<parallel>], iteration_bounds = array<i64: 2>, scalar_prefetch = 0 : i64, scratch_operands = 0 : i64, tpu.core_type = #tpu.core_type<tc>, window_params = [{transform_indices = @transform_0, window_bounds = array<i64: 1, 16, 128>}, {pipeline_mode = #tpu.pipeline_mode<synchronous>, transform_indices = @transform_1, window_bounds = array<i64: 48, 16>}, {transform_indices = @transform_2, window_bounds = array<i64: 1, 48, 128>}]} {
    %c0 = arith.constant 0 : index
    %c0_0 = arith.constant 0 : index
    %0 = vector.load %arg2[%c0, %c0_0] : memref<48x16xbf16, #tpu.memory_space<vmem>>, vector<48x16xbf16>
    %c0_1 = arith.constant 0 : index
    %c0_2 = arith.constant 0 : index
    %c0_3 = arith.constant 0 : index
    %1 = vector.load %arg1[%c0_1, %c0_2, %c0_3] : memref<1x16x128xbf16, #tpu.memory_space<vmem>>, vector<1x16x128xbf16>
    %2 = vector.shape_cast %1 : vector<1x16x128xbf16> to vector<16x128xbf16>
    %cst = arith.constant dense<0.000000e+00> : vector<48x128xf32>
    %3 = tpu.matmul %0, %2, %cst {dimension_numbers = #tpu.dot_dimension_numbers<[1], [0], [0], [1], [0, 0, 1, 1], [], []>} : vector<48x16xbf16>, vector<16x128xbf16>, vector<48x128xf32> -> vector<48x128xf32>
    %4 = arith.truncf %3 : vector<48x128xf32> to vector<48x128xbf16>
    %c0_4 = arith.constant 0 : index
    %c0_5 = arith.constant 0 : index
    %c0_6 = arith.constant 0 : index
    %5 = vector.load %arg3[%c0_4, %c0_5, %c0_6] : memref<1x48x128xbf16, #tpu.memory_space<vmem>>, vector<1x48x128xbf16>
    %6 = vector.shape_cast %5 : vector<1x48x128xbf16> to vector<48x128xbf16>
    %7 = vector.shape_cast %4 : vector<48x128xbf16> to vector<1x48x128xbf16>
    tpu.vector_store %arg3[%c0_4, %c0_5, %c0_6], %7 {strides = array<i32>} : memref<1x48x128xbf16, #tpu.memory_space<vmem>>, vector<1x48x128xbf16>,
    return
  }
  func.func @transform_0(%arg0: i32) -> (i32, i32, i32) {
    %c0_i32 = arith.constant 0 : i32
    %c0_i32_0 = arith.constant 0 : i32
    %c0_i32_1 = arith.constant 0 : i32
    return %arg0, %c0_i32, %c0_i32_0 : i32, i32, i32
  }
  func.func @transform_1(%arg0: i32) -> (i32, i32) {
    %c0_i32 = arith.constant 0 : i32
    %c0_i32_0 = arith.constant 0 : i32
    %c0_i32_1 = arith.constant 0 : i32
    return %c0_i32, %c0_i32_0 : i32, i32
  }
  func.func @transform_2(%arg0: i32) -> (i32, i32, i32) {
    %c0_i32 = arith.constant 0 : i32
    %c0_i32_0 = arith.constant 0 : i32
    %c0_i32_1 = arith.constant 0 : i32
    return %arg0, %c0_i32, %c0_i32_0 : i32, i32, i32
  }
}

module attributes {stable_mosaic.version = 11 : i64} {
  func.func @_attn_bn_add_relu_kernel(%arg0: i32, %arg1: memref<1x1x8x4x64xbf16, #tpu.memory_space<vmem>>, %arg2: memref<1x1x8x4x64xbf16, #tpu.memory_space<vmem>>, %arg3: memref<1x1x8x4x64xbf16, #tpu.memory_space<vmem>>, %arg4: memref<8x64x4xbf16, #tpu.memory_space<vmem>>, %arg5: memref<1x8x4x64xf32, #tpu.memory_space<vmem>>, %arg6: memref<8x4x1xf32, #tpu.memory_space<vmem>>, %arg7: memref<8x4x1xf32, #tpu.memory_space<vmem>>, %arg8: memref<1x8x4x64xf32, #tpu.memory_space<vmem>>) attributes {dimension_semantics = [#tpu.dimension_semantics<parallel>], iteration_bounds = array<i64: 2>, scalar_prefetch = 0 : i64, scratch_operands = 0 : i64, tpu.core_type = #tpu.core_type<tc>, window_params = [{transform_indices = @transform_0, window_bounds = array<i64: 1, 1, 8, 4, 64>}, {transform_indices = @transform_1, window_bounds = array<i64: 1, 1, 8, 4, 64>}, {transform_indices = @transform_2, window_bounds = array<i64: 1, 1, 8, 4, 64>}, {pipeline_mode = #tpu.pipeline_mode<synchronous>, transform_indices = @transform_3, window_bounds = array<i64: 8, 64, 4>}, {transform_indices = @transform_4, window_bounds = array<i64: 1, 8, 4, 64>}, {pipeline_mode = #tpu.pipeline_mode<synchronous>, transform_indices = @transform_5, window_bounds = array<i64: 8, 4, 1>}, {pipeline_mode = #tpu.pipeline_mode<synchronous>, transform_indices = @transform_6, window_bounds = array<i64: 8, 4, 1>}, {transform_indices = @transform_7, window_bounds = array<i64: 1, 8, 4, 64>}]} {
    %c0 = arith.constant 0 : index
    %c0_0 = arith.constant 0 : index
    %c0_1 = arith.constant 0 : index
    %c0_2 = arith.constant 0 : index
    %c0_3 = arith.constant 0 : index
    %0 = vector.load %arg1[%c0, %c0_0, %c0_1, %c0_2, %c0_3] : memref<1x1x8x4x64xbf16, #tpu.memory_space<vmem>>, vector<1x1x8x4x64xbf16>
    %1 = vector.shape_cast %0 : vector<1x1x8x4x64xbf16> to vector<8x4x64xbf16>
    %c0_4 = arith.constant 0 : index
    %c0_5 = arith.constant 0 : index
    %c0_6 = arith.constant 0 : index
    %c0_7 = arith.constant 0 : index
    %c0_8 = arith.constant 0 : index
    %2 = vector.load %arg2[%c0_4, %c0_5, %c0_6, %c0_7, %c0_8] : memref<1x1x8x4x64xbf16, #tpu.memory_space<vmem>>, vector<1x1x8x4x64xbf16>
    %3 = vector.shape_cast %2 : vector<1x1x8x4x64xbf16> to vector<8x4x64xbf16>
    %c0_9 = arith.constant 0 : index
    %c0_10 = arith.constant 0 : index
    %c0_11 = arith.constant 0 : index
    %c0_12 = arith.constant 0 : index
    %c0_13 = arith.constant 0 : index
    %4 = vector.load %arg3[%c0_9, %c0_10, %c0_11, %c0_12, %c0_13] : memref<1x1x8x4x64xbf16, #tpu.memory_space<vmem>>, vector<1x1x8x4x64xbf16>
    %5 = vector.shape_cast %4 : vector<1x1x8x4x64xbf16> to vector<8x4x64xbf16>
    %c0_14 = arith.constant 0 : index
    %c0_15 = arith.constant 0 : index
    %c0_16 = arith.constant 0 : index
    %6 = vector.load %arg4[%c0_14, %c0_15, %c0_16] : memref<8x64x4xbf16, #tpu.memory_space<vmem>>, vector<8x64x4xbf16>
    "tpu.trace_start"() <{level = 10 : i32, message = "bds,bdt->bst"}> : () -> ()
    %cst = arith.constant dense<0.000000e+00> : vector<8x64x64xf32>
    %7 = tpu.matmul %1, %3, %cst {dimension_numbers = #tpu.dot_dimension_numbers<[1], [1], [2], [2], [0, 0, 0, 2, 1, 2], [0], [0]>} : vector<8x4x64xbf16>, vector<8x4x64xbf16>, vector<8x64x64xf32> -> vector<8x64x64xf32>
    "tpu.trace_stop"() : () -> ()
    "tpu.trace_start"() <{level = 10 : i32, message = "bsd,bdt->bst"}> : () -> ()
    %cst_17 = arith.constant dense<0.000000e+00> : vector<8x64x64xf32>
    %8 = tpu.matmul %6, %1, %cst_17 {dimension_numbers = #tpu.dot_dimension_numbers<[2], [1], [1], [2], [0, 0, 0, 1, 1, 2], [0], [0]>} : vector<8x64x4xbf16>, vector<8x4x64xbf16>, vector<8x64x64xf32> -> vector<8x64x64xf32>
    "tpu.trace_stop"() : () -> ()
    %9 = arith.addf %7, %8 : vector<8x64x64xf32>
    %cst_18 = arith.constant 5.000000e-01 : f32
    %10 = vector.broadcast %cst_18 : f32 to vector<8x64x64xf32>
    %11 = arith.mulf %9, %10 : vector<8x64x64xf32>
    %cst_19 = arith.constant dense<0xFF800000> : vector<8x64xf32>
    %12 = vector.multi_reduction <maximumf>, %11, %cst_19 [2] : vector<8x64x64xf32> to vector<8x64xf32>
    %13 = vector.shape_cast %12 : vector<8x64xf32> to vector<8x64x1xf32>
    %14 = vector.broadcast %13 : vector<8x64x1xf32> to vector<8x64x64xf32>
    %15 = arith.subf %11, %14 : vector<8x64x64xf32>
    %16 = math.exp %15 : vector<8x64x64xf32>
    %cst_20 = arith.constant dense<0.000000e+00> : vector<8x64xf32>
    %17 = vector.multi_reduction <add>, %16, %cst_20 [2] : vector<8x64x64xf32> to vector<8x64xf32>
    %18 = vector.shape_cast %17 : vector<8x64xf32> to vector<8x64x1xf32>
    %19 = tpu.reciprocal %18 {approx = true} : vector<8x64x1xf32> -> vector<8x64x1xf32>
    %20 = vector.broadcast %19 : vector<8x64x1xf32> to vector<8x64x64xf32>
    %21 = arith.mulf %16, %20 : vector<8x64x64xf32>
    %22 = arith.truncf %21 : vector<8x64x64xf32> to vector<8x64x64xbf16>
    "tpu.trace_start"() <{level = 10 : i32, message = "bdt,bst->bds"}> : () -> ()
    %cst_21 = arith.constant dense<0.000000e+00> : vector<8x4x64xf32>
    %23 = tpu.matmul %5, %22, %cst_21 {dimension_numbers = #tpu.dot_dimension_numbers<[2], [2], [1], [1], [0, 0, 0, 1, 1, 1], [0], [0]>} : vector<8x4x64xbf16>, vector<8x64x64xbf16>, vector<8x4x64xf32> -> vector<8x4x64xf32>
    "tpu.trace_stop"() : () -> ()
    %c0_22 = arith.constant 0 : index
    %c0_23 = arith.constant 0 : index
    %c0_24 = arith.constant 0 : index
    %24 = vector.load %arg6[%c0_22, %c0_23, %c0_24] : memref<8x4x1xf32, #tpu.memory_space<vmem>>, vector<8x4x1xf32>
    %25 = vector.broadcast %24 : vector<8x4x1xf32> to vector<8x4x64xf32>
    %26 = arith.mulf %23, %25 : vector<8x4x64xf32>
    %c0_25 = arith.constant 0 : index
    %c0_26 = arith.constant 0 : index
    %c0_27 = arith.constant 0 : index
    %27 = vector.load %arg7[%c0_25, %c0_26, %c0_27] : memref<8x4x1xf32, #tpu.memory_space<vmem>>, vector<8x4x1xf32>
    %28 = vector.broadcast %27 : vector<8x4x1xf32> to vector<8x4x64xf32>
    %29 = arith.addf %26, %28 : vector<8x4x64xf32>
    %c0_28 = arith.constant 0 : index
    %c0_29 = arith.constant 0 : index
    %c0_30 = arith.constant 0 : index
    %c0_31 = arith.constant 0 : index
    %30 = vector.load %arg5[%c0_28, %c0_29, %c0_30, %c0_31] : memref<1x8x4x64xf32, #tpu.memory_space<vmem>>, vector<1x8x4x64xf32>
    %31 = vector.shape_cast %30 : vector<1x8x4x64xf32> to vector<8x4x64xf32>
    %32 = arith.addf %29, %31 : vector<8x4x64xf32>
    %cst_32 = arith.constant 0.000000e+00 : f32
    %33 = vector.broadcast %cst_32 : f32 to vector<8x4x64xf32>
    %34 = arith.maximumf %32, %33 : vector<8x4x64xf32>
    %c0_33 = arith.constant 0 : index
    %c0_34 = arith.constant 0 : index
    %c0_35 = arith.constant 0 : index
    %c0_36 = arith.constant 0 : index
    %35 = vector.load %arg8[%c0_33, %c0_34, %c0_35, %c0_36] : memref<1x8x4x64xf32, #tpu.memory_space<vmem>>, vector<1x8x4x64xf32>
    %36 = vector.shape_cast %35 : vector<1x8x4x64xf32> to vector<8x4x64xf32>
    %37 = vector.shape_cast %34 : vector<8x4x64xf32> to vector<1x8x4x64xf32>
    tpu.vector_store %arg8[%c0_33, %c0_34, %c0_35, %c0_36], %37 {strides = array<i32>} : memref<1x8x4x64xf32, #tpu.memory_space<vmem>>, vector<1x8x4x64xf32>,
    return
  }
  func.func @transform_0(%arg0: i32) -> (i32, i32, i32, i32, i32) {
    %c0_i32 = arith.constant 0 : i32
    %c0_i32_0 = arith.constant 0 : i32
    %c0_i32_1 = arith.constant 0 : i32
    %c0_i32_2 = arith.constant 0 : i32
    %c0_i32_3 = arith.constant 0 : i32
    return %arg0, %c0_i32, %c0_i32_0, %c0_i32_1, %c0_i32_2 : i32, i32, i32, i32, i32
  }
  func.func @transform_1(%arg0: i32) -> (i32, i32, i32, i32, i32) {
    %c1_i32 = arith.constant 1 : i32
    %c0_i32 = arith.constant 0 : i32
    %c0_i32_0 = arith.constant 0 : i32
    %c0_i32_1 = arith.constant 0 : i32
    %c0_i32_2 = arith.constant 0 : i32
    return %arg0, %c1_i32, %c0_i32, %c0_i32_0, %c0_i32_1 : i32, i32, i32, i32, i32
  }
  func.func @transform_2(%arg0: i32) -> (i32, i32, i32, i32, i32) {
    %c2_i32 = arith.constant 2 : i32
    %c0_i32 = arith.constant 0 : i32
    %c0_i32_0 = arith.constant 0 : i32
    %c0_i32_1 = arith.constant 0 : i32
    %c0_i32_2 = arith.constant 0 : i32
    return %arg0, %c2_i32, %c0_i32, %c0_i32_0, %c0_i32_1 : i32, i32, i32, i32, i32
  }
  func.func @transform_3(%arg0: i32) -> (i32, i32, i32) {
    %c0_i32 = arith.constant 0 : i32
    %c0_i32_0 = arith.constant 0 : i32
    %c0_i32_1 = arith.constant 0 : i32
    %c0_i32_2 = arith.constant 0 : i32
    return %c0_i32, %c0_i32_0, %c0_i32_1 : i32, i32, i32
  }
  func.func @transform_4(%arg0: i32) -> (i32, i32, i32, i32) {
    %c0_i32 = arith.constant 0 : i32
    %c0_i32_0 = arith.constant 0 : i32
    %c0_i32_1 = arith.constant 0 : i32
    %c0_i32_2 = arith.constant 0 : i32
    return %arg0, %c0_i32, %c0_i32_0, %c0_i32_1 : i32, i32, i32, i32
  }
  func.func @transform_5(%arg0: i32) -> (i32, i32, i32) {
    %c0_i32 = arith.constant 0 : i32
    %c0_i32_0 = arith.constant 0 : i32
    %c0_i32_1 = arith.constant 0 : i32
    %c0_i32_2 = arith.constant 0 : i32
    return %c0_i32, %c0_i32_0, %c0_i32_1 : i32, i32, i32
  }
  func.func @transform_6(%arg0: i32) -> (i32, i32, i32) {
    %c0_i32 = arith.constant 0 : i32
    %c0_i32_0 = arith.constant 0 : i32
    %c0_i32_1 = arith.constant 0 : i32
    %c0_i32_2 = arith.constant 0 : i32
    return %c0_i32, %c0_i32_0, %c0_i32_1 : i32, i32, i32
  }
  func.func @transform_7(%arg0: i32) -> (i32, i32, i32, i32) {
    %c0_i32 = arith.constant 0 : i32
    %c0_i32_0 = arith.constant 0 : i32
    %c0_i32_1 = arith.constant 0 : i32
    %c0_i32_2 = arith.constant 0 : i32
    return %arg0, %c0_i32, %c0_i32_0, %c0_i32_1 : i32, i32, i32, i32
  }
}

</mosaic_0001>

<bundles_post_ra>
// kernel: basic_block_forward.4
= control target key start
LH: loop header
LB: loop body
LE: loop exit
PB: predicated region body
PF: predicated region fallthrough
CT: control target
= control target key end

     0   :  { %s360_s9 = smov 0   ;;  %s386_s0 = inlined_call_operand.vmem [shape: bf16[2,16,128], index: 0, kind: input, shape index: {}]   ;;  %s387_s1 = inlined_call_operand.vmem [shape: bf16[48,16], index: 1, kind: input, shape index: {}]   ;;  %s388_s2 = inlined_call_operand.vmem [shape: bf16[2,48,128], index: 2, kind: output, shape index: {}]  }
   0x1 LB: > { %s275_s10 = sadd.s32 4294967295, %s343_s9   ;;  %p279_p0 = scmp.ge.s32.totalorder %s343_s9, 1  ;;  %s343_s9 = sphi %s360_s9, %s12_s9  }
   0x2   : > { %p112_p1 = scmp.lt.s32.totalorder %s343_s9, 3 }
   0x4   : > { %p113_p2 = pnand %p279_p0, %p112_p1 }
   0x5   : > { %p134_p3 = scmp.lt.s32.totalorder (!%p113_p2), %s275_s10, 1 }
   0x6   : > { %116 = sbr.rel (%p113_p2) target bundleno = 162 (0xa2), region = 28 }
   0xb   : > { %s390_s10 = smov (!%p134_p3, %s275_s10), 1  ;;  %v305_v1 = vld [vmem:[%s387_s1] sm:$0xff]  ;;  %v306_v2 = vld [vmem:[%s387_s1 + $0x8] sm:$0xff]  ;;  %vm174_vm0 = vcmask 130048   ;;  %v307_v3 = vld [vmem:[%s387_s1 + $0x10] sm:$0xff] }
   0xc   : > { %s304_s11 = sshll.u32 %s390_s10, 3  ;;  %s328_s21 = smul.u32 24, %s390_s10 }
   0xd   : > { %s138_s14 = scalar_lea.vmem %s386_s0, %s304_s11 }
   0xe   : > { %v308_v0 = vld [vmem:[%s138_s14] sm:$0xff]  ;;  %s143_s24 = scalar_lea.vmem %s388_s2, %s328_s21 }
   0xf   : > { %191 = vmatpush.bf16.msra.mxu0 %v308_v0  ;;  %326 = vmatpush.bf16.msra.mxu1 %v308_v0 }
  0x10   : > { %327 = vmatpush.bf16.msra.mxu2 %v308_v0 }
  0x12   : > { %299 = vmatmul.msk.bf16.vlgmr.msra.gmra.mxu0 %vm174_vm0, %v305_v1  ;;  %300 = vmatmul.msk.bf16.vlgmr.msra.gmra.mxu1 %vm174_vm0, %v306_v2 }
  0x13   : > { %301 = vmatmul.msk.bf16.vlgmr.msra.gmra.mxu2 %vm174_vm0, %v307_v3 }
  0x8f   : > { %v193_v4 = vpop.f32.mrf.mxu0  ;;  %v198_v5 = vpop.f32.mrf.mxu1 }
  0x96   : > { %v203_v6 = vpop.f32.mrf.mxu2 }
  0x97   : > { %v195_v7 = vpop.f32.mrf.mxu0  ;;  %v200_v8 = vpop.f32.mrf.mxu1 }
  0x98   : > { %v312_v9 = vpack.c.bf16 %v195_v7, %v193_v4  ;;  %v317_v10 = vpack.c.bf16 %v200_v8, %v198_v5 }
  0x9a   : > { %313 = vst [vmem:[%s143_s24] sm:$0xff] %v312_v9  }
  0x9b   : > { %324 = vst [vmem:[%s143_s24 + $0x8] sm:$0xff] %v317_v10  }
  0x9e   : > { %v205_v11 = vpop.f32.mrf.mxu2 }
  0x9f   : > { %v322_v12 = vpack.c.bf16 %v205_v11, %v203_v6 }
  0xa1   : > { %325 = vst [vmem:[%s143_s24 + $0x10] sm:$0xff] %v322_v12  }
  0xa2 PF: > { %s12_s9 = sadd.s32 1, %s343_s9  }
  0xa3   : > { %p9_p4 = scmp.ge.s32.totalorder %s12_s9, 4  }
  0xa5   :  { %11 = sbr.rel (!%p9_p4) target bundleno = 1 (0x1), region = 58 }

// kernel: basic_block_forward.3
= control target key start
LH: loop header
LB: loop body
LE: loop exit
PB: predicated region body
PF: predicated region fallthrough
CT: control target
= control target key end

     0   :  { %s2755_s15 = smov 0   ;;  %s3238_s0 = inlined_call_operand.vmem [shape: bf16[2,16,408], index: 0, kind: input, shape index: {}]   ;;  %s3239_s1 = inlined_call_operand.vmem [shape: bf16[27,16,16], index: 1, kind: input, shape index: {}]   ;;  %s3240_s2 = inlined_call_operand.vmem [shape: f32[16,1], index: 2, kind: input, shape index: {}]   ;;  %s3241_s3 = inlined_call_operand.vmem [shape: f32[16,1], index: 3, kind: input, shape index: {}]   ;;  %s3242_s4 = inlined_call_operand.vmem [shape: bf16[2,16,160], index: 4, kind: output, shape index: {}]  }
   0x1 LB: > { %s2141_s16 = sadd.s32 4294967295, %s2691_s15   ;;  %p2145_p0 = scmp.ge.s32.totalorder %s2691_s15, 1  ;;  %s2691_s15 = sphi %s2755_s15, %s14_s15  }
   0x2   : > { %p162_p1 = scmp.lt.s32.totalorder %s2691_s15, 3 }
   0x4   : > { %p163_p2 = pnand %p2145_p0, %p162_p1 }
   0x5   : > { %p188_p3 = scmp.lt.s32.totalorder (!%p163_p2), %s2141_s16, 1  ;;  %s2693_s21 = smov (!%p163_p2), 118  }
   0x6   : > { %166 = sbr.rel (%p163_p2) target bundleno = 657 (0x291), region = 36  ;;  %s2694_s22 = smov (!%p163_p2), 127  }
   0x7   : > { %s2695_s23 = smov (!%p163_p2), 116   ;;  %s2696_s24 = smov (!%p163_p2), 117  }
   0x8   : > { %s2697_s25 = smov (!%p163_p2), 126   ;;  %s2698_s26 = smov (!%p163_p2), 108  }
   0x9   : > { %s2699_s27 = smov (!%p163_p2), 106   ;;  %s2700_s28 = smov (!%p163_p2), 107  }
   0xa   : > { %s2701_s29 = smov (!%p163_p2), 26   ;;  %s2702_s30 = smov (!%p163_p2), 25  }
   0xb   : > { %s3248_s16 = smov (!%p188_p3, %s2141_s16), 1  ;;  %s2703_s5 = smov 24   ;;  %v2572_v16 = vld [vmem:[%s3239_s1] sm:$0xff]  ;;  %vm219_vm0 = vcmask 130048   ;;  %v2578_v21 = vld [vmem:[%s3239_s1 + $0x28] sm:$0xff]  ;;  %v2576_v28 = vld [vmem:[%s3239_s1 + $0x18] sm:$0xff] }
   0xc   : > { %s2570_s17 = sshll.u32 %s3248_s16, 5  ;;  %s2704_s6 = smov 16   ;;  %v2574_v27 = vld [vmem:[%s3239_s1 + $0x8] sm:$0xff]  ;;  %v2575_v33 = vld [vmem:[%s3239_s1 + $0x10] sm:$0xff]  ;;  %v2577_v37 = vld [vmem:[%s3239_s1 + $0x20] sm:$0xff]  ;;  %vm526_vm1 = vcmask 203776  }
   0xd   : > { %s2769_s20 = scalar_lea.vmem %s3238_s0, %s2570_s17  ;;  %s2705_s7 = smov 15   ;;  %v2580_v38 = vld [vmem:[%s3239_s1 + $0x38] sm:$0xff]  ;;  %vm492_vm2 = vcmask 211968   ;;  %v2579_v42 = vld [vmem:[%s3239_s1 + $0x30] sm:$0xff]  ;;  %v2582_v46 = vld [vmem:[%s3239_s1 + $0x48] sm:$0xff]  ;;  %vm560_vm3 = vcmask 195584  }
   0xe   : > { %v2158_v0 = vld [vmem:[%s2769_s20] sm:$0xf]  ;;  %v2573_v1 = vld [vmem:[%s2769_s20 + $0xc] sm:$0xf0]  ;;  %v2583_v6 = vld [vmem:[%s2769_s20 + $0x4] sm:$0xf] }
   0xf   : > { %v2159_v2 = vor.u32 %v2573_v1, %v2158_v0  ;;  %v2223_v3 = vld [vmem:[%s2769_s20] sm:$0xf]  ;;  %v2584_v4 = vld [vmem:[%s2769_s20 + $0xc] sm:$0xf0]  ;;  %v2225_v7 = vld [vmem:[%s2769_s20 + $0x10] sm:$0xf0] }
  0x10   : > { %v2224_v5 = vor.u32 %v2584_v4, %v2223_v3  ;;  %v2228_v8 = vor.u32 %v2583_v6, %v2225_v7  ;;  %s2706_s8 = smov 14   ;;  %s2707_s9 = smov 6   ;;  %v2294_v9 = vld [vmem:[%s2769_s20 + $0x4] sm:$0xf]  ;;  %v2595_v10 = vld [vmem:[%s2769_s20 + $0x10] sm:$0xf0] }
  0x11   : > { %298 = vrot.lane.b32.xlu1 %v2159_v2, %s2693_s21  ;;  %216 = vrot.lane.b32.xlu0 %v2159_v2, %s2694_s22  ;;  %s2708_s10 = smov 5   ;;  %v2295_v11 = vor.u32 %v2595_v10, %v2294_v9  ;;  %s2709_s11 = smov 4   ;;  %v2594_v12 = vld [vmem:[%s2769_s20 + $0x8] sm:$0xf]  ;;  %v2296_v13 = vld [vmem:[%s2769_s20 + $0x14] sm:$0xf0] }
  0x12   : > { %358 = vrot.lane.b32.xlu2 %v2159_v2, %s2695_s23  ;;  %253 = vmatpush.bf16.msra.mxu1 %v2159_v2  ;;  %s2710_s12 = smov 52   ;;  %v2299_v14 = vor.u32 %v2594_v12, %v2296_v13  ;;  %s2711_s13 = smov 51   ;;  %v2365_v19 = vld [vmem:[%s2769_s20] sm:$0xf]  ;;  %v2606_v20 = vld [vmem:[%s2769_s20 + $0xc] sm:$0xf0] }
  0x13   : > { %s2712_s14 = smov 50   ;;  %s2713_s17 = smov 42   ;;  %v2824_v22 = vor.u32 %v2606_v20, %v2365_v19  ;;  %v2605_v23 = vld [vmem:[%s2769_s20 + $0x4] sm:$0xf]  ;;  %v2367_v24 = vld [vmem:[%s2769_s20 + $0x10] sm:$0xf0] }
  0x14   : > { %s2714_s18 = smov 41   ;;  %s2715_s22 = smov 40   ;;  %v2839_v30 = vor.u32 %v2605_v23, %v2367_v24  ;;  %v2581_v49 = vld [vmem:[%s3239_s1 + $0x40] sm:$0xff]  ;;  %v2586_v52 = vld [vmem:[%s3239_s1 + $0x58] sm:$0xff]  ;;  %vm628_vm4 = vcmask 121856   ;;  %v2585_v55 = vld [vmem:[%s3239_s1 + $0x50] sm:$0xff] }
  0x15   : > { %2165 = vmatmul.msk.bf16.vlgmr.msra.gmra.mxu1 %vm219_vm0, %v2572_v16  ;;  %s2716_s23 = smov 32   ;;  %v2588_v59 = vld [vmem:[%s3239_s1 + $0x68] sm:$0xff]  ;;  %v2434_v60 = vld [vmem:[%s2769_s20 + $0x4] sm:$0xf]  ;;  %v2617_v61 = vld [vmem:[%s2769_s20 + $0x10] sm:$0xf0] }
  0x16   : > { %v2915_v62 = vor.u32 %v2617_v61, %v2434_v60  ;;  %vm662_vm5 = vcmask 113664   ;;  %v2616_v63 = vld [vmem:[%s2769_s20 + $0x8] sm:$0xf]  ;;  %v2436_v0 = vld [vmem:[%s2769_s20 + $0x14] sm:$0xf0]  ;;  %v2587_v3 = vld [vmem:[%s3239_s1 + $0x60] sm:$0xff] }
  0x17   : > { %v2930_v6 = vor.u32 %v2616_v63, %v2436_v0  ;;  %vm730_vm6 = vcmask 39936   ;;  %vm696_vm7 = vcmask 48128   ;;  %v2589_v9 = vld [vmem:[%s3239_s1 + $0x70] sm:$0xff]  ;;  %v2590_v13 = vld [vmem:[%s3239_s1 + $0x78] sm:$0xff]  ;;  %vm764_vm8 = vcmask 31744   ;;  %v2591_v16 = vld [vmem:[%s3239_s1 + $0x80] sm:$0xff] }
  0x18   : > { %v2592_v19 = vld [vmem:[%s3239_s1 + $0x88] sm:$0xff]  ;;  %vm842_vm9 = vcmask 416768   ;;  %vm808_vm10 = vcmask 424960   ;;  %v2593_v24 = vld [vmem:[%s3239_s1 + $0x90] sm:$0xff]  ;;  %vm876_vm11 = vcmask 408576   ;;  %vm944_vm12 = vcmask 334848  }
  0x19   : > { %328 = vrot.lane.b32.xlu1 %v2159_v2, %s2696_s24  ;;  %268 = vrot.lane.b32.xlu0 %v2159_v2, %s2697_s25  ;;  %s2717_s24 = smov 31   ;;  %vm3243_vm13 = vcmask 343040   ;;  %vm978_vm14 = vcmask 326656   ;;  %vm1046_vm15 = vcmask 252928   ;;  %v2603_v60 = vld [vmem:[%s3239_s1 + $0xd0] sm:$0xff]  ;;  %s2727_s19 = smov 57  }
  0x1a   : > { %388 = vrot.lane.b32.xlu2 %v2159_v2, %s2698_s26  ;;  %s2721_s26 = smov 76   ;;  %s2571_s25 = sshll.u32 %s3248_s16, 4 }
  0x1b   : > { %s2729_s16 = smov 80  }
  0x21   : > { %448 = vrot.lane.b32.xlu1 %v2159_v2, %s2699_s27  ;;  %418 = vrot.lane.b32.xlu0 %v2159_v2, %s2700_s28  ;;  %s2718_s27 = smov 30   ;;  %s2722_s28 = smov 68  }
  0x22   : > { %488 = vrot.lane.b32.xlu2 %v2224_v5, %s2701_s29 }
  0x29   : > { %522 = vrot.lane.b32.xlu1 %v2224_v5, %s2702_s30  ;;  %490 = vrot.lane.b32.xlu0 %v2228_v8, %s2701_s29 }
  0x2a   : > { %524 = vrot.lane.b32.xlu2 %v2228_v8, %s2702_s30 }
  0x31   : > { %558 = vrot.lane.b32.xlu1 %v2228_v8, %s2703_s5  ;;  %556 = vrot.lane.b32.xlu0 %v2224_v5, %s2703_s5 }
  0x32   : > { %590 = vrot.lane.b32.xlu2 %v2224_v5, %s2704_s6 }
  0x39   : > { %624 = vrot.lane.b32.xlu1 %v2224_v5, %s2705_s7  ;;  %592 = vrot.lane.b32.xlu0 %v2228_v8, %s2704_s6 }
  0x3a   : > { %626 = vrot.lane.b32.xlu2 %v2228_v8, %s2705_s7 }
  0x41   : > { %660 = vrot.lane.b32.xlu1 %v2228_v8, %s2706_s8  ;;  %658 = vrot.lane.b32.xlu0 %v2224_v5, %s2706_s8 }
  0x42   : > { %692 = vrot.lane.b32.xlu2 %v2224_v5, %s2707_s9 }
  0x49   : > { %726 = vrot.lane.b32.xlu1 %v2224_v5, %s2708_s10  ;;  %694 = vrot.lane.b32.xlu0 %v2228_v8, %s2707_s9 }
  0x4a   : > { %728 = vrot.lane.b32.xlu2 %v2228_v8, %s2708_s10 }
  0x51   : > { %762 = vrot.lane.b32.xlu1 %v2228_v8, %s2709_s11  ;;  %760 = vrot.lane.b32.xlu0 %v2224_v5, %s2709_s11 }
  0x52   : > { %804 = vrot.lane.b32.xlu2 %v2295_v11, %s2710_s12 }
  0x59   : > { %838 = vrot.lane.b32.xlu1 %v2295_v11, %s2711_s13  ;;  %806 = vrot.lane.b32.xlu0 %v2299_v14, %s2710_s12 }
  0x5a   : > { %840 = vrot.lane.b32.xlu2 %v2299_v14, %s2711_s13 }
  0x61   : > { %874 = vrot.lane.b32.xlu1 %v2299_v14, %s2712_s14  ;;  %872 = vrot.lane.b32.xlu0 %v2295_v11, %s2712_s14 }
  0x62   : > { %906 = vrot.lane.b32.xlu2 %v2295_v11, %s2713_s17 }
  0x69   : > { %940 = vrot.lane.b32.xlu1 %v2295_v11, %s2714_s18  ;;  %908 = vrot.lane.b32.xlu0 %v2299_v14, %s2713_s17 }
  0x6a   : > { %942 = vrot.lane.b32.xlu2 %v2299_v14, %s2714_s18 }
  0x6c   : > { %v359_v15 = vpop.permute.xlu2 %358 }
  0x6d   : > { %371 = vmatpush.bf16.msrb.mxu1 %v359_v15 }
  0x70   : > { %2193 = vmatmul.msk.bf16.vlgmr.msrb.gmra.mxu1 %vm219_vm0, %v2578_v21 }
  0x71   : > { %976 = vrot.lane.b32.xlu1 %v2299_v14, %s2715_s22  ;;  %974 = vrot.lane.b32.xlu0 %v2295_v11, %s2715_s22 }
  0x72   : > { %1008 = vrot.lane.b32.xlu2 %v2295_v11, %s2716_s23 }
  0x74   : > { %v389_v17 = vpop.permute.xlu2 %388 }
  0x79   : > { %1042 = vrot.lane.b32.xlu1 %v2295_v11, %s2717_s24  ;;  %1010 = vrot.lane.b32.xlu0 %v2299_v14, %s2716_s23 }
  0x7a   : > { %1044 = vrot.lane.b32.xlu2 %v2299_v14, %s2717_s24 }
  0x7c   : > { %v489_v18 = vpop.permute.xlu2 %488 }
  0x81   : > { %1078 = vrot.lane.b32.xlu1 %v2299_v14, %s2718_s27  ;;  %1076 = vrot.lane.b32.xlu0 %v2295_v11, %s2718_s27 }
  0x82   : > { %1156 = vrot.lane.b32.xlu2 %v2824_v22, %s2702_s30 }
  0x83   : > { %v299_v25 = vpop.permute.xlu1 %298  ;;  %v217_v26 = vpop.permute.xlu0 %216 }
  0x84   : > { %230 = vmatpush.bf16.msra.mxu0 %v217_v26  ;;  %311 = vmatpush.bf16.msra.mxu3 %v299_v25  ;;  %v525_v29 = vpop.permute.xlu2 %524  ;;  %v2596_v26 = vld [vmem:[%s3239_s1 + $0x98] sm:$0xff] }
  0x87   : > { %2160 = vmatmul.msk.bf16.vlgmr.msra.gmra.mxu0 %vm219_vm0, %v2574_v27  ;;  %2179 = vmatmul.msk.bf16.vlgmr.msra.gmra.mxu3 %vm219_vm0, %v2576_v28 }
  0x89   : > { %1184 = vrot.lane.b32.xlu1 %v2824_v22, %s2701_s29  ;;  %1158 = vrot.lane.b32.xlu0 %v2839_v30, %s2702_s30 }
  0x8a   : > { %1186 = vrot.lane.b32.xlu2 %v2839_v30, %s2701_s29 }
  0x8b   : > { %v329_v31 = vpop.permute.xlu1 %328  ;;  %v269_v32 = vpop.permute.xlu0 %268 }
  0x8c   : > { %281 = vmatpush.bf16.msra.mxu2 %v269_v32  ;;  %341 = vmatpush.bf16.msrb.mxu0 %v329_v31  ;;  %v591_v34 = vpop.permute.xlu2 %590  ;;  %v2597_v31 = vld [vmem:[%s3239_s1 + $0xa0] sm:$0xff] }
  0x8f   : > { %2172 = vmatmul.msk.bf16.vlgmr.msra.gmra.mxu2 %vm219_vm0, %v2575_v33 }
  0x90   : > { %401 = vmatpush.bf16.msrb.mxu2 %v389_v17 }
  0x91   : > { %1216 = vrot.lane.b32.xlu1 %v2839_v30, %s2703_s5  ;;  %1214 = vrot.lane.b32.xlu0 %v2824_v22, %s2703_s5 }
  0x92   : > { %1246 = vrot.lane.b32.xlu2 %v2824_v22, %s2704_s6 }
  0x93   : > { %v449_v35 = vpop.permute.xlu1 %448  ;;  %v419_v36 = vpop.permute.xlu0 %418 }
  0x94   : > { %431 = vmatpush.bf16.msrb.mxu3 %v419_v36  ;;  %461 = vmatpush.bf16.msra.mxu0 %v449_v35  ;;  %v627_v39 = vpop.permute.xlu2 %626  ;;  %v2599_v36 = vld [vmem:[%s3239_s1 + $0xb0] sm:$0xff] }
  0x97   : > { %2186 = vmatmul.msk.bf16.vlgmr.msrb.gmra.mxu0 %vm219_vm0, %v2577_v37  ;;  %2207 = vmatmul.msk.bf16.vlgmr.msrb.gmra.mxu3 %vm219_vm0, %v2580_v38  ;;  %v2598_v37 = vld [vmem:[%s3239_s1 + $0xa8] sm:$0xff] }
  0x99   : > { %1278 = vrot.lane.b32.xlu1 %v2824_v22, %s2705_s7  ;;  %1248 = vrot.lane.b32.xlu0 %v2839_v30, %s2704_s6  ;;  %s2724_s6 = smov 67  }
  0x9a   : > { %1280 = vrot.lane.b32.xlu2 %v2839_v30, %s2705_s7 }
  0x9b   : > { %v523_v40 = vpop.permute.xlu1 %522  ;;  %v491_v41 = vpop.permute.xlu0 %490 }
  0x9c   : > { %v527_v43 = vsel %vm526_vm1, %v523_v40, %v525_v29  ;;  %v493_v44 = vsel %vm492_vm2, %v489_v18, %v491_v41  ;;  %v693_v45 = vpop.permute.xlu2 %692  ;;  %v2628_v40 = vld [vmem:[%s2769_s20 + $0x14] sm:$0xf0] }
  0x9d   : > { %505 = vmatpush.bf16.msra.mxu1 %v493_v44  ;;  %539 = vmatpush.bf16.msra.mxu2 %v527_v43  ;;  %v2507_v43 = vld [vmem:[%s2769_s20 + $0x18] sm:$0xf0] }
  0x9f   : > { %2200 = vmatmul.msk.bf16.vlgmr.msrb.gmra.mxu2 %vm219_vm0, %v2579_v42  ;;  %v2627_v42 = vld [vmem:[%s2769_s20 + $0xc] sm:$0xf] }
  0xa0   : > { %2229 = vmatmul.msk.bf16.vlgmr.msra.gmra.mxu1 %vm219_vm0, %v2582_v46 }
  0xa1   : > { %1312 = vrot.lane.b32.xlu1 %v2839_v30, %s2706_s8  ;;  %1310 = vrot.lane.b32.xlu0 %v2824_v22, %s2706_s8  ;;  %s2725_s8 = smov 66  }
  0xa2   : > { %1342 = vrot.lane.b32.xlu2 %v2824_v22, %s2707_s9 }
  0xa3   : > { %v559_v47 = vpop.permute.xlu1 %558  ;;  %v557_v48 = vpop.permute.xlu0 %556 }
  0xa4   : > { %v561_v50 = vsel %vm560_vm3, %v557_v48, %v559_v47  ;;  %v729_v51 = vpop.permute.xlu2 %728  ;;  %v2600_v47 = vld [vmem:[%s3239_s1 + $0xb8] sm:$0xff] }
  0xa5   : > { %573 = vmatpush.bf16.msra.mxu3 %v561_v50 }
  0xa7   : > { %2214 = vmatmul.msk.bf16.vlgmr.msra.gmra.mxu0 %vm219_vm0, %v2581_v49  ;;  %v3024_v49 = vor.u32 %v2627_v42, %v2507_v43 }
  0xa8   : > { %2243 = vmatmul.msk.bf16.vlgmr.msra.gmra.mxu3 %vm219_vm0, %v2586_v52 }
  0xa9   : > { %1374 = vrot.lane.b32.xlu1 %v2824_v22, %s2708_s10  ;;  %1344 = vrot.lane.b32.xlu0 %v2839_v30, %s2707_s9 }
  0xaa   : > { %1376 = vrot.lane.b32.xlu2 %v2839_v30, %s2708_s10 }
  0xab   : > { %v625_v53 = vpop.permute.xlu1 %624  ;;  %v593_v54 = vpop.permute.xlu0 %592 }
  0xac   : > { %v629_v56 = vsel %vm628_vm4, %v625_v53, %v627_v39  ;;  %v595_v57 = vsel %vm219_vm0, %v591_v34, %v593_v54  ;;  %v805_v58 = vpop.permute.xlu2 %804  ;;  %v2505_v39 = vld [vmem:[%s2769_s20 + $0x8] sm:$0xf]  ;;  %v2601_v54 = vld [vmem:[%s3239_s1 + $0xc0] sm:$0xff]  ;;  %s2728_s20 = smov 56  }
  0xad   : > { %607 = vmatpush.bf16.msrb.mxu0 %v595_v57  ;;  %641 = vmatpush.bf16.msrb.mxu1 %v629_v56  ;;  %v3011_v41 = vor.u32 %v2628_v40, %v2505_v39  ;;  %v2612_v39 = vld [vmem:[%s3239_s1 + $0x30] sm:$0xff] }
  0xaf   : > { %2236 = vmatmul.msk.bf16.vlgmr.msra.gmra.mxu2 %vm219_vm0, %v2585_v55  ;;  %v2602_v55 = vld [vmem:[%s3239_s1 + $0xc8] sm:$0xff] }
  0xb0   : > { %2257 = vmatmul.msk.bf16.vlgmr.msrb.gmra.mxu1 %vm219_vm0, %v2588_v59 }
  0xb1   : > { %1408 = vrot.lane.b32.xlu1 %v2839_v30, %s2709_s11  ;;  %1406 = vrot.lane.b32.xlu0 %v2824_v22, %s2709_s11 }
  0xb2   : > { %1448 = vrot.lane.b32.xlu2 %v2915_v62, %s2710_s12 }
  0xb3   : > { %v661_v1 = vpop.permute.xlu1 %660  ;;  %v659_v2 = vpop.permute.xlu0 %658 }
  0xb4   : > { %v663_v4 = vsel %vm662_vm5, %v659_v2, %v661_v1  ;;  %v841_v5 = vpop.permute.xlu2 %840 }
  0xb5   : > { %675 = vmatpush.bf16.msrb.mxu2 %v663_v4  ;;  %v2607_v4 = vld [vmem:[%s3239_s1 + $0x8] sm:$0xff] }
  0xb7   : > { %2250 = vmatmul.msk.bf16.vlgmr.msrb.gmra.mxu0 %vm219_vm0, %v2587_v3 }
  0xb9   : > { %1480 = vrot.lane.b32.xlu1 %v2915_v62, %s2711_s13  ;;  %1450 = vrot.lane.b32.xlu0 %v2930_v6, %s2710_s12  ;;  %s3225_s12 = scalar_lea.vmem %s3242_s4, %s2571_s25 }
  0xba   : > { %1482 = vrot.lane.b32.xlu2 %v2930_v6, %s2711_s13 }
  0xbb   : > { %v727_v7 = vpop.permute.xlu1 %726  ;;  %v695_v8 = vpop.permute.xlu0 %694 }
  0xbc   : > { %v731_v10 = vsel %vm730_vm6, %v727_v7, %v729_v51  ;;  %v697_v11 = vsel %vm696_vm7, %v693_v45, %v695_v8  ;;  %v907_v12 = vpop.permute.xlu2 %906 }
  0xbd   : > { %709 = vmatpush.bf16.msrb.mxu3 %v697_v11  ;;  %743 = vmatpush.bf16.msra.mxu0 %v731_v10  ;;  %v2608_v10 = vld [vmem:[%s3239_s1 + $0x10] sm:$0xff] }
  0xbf   : > { %2264 = vmatmul.msk.bf16.vlgmr.msrb.gmra.mxu2 %vm219_vm0, %v2589_v9 }
  0xc0   : > { %2271 = vmatmul.msk.bf16.vlgmr.msrb.gmra.mxu3 %vm219_vm0, %v2590_v13 }
  0xc1   : > { %1514 = vrot.lane.b32.xlu1 %v2930_v6, %s2712_s14  ;;  %1512 = vrot.lane.b32.xlu0 %v2915_v62, %s2712_s14 }
  0xc2   : > { %1544 = vrot.lane.b32.xlu2 %v2915_v62, %s2713_s17 }
  0xc3   : > { %v763_v14 = vpop.permute.xlu1 %762  ;;  %v761_v15 = vpop.permute.xlu0 %760 }
  0xc4   : > { %v765_v17 = vsel %vm764_vm8, %v761_v15, %v763_v14  ;;  %v943_v18 = vpop.permute.xlu2 %942 }
  0xc5   : > { %777 = vmatpush.bf16.msra.mxu1 %v765_v17  ;;  %v2609_v17 = vld [vmem:[%s3239_s1 + $0x18] sm:$0xff] }
  0xc7   : > { %2278 = vmatmul.msk.bf16.vlgmr.msra.gmra.mxu0 %vm219_vm0, %v2591_v16 }
  0xc8   : > { %2285 = vmatmul.msk.bf16.vlgmr.msra.gmra.mxu1 %vm219_vm0, %v2592_v19  ;;  %v3085_v19 = vpop.f32.mrf.mxu1 }
  0xc9   : > { %1576 = vrot.lane.b32.xlu1 %v2915_v62, %s2714_s18  ;;  %1546 = vrot.lane.b32.xlu0 %v2930_v6, %s2713_s17  ;;  %s2726_s17 = smov 58  }
  0xca   : > { %1578 = vrot.lane.b32.xlu2 %v2930_v6, %s2714_s18 }
  0xcb   : > { %v839_v20 = vpop.permute.xlu1 %838  ;;  %v807_v21 = vpop.permute.xlu0 %806 }
  0xcc   : > { %v843_v22 = vsel %vm842_vm9, %v839_v20, %v841_v5  ;;  %v809_v23 = vsel %vm808_vm10, %v805_v58, %v807_v21  ;;  %v1009_v25 = vpop.permute.xlu2 %1008  ;;  %v2604_v5 = vld [vmem:[%s3239_s1] sm:$0xff] }
  0xcd   : > { %821 = vmatpush.bf16.msra.mxu2 %v809_v23  ;;  %855 = vmatpush.bf16.msra.mxu3 %v843_v22  ;;  %v2036_v20 = vld [vmem:[%s3240_s2] sm:$0xff] }
  0xd0   : > { %2300 = vmatmul.msk.bf16.vlgmr.msra.gmra.mxu2 %vm219_vm0, %v2593_v24  ;;  %2307 = vmatmul.msk.bf16.vlgmr.msra.gmra.mxu3 %vm219_vm0, %v2596_v26 }
  0xd1   : > { %1610 = vrot.lane.b32.xlu1 %v2930_v6, %s2715_s22  ;;  %1608 = vrot.lane.b32.xlu0 %v2915_v62, %s2715_s22 }
  0xd2   : > { %1640 = vrot.lane.b32.xlu2 %v2915_v62, %s2716_s23 }
  0xd3   : > { %v875_v27 = vpop.permute.xlu1 %874  ;;  %v873_v28 = vpop.permute.xlu0 %872 }
  0xd4   : > { %v877_v29 = vsel %vm876_vm11, %v873_v28, %v875_v27  ;;  %v1045_v30 = vpop.permute.xlu2 %1044  ;;  %v2611_v27 = vld [vmem:[%s3239_s1 + $0x28] sm:$0xff]  ;;  %v2050_v28 = vld [vmem:[%s3241_s3] sm:$0xff] }
  0xd5   : > { %889 = vmatpush.bf16.msrb.mxu0 %v877_v29  ;;  %v2037_v29 = vld [vmem:[%s3240_s2 + $0x8] sm:$0xff] }
  0xd8   : > { %2314 = vmatmul.msk.bf16.vlgmr.msrb.gmra.mxu0 %vm219_vm0, %v2597_v31  ;;  %v257_v31 = vpop.f32.mrf.mxu1 }
  0xd9   : > { %1672 = vrot.lane.b32.xlu1 %v2915_v62, %s2717_s24  ;;  %1642 = vrot.lane.b32.xlu0 %v2930_v6, %s2716_s23  ;;  %s2719_s23 = smov 78  }
  0xda   : > { %1674 = vrot.lane.b32.xlu2 %v2930_v6, %s2717_s24 }
  0xdb   : > { %v941_v32 = vpop.permute.xlu1 %940  ;;  %v909_v33 = vpop.permute.xlu0 %908 }
  0xdc   : > { %v945_v34 = vsel %vm944_vm12, %v941_v32, %v943_v18  ;;  %v911_v35 = vsel %vm3243_vm13, %v907_v12, %v909_v33  ;;  %v3005_v38 = vpop.permute.xlu2 %1156  ;;  %vm3244_vm13 = vcmask 261120   ;;  %v2610_v18 = vld [vmem:[%s3239_s1 + $0x20] sm:$0xff] }
  0xdd   : > { %923 = vmatpush.bf16.msrb.mxu1 %v911_v35  ;;  %957 = vmatpush.bf16.msrb.mxu2 %v945_v34 }
  0xe0   : > { %2328 = vmatmul.msk.bf16.vlgmr.msrb.gmra.mxu2 %vm219_vm0, %v2599_v36  ;;  %2321 = vmatmul.msk.bf16.vlgmr.msrb.gmra.mxu1 %vm219_vm0, %v2598_v37 }
  0xe1   : > { %1706 = vrot.lane.b32.xlu1 %v2930_v6, %s2718_s27  ;;  %1704 = vrot.lane.b32.xlu0 %v2915_v62, %s2718_s27  ;;  %s2720_s27 = smov 77   ;;  %v2723_v62 = vmov 0  }
  0xe2   : > { %1746 = vrot.lane.b32.xlu2 %v3011_v41, %s2719_s23  ;;  %2684 = vset.pattern.permute.xlu1 %v2723_v62 }
  0xe3   : > { %v977_v44 = vpop.permute.xlu1 %976  ;;  %v975_v45 = vpop.permute.xlu0 %974  ;;  %2683 = vset.pattern.permute.xlu0 %v2723_v62  ;;  %2682 = vset.pattern.permute.xlu2 %v2723_v62 }
  0xe4   : > { %v979_v46 = vsel %vm978_vm14, %v975_v45, %v977_v44  ;;  %v1187_v48 = vpop.permute.xlu2 %1186 }
  0xe5   : > { %991 = vmatpush.bf16.msrb.mxu3 %v979_v46  ;;  %v2614_v46 = vld [vmem:[%s3239_s1 + $0x40] sm:$0xff] }
  0xe8   : > { %2335 = vmatmul.msk.bf16.vlgmr.msrb.gmra.mxu3 %vm219_vm0, %v2600_v47 }
  0xe9   : > { %1779 = vrot.lane.b32.xlu1 %v3011_v41, %s2720_s27  ;;  %1748 = vrot.lane.b32.xlu0 %v3024_v49, %s2719_s23 }
  0xea   : > { %1781 = vrot.lane.b32.xlu2 %v3024_v49, %s2720_s27 }
  0xeb   : > { %v1043_v50 = vpop.permute.xlu1 %1042  ;;  %v1011_v51 = vpop.permute.xlu0 %1010 }
  0xec   : > { %v1047_v52 = vsel %vm1046_vm15, %v1043_v50, %v1045_v30  ;;  %v1013_v53 = vsel %vm3244_vm13, %v1009_v25, %v1011_v51  ;;  %v1247_v56 = vpop.permute.xlu2 %1246  ;;  %vm1080_vm13 = vcmask 244736   ;;  %v2051_v30 = vld [vmem:[%s3241_s3 + $0x8] sm:$0xff] }
  0xed   : > { %1025 = vmatpush.bf16.msra.mxu0 %v1013_v53  ;;  %1059 = vmatpush.bf16.msra.mxu1 %v1047_v52  ;;  %v373_v42 = vpop.f32.mrf.mxu1 }
  0xf0   : > { %2342 = vmatmul.msk.bf16.vlgmr.msra.gmra.mxu0 %vm219_vm0, %v2601_v54  ;;  %2349 = vmatmul.msk.bf16.vlgmr.msra.gmra.mxu1 %vm219_vm0, %v2602_v55 }
  0xf1   : > { %1814 = vrot.lane.b32.xlu1 %v3024_v49, %s2721_s26  ;;  %1812 = vrot.lane.b32.xlu0 %v3011_v41, %s2721_s26 }
  0xf2   : > { %1845 = vrot.lane.b32.xlu2 %v3011_v41, %s2722_s28 }
  0xf3   : > { %v1079_v57 = vpop.permute.xlu1 %1078  ;;  %v1077_v58 = vpop.permute.xlu0 %1076 }
  0xf4   : > { %v1081_v59 = vsel %vm1080_vm13, %v1077_v58, %v1079_v57  ;;  %v1281_v61 = vpop.permute.xlu2 %1280  ;;  %v2618_v57 = vld [vmem:[%s3239_s1 + $0x50] sm:$0xff] }
  0xf5   : > { %1093 = vmatpush.bf16.msra.mxu2 %v1081_v59  ;;  %v375_v53 = vpop.f32.mrf.mxu1 }
  0xf8   : > { %2356 = vmatmul.msk.bf16.vlgmr.msra.gmra.mxu2 %vm219_vm0, %v2603_v60 }
  0xf9   : > { %1878 = vrot.lane.b32.xlu1 %v3011_v41, %s2724_s6  ;;  %1847 = vrot.lane.b32.xlu0 %v3024_v49, %s2722_s28 }
  0xfa   : > { %1880 = vrot.lane.b32.xlu2 %v3024_v49, %s2724_s6 }
  0xfb   : > { %v1185_v63 = vpop.permute.xlu1 %1184  ;;  %v1159_v0 = vpop.permute.xlu0 %1158 }
  0xfc   : > { %v1188_v1 = vsel %vm492_vm2, %v1185_v63, %v1187_v48  ;;  %v1160_v2 = vsel %vm526_vm1, %v3005_v38, %v1159_v0  ;;  %v1343_v3 = vpop.permute.xlu2 %1342  ;;  %v2613_v38 = vld [vmem:[%s3239_s1 + $0x38] sm:$0xff]  ;;  %vm3245_vm1 = vcmask 343040   ;;  %vm3246_vm2 = vcmask 261120  }
  0xfd   : > { %1172 = vmatpush.bf16.msra.mxu3 %v1160_v2  ;;  %1200 = vmatpush.bf16.msrb.mxu0 %v1188_v1  ;;  %v2619_v2 = vld [vmem:[%s3239_s1 + $0x58] sm:$0xff] }
 0x100   : > { %2371 = vmatmul.msk.bf16.vlgmr.msra.gmra.mxu3 %vm219_vm0, %v2607_v4  ;;  %2376 = vmatmul.msk.bf16.vlgmr.msrb.gmra.mxu0 %vm219_vm0, %v2604_v5 }
 0x101   : > { %1913 = vrot.lane.b32.xlu1 %v3024_v49, %s2725_s8  ;;  %1911 = vrot.lane.b32.xlu0 %v3011_v41, %s2725_s8 }
 0x102   : > { %1944 = vrot.lane.b32.xlu2 %v3011_v41, %s2726_s17 }
 0x103   : > { %v1217_v6 = vpop.permute.xlu1 %1216  ;;  %v1215_v7 = vpop.permute.xlu0 %1214 }
 0x104   : > { %v1218_v8 = vsel %vm560_vm3, %v1215_v7, %v1217_v6  ;;  %v1377_v9 = vpop.permute.xlu2 %1376  ;;  %v3072_v11 = vpop.f32.mrf.mxu0  ;;  %vm1783_vm3 = vcmask 629760  }
 0x105   : > { %1230 = vmatpush.bf16.msrb.mxu1 %v1218_v8  ;;  %v256_v0 = vadd.f32 %v3085_v19, %v3072_v11 }
 0x108   : > { %2383 = vmatmul.msk.bf16.vlgmr.msrb.gmra.mxu1 %vm219_vm0, %v2608_v10 }
 0x109   : > { %1977 = vrot.lane.b32.xlu1 %v3011_v41, %s2727_s19  ;;  %1946 = vrot.lane.b32.xlu0 %v3024_v49, %s2726_s17 }
 0x10a   : > { %1979 = vrot.lane.b32.xlu2 %v3024_v49, %s2727_s19  ;;  %v313_v34 = vpop.f32.mrf.mxu3 }
 0x10b   : > { %v1279_v12 = vpop.permute.xlu1 %1278  ;;  %v1249_v13 = vpop.permute.xlu0 %1248 }
 0x10c   : > { %v1282_v14 = vsel %vm628_vm4, %v1279_v12, %v1281_v61  ;;  %v1250_v15 = vsel %vm219_vm0, %v1247_v56, %v1249_v13  ;;  %v3077_v16 = vpop.permute.xlu2 %1448  ;;  %v3097_v25 = vpop.f32.mrf.mxu0  ;;  %v2615_v56 = vld [vmem:[%s3239_s1 + $0x48] sm:$0xff]  ;;  %vm1750_vm4 = vcmask 637952  }
 0x10d   : > { %1262 = vmatpush.bf16.msrb.mxu2 %v1250_v15  ;;  %1294 = vmatpush.bf16.msrb.mxu3 %v1282_v14  ;;  %v2620_v15 = vld [vmem:[%s3239_s1 + $0x60] sm:$0xff] }
 0x110   : > { %2390 = vmatmul.msk.bf16.vlgmr.msrb.gmra.mxu2 %vm219_vm0, %v2609_v17  ;;  %2397 = vmatmul.msk.bf16.vlgmr.msrb.gmra.mxu3 %vm219_vm0, %v2610_v18 }
 0x111   : > { %2012 = vrot.lane.b32.xlu1 %v3024_v49, %s2728_s20  ;;  %2010 = vrot.lane.b32.xlu0 %v3011_v41, %s2728_s20 }
 0x112   : > { %v3094_v21 = vpop.f32.mrf.mxu2  ;;  %2040 = vperm.xlu2 %2682, %v2036_v20   ;;  %v315_v47 = vpop.f32.mrf.mxu3 }
 0x113   : > { %v1313_v22 = vpop.permute.xlu1 %1312  ;;  %v1311_v23 = vpop.permute.xlu0 %1310  ;;  %v288_v4 = vadd.f32 %v3094_v21, %v256_v0 }
 0x114   : > { %v1314_v24 = vsel %vm662_vm5, %v1311_v23, %v1313_v22  ;;  %v1483_v26 = vpop.permute.xlu2 %1482  ;;  %v343_v40 = vpop.f32.mrf.mxu0  ;;  %vm1816_vm5 = vcmask 621568  }
 0x115   : > { %1326 = vmatpush.bf16.msra.mxu0 %v1314_v24  ;;  %v318_v10 = vadd.f32 %v313_v34, %v288_v4 }
 0x117   : > { %v348_v18 = vadd.f32 %v343_v40, %v318_v10  ;;  %v2624_v40 = vld [vmem:[%s3239_s1 + $0x80] sm:$0xff] }
 0x118   : > { %2404 = vmatmul.msk.bf16.vlgmr.msra.gmra.mxu0 %vm219_vm0, %v2611_v27  ;;  %v2622_v27 = vld [vmem:[%s3239_s1 + $0x70] sm:$0xff] }
 0x119   : > { %2054 = vperm.xlu1 %2684, %v2050_v28   ;;  %2045 = vperm.xlu0 %2683, %v2037_v29   ;;  %v378_v22 = vadd.f32 %v373_v42, %v348_v18 }
 0x11a   : > { %2059 = vperm.xlu2 %2682, %v2051_v30   ;;  %v285_v37 = vpop.f32.mrf.mxu2  ;;  %v433_v58 = vpop.f32.mrf.mxu3 }
 0x11b   : > { %v1375_v32 = vpop.permute.xlu1 %1374  ;;  %v1345_v33 = vpop.permute.xlu0 %1344 }
 0x11c   : > { %v1378_v35 = vsel %vm730_vm6, %v1375_v32, %v1377_v9  ;;  %v1346_v36 = vsel %vm696_vm7, %v1343_v3, %v1345_v33  ;;  %v1545_v41 = vpop.permute.xlu2 %1544  ;;  %v345_v49 = vpop.f32.mrf.mxu0  ;;  %v258_v9 = vadd.f32 %v257_v31, %v3097_v25  ;;  %vm1882_vm6 = vcmask 547840  }
 0x11d   : > { %1358 = vmatpush.bf16.msra.mxu1 %v1346_v36  ;;  %1390 = vmatpush.bf16.msra.mxu2 %v1378_v35  ;;  %v507_v3 = vpop.f32.mrf.mxu1  ;;  %vm1849_vm7 = vcmask 556032  }
 0x11e   : > { %v289_v17 = vadd.f32 %v285_v37, %v258_v9 }
 0x120   : > { %2418 = vmatmul.msk.bf16.vlgmr.msra.gmra.mxu2 %vm219_vm0, %v2613_v38  ;;  %2411 = vmatmul.msk.bf16.vlgmr.msra.gmra.mxu1 %vm219_vm0, %v2612_v39  ;;  %v319_v23 = vadd.f32 %v315_v47, %v289_v17  ;;  %v2623_v39 = vld [vmem:[%s3239_s1 + $0x78] sm:$0xff] }
 0x121   : > { %1106 = vperm.xlu1 %2684, %v2036_v20   ;;  %1120 = vperm.xlu0 %2683, %v2050_v28  }
 0x122   : > { %1111 = vperm.xlu2 %2682, %v2037_v29   ;;  %v403_v48 = vpop.f32.mrf.mxu2  ;;  %v435_v5 = vpop.f32.mrf.mxu3  ;;  %v349_v31 = vadd.f32 %v345_v49, %v319_v23 }
 0x123   : > { %v1409_v43 = vpop.permute.xlu1 %1408  ;;  %v1407_v44 = vpop.permute.xlu0 %1406 }
 0x124   : > { %v1410_v45 = vsel %vm764_vm8, %v1407_v44, %v1409_v43  ;;  %v1579_v50 = vpop.permute.xlu2 %1578  ;;  %v463_v60 = vpop.f32.mrf.mxu0  ;;  %v379_v35 = vadd.f32 %v375_v53, %v349_v31  ;;  %v2625_v53 = vld [vmem:[%s3239_s1 + $0x88] sm:$0xff]  ;;  %vm1915_vm8 = vcmask 539648  }
 0x125   : > { %1422 = vmatpush.bf16.msra.mxu3 %v1410_v45  ;;  %v509_v19 = vpop.f32.mrf.mxu1 }
 0x128   : > { %2425 = vmatmul.msk.bf16.vlgmr.msra.gmra.mxu3 %vm219_vm0, %v2614_v46 }
 0x129   : > { %1125 = vperm.xlu1 %2684, %v2051_v30   ;;  %v408_v30 = vadd.f32 %v403_v48, %v378_v22 }
 0x12a   : > { %v405_v59 = vpop.f32.mrf.mxu2 }
 0x12b   : > { %v1481_v51 = vpop.permute.xlu1 %1480  ;;  %v1451_v52 = vpop.permute.xlu0 %1450  ;;  %v438_v36 = vadd.f32 %v433_v58, %v408_v30  ;;  %v409_v43 = vadd.f32 %v405_v59, %v379_v35 }
 0x12c   : > { %v1484_v54 = vsel %vm842_vm9, %v1481_v51, %v1483_v26  ;;  %v1452_v55 = vsel %vm808_vm10, %v3077_v16, %v1451_v52  ;;  %v1641_v61 = vpop.permute.xlu2 %1640  ;;  %v465_v11 = vpop.f32.mrf.mxu0  ;;  %v2621_v16 = vld [vmem:[%s3239_s1 + $0x68] sm:$0xff]  ;;  %vm1981_vm9 = vcmask 465920   ;;  %vm1948_vm10 = vcmask 474112  }
 0x12d   : > { %1464 = vmatpush.bf16.msrb.mxu0 %v1452_v55  ;;  %1496 = vmatpush.bf16.msrb.mxu1 %v1484_v54  ;;  %v575_v24 = vpop.f32.mrf.mxu3  ;;  %v643_v32 = vpop.f32.mrf.mxu1  ;;  %v468_v44 = vadd.f32 %v463_v60, %v438_v36 }
 0x12f   : > { %v512_v49 = vadd.f32 %v507_v3, %v468_v44  ;;  %v2629_v3 = vld [vmem:[%s3239_s1 + $0x98] sm:$0xff] }
 0x130   : > { %2440 = vmatmul.msk.bf16.vlgmr.msrb.gmra.mxu0 %vm219_vm0, %v2615_v56  ;;  %2447 = vmatmul.msk.bf16.vlgmr.msrb.gmra.mxu1 %vm219_vm0, %v2618_v57 }
 0x132   : > { %v541_v6 = vpop.f32.mrf.mxu2 }
 0x133   : > { %v1515_v62 = vpop.permute.xlu1 %1514  ;;  %v1513_v63 = vpop.permute.xlu0 %1512  ;;  %v546_v54 = vadd.f32 %v541_v6, %v512_v49 }
 0x134   : > { %v1516_v1 = vsel %vm876_vm11, %v1513_v63, %v1515_v62  ;;  %v1675_v14 = vpop.permute.xlu2 %1674  ;;  %v609_v28 = vpop.f32.mrf.mxu0  ;;  %vm2014_vm11 = vcmask 457728  }
 0x135   : > { %1528 = vmatpush.bf16.msrb.mxu2 %v1516_v1  ;;  %v645_v51 = vpop.f32.mrf.mxu1  ;;  %v580_v63 = vadd.f32 %v575_v24, %v546_v54  ;;  %v2634_v54 = vld [vmem:[%s3239_s1 + $0xc0] sm:$0xff] }
 0x137   : > { %v614_v6 = vadd.f32 %v609_v28, %v580_v63 }
 0x138   : > { %2454 = vmatmul.msk.bf16.vlgmr.msrb.gmra.mxu2 %vm219_vm0, %v2619_v2  ;;  %v2626_v2 = vld [vmem:[%s3239_s1 + $0x90] sm:$0xff] }
 0x13a   : > { %v543_v25 = vpop.f32.mrf.mxu2 }
 0x13b   : > { %v1577_v7 = vpop.permute.xlu1 %1576  ;;  %v1547_v8 = vpop.permute.xlu0 %1546 }
 0x13c   : > { %v1580_v12 = vsel %vm944_vm12, %v1577_v7, %v1579_v50  ;;  %v1548_v13 = vsel %vm3245_vm1, %v1545_v41, %v1547_v8  ;;  %v1747_v29 = vpop.permute.xlu2 %1746  ;;  %v577_v41 = vpop.f32.mrf.mxu3  ;;  %v439_v50 = vadd.f32 %v435_v5, %v409_v43  ;;  %vm2081_vm12 = vcmask 1044096  }
 0x13d   : > { %1560 = vmatpush.bf16.msrb.mxu3 %v1548_v13  ;;  %1592 = vmatpush.bf16.msra.mxu0 %v1580_v12  ;;  %v611_v45 = vpop.f32.mrf.mxu0 }
 0x13e   : > { %v469_v55 = vadd.f32 %v465_v11, %v439_v50  ;;  %v648_v11 = vadd.f32 %v643_v32, %v614_v6 }
 0x140   : > { %2461 = vmatmul.msk.bf16.vlgmr.msrb.gmra.mxu3 %vm219_vm0, %v2620_v15  ;;  %2468 = vmatmul.msk.bf16.vlgmr.msra.gmra.mxu0 %vm219_vm0, %v2621_v16  ;;  %v513_v62 = vadd.f32 %v509_v19, %v469_v55  ;;  %v2630_v15 = vld [vmem:[%s3239_s1 + $0xa0] sm:$0xff]  ;;  %v2635_v55 = vld [vmem:[%s3239_s1 + $0xc8] sm:$0xff] }
 0x142   : > { %v677_v42 = vpop.f32.mrf.mxu2  ;;  %v547_v5 = vadd.f32 %v543_v25, %v513_v62  ;;  %v2632_v25 = vld [vmem:[%s3239_s1 + $0xb0] sm:$0xff] }
 0x143   : > { %v1611_v20 = vpop.permute.xlu1 %1610  ;;  %v1609_v21 = vpop.permute.xlu0 %1608  ;;  %v682_v17 = vadd.f32 %v677_v42, %v648_v11 }
 0x144   : > { %v1612_v26 = vsel %vm978_vm14, %v1609_v21, %v1611_v20  ;;  %v1782_v46 = vpop.permute.xlu2 %1781  ;;  %v711_v56 = vpop.f32.mrf.mxu3  ;;  %v581_v12 = vadd.f32 %v577_v41, %v547_v5  ;;  %vm2076_vm14 = vcmask 654336  }
 0x145   : > { %1624 = vmatpush.bf16.msra.mxu1 %v1612_v26  ;;  %v745_v58 = vpop.f32.mrf.mxu0  ;;  %v779_v4 = vpop.f32.mrf.mxu1  ;;  %v716_v22 = vadd.f32 %v711_v56, %v682_v17 }
 0x146   : > { %v615_v18 = vadd.f32 %v611_v45, %v581_v12 }
 0x148   : > { %2475 = vmatmul.msk.bf16.vlgmr.msra.gmra.mxu1 %vm219_vm0, %v2622_v27  ;;  %v649_v21 = vadd.f32 %v645_v51, %v615_v18 }
 0x14a   : > { %v679_v57 = vpop.f32.mrf.mxu2 }
 0x14b   : > { %v1673_v33 = vpop.permute.xlu1 %1672  ;;  %v1643_v34 = vpop.permute.xlu0 %1642  ;;  %v683_v32 = vadd.f32 %v679_v57, %v649_v21 }
 0x14c   : > { %v1676_v37 = vsel %vm1046_vm15, %v1673_v33, %v1675_v14  ;;  %v1644_v38 = vsel %vm3246_vm2, %v1641_v61, %v1643_v34  ;;  %v1846_v59 = vpop.permute.xlu2 %1845  ;;  %v713_v7 = vpop.f32.mrf.mxu3  ;;  %v750_v33 = vadd.f32 %v745_v58, %v716_v22 }
 0x14d   : > { %1656 = vmatpush.bf16.msra.mxu2 %v1644_v38  ;;  %1688 = vmatpush.bf16.msra.mxu3 %v1676_v37  ;;  %v747_v13 = vpop.f32.mrf.mxu0  ;;  %v781_v19 = vpop.f32.mrf.mxu1  ;;  %v717_v37 = vadd.f32 %v713_v7, %v683_v32 }
 0x14e   : > { %v784_v36 = vadd.f32 %v779_v4, %v750_v33  ;;  %v2636_v4 = vld [vmem:[%s3239_s1 + $0xd0] sm:$0xff] }
 0x14f   : > { %v751_v44 = vadd.f32 %v747_v13, %v717_v37 }
 0x150   : > { %2482 = vmatmul.msk.bf16.vlgmr.msra.gmra.mxu2 %vm219_vm0, %v2623_v39  ;;  %2489 = vmatmul.msk.bf16.vlgmr.msra.gmra.mxu3 %vm219_vm0, %v2624_v40  ;;  %v2633_v40 = vld [vmem:[%s3239_s1 + $0xb8] sm:$0xff] }
 0x153   : > { %v1707_v47 = vpop.permute.xlu1 %1706  ;;  %v1705_v48 = vpop.permute.xlu0 %1704 }
 0x154   : > { %v1708_v52 = vsel %vm1080_vm13, %v1705_v48, %v1707_v47  ;;  %v823_v8 = vpop.f32.mrf.mxu2  ;;  %v1881_v16 = vpop.permute.xlu2 %1880  ;;  %v785_v48 = vadd.f32 %v781_v19, %v751_v44  ;;  %vm2082_vm13 = vcmask 261124  }
 0x155   : > { %1720 = vmatpush.bf16.msrb.mxu0 %v1708_v52  ;;  %v857_v26 = vpop.f32.mrf.mxu3  ;;  %v891_v30 = vpop.f32.mrf.mxu0  ;;  %v828_v43 = vadd.f32 %v823_v8, %v784_v36  ;;  %vm2083_vm15 = vmor %vm2082_vm13, %vm2081_vm12 }
 0x157   : > { %v862_v49 = vadd.f32 %v857_v26, %v828_v43 }
 0x158   : > { %2496 = vmatmul.msk.bf16.vlgmr.msrb.gmra.mxu0 %vm219_vm0, %v2625_v53 }
 0x159   : > { %v896_v58 = vadd.f32 %v891_v30, %v862_v49 }
 0x15b   : > { %v1780_v60 = vpop.permute.xlu1 %1779  ;;  %v1749_v61 = vpop.permute.xlu0 %1748 }
 0x15c   : > { %v1784_v0 = vsel %vm1783_vm3, %v1780_v60, %v1782_v46  ;;  %v1751_v1 = vsel %vm1750_vm4, %v1747_v29, %v1749_v61  ;;  %v825_v27 = vpop.f32.mrf.mxu2  ;;  %v2631_v29 = vld [vmem:[%s3239_s1 + $0xa8] sm:$0xff]  ;;  %v1945_v31 = vpop.permute.xlu2 %1944 }
 0x15d   : > { %1763 = vmatpush.bf16.msrb.mxu1 %v1751_v1  ;;  %1796 = vmatpush.bf16.msrb.mxu2 %v1784_v0  ;;  %v925_v34 = vpop.f32.mrf.mxu1  ;;  %v859_v41 = vpop.f32.mrf.mxu3  ;;  %v829_v56 = vadd.f32 %v825_v27, %v785_v48 }
 0x15e   : > { %v893_v45 = vpop.f32.mrf.mxu0  ;;  %v930_v0 = vadd.f32 %v925_v34, %v896_v58 }
 0x15f   : > { %v863_v61 = vadd.f32 %v859_v41, %v829_v56 }
 0x160   : > { %2511 = vmatmul.msk.bf16.vlgmr.msrb.gmra.mxu1 %vm219_vm0, %v2626_v2  ;;  %2518 = vmatmul.msk.bf16.vlgmr.msrb.gmra.mxu2 %vm219_vm0, %v2629_v3 }
 0x161   : > { %v897_v6 = vadd.f32 %v893_v45, %v863_v61 }
 0x163   : > { %v1815_v9 = vpop.permute.xlu1 %1814  ;;  %v1813_v10 = vpop.permute.xlu0 %1812 }
 0x164   : > { %v1817_v14 = vsel %vm1816_vm5, %v1813_v10, %v1815_v9  ;;  %v959_v42 = vpop.f32.mrf.mxu2  ;;  %v1980_v46 = vpop.permute.xlu2 %1979 }
 0x165   : > { %1829 = vmatpush.bf16.msrb.mxu3 %v1817_v14  ;;  %v927_v50 = vpop.f32.mrf.mxu1  ;;  %v964_v5 = vadd.f32 %v959_v42, %v930_v0 }
 0x166   : > { %v931_v7 = vadd.f32 %v927_v50, %v897_v6 }
 0x168   : > { %2525 = vmatmul.msk.bf16.vlgmr.msrb.gmra.mxu3 %vm219_vm0, %v2630_v15 }
 0x16b   : > { %v1879_v20 = vpop.permute.xlu1 %1878  ;;  %v1848_v24 = vpop.permute.xlu0 %1847 }
 0x16c   : > { %v1883_v23 = vsel %vm1882_vm6, %v1879_v20, %v1881_v16  ;;  %v1850_v28 = vsel %vm1849_vm7, %v1846_v59, %v1848_v24  ;;  %v993_v57 = vpop.f32.mrf.mxu3  ;;  %v961_v60 = vpop.f32.mrf.mxu2 }
 0x16d   : > { %1895 = vmatpush.bf16.msra.mxu1 %v1883_v23  ;;  %1862 = vmatpush.bf16.msra.mxu0 %v1850_v28  ;;  %v1027_v59 = vpop.f32.mrf.mxu0  ;;  %v3209_v62 = vpop.permute.xlu2 %2040  ;;  %v998_v8 = vadd.f32 %v993_v57, %v964_v5  ;;  %v965_v11 = vadd.f32 %v961_v60, %v931_v7 }
 0x16e   : > { %v1061_v1 = vpop.f32.mrf.mxu1 }
 0x16f   : > { %v1032_v14 = vadd.f32 %v1027_v59, %v998_v8 }
 0x170   : > { %2539 = vmatmul.msk.bf16.vlgmr.msra.gmra.mxu1 %vm219_vm0, %v2632_v25  ;;  %2532 = vmatmul.msk.bf16.vlgmr.msra.gmra.mxu0 %vm219_vm0, %v2631_v29 }
 0x171   : > { %v1066_v19 = vadd.f32 %v1061_v1, %v1032_v14 }
 0x173   : > { %v1914_v35 = vpop.permute.xlu1 %1913  ;;  %v1912_v38 = vpop.permute.xlu0 %1911 }
 0x174   : > { %v1916_v39 = vsel %vm1915_vm8, %v1912_v38, %v1914_v35  ;;  %v995_v9 = vpop.f32.mrf.mxu3 }
 0x175   : > { %1928 = vmatpush.bf16.msra.mxu2 %v1916_v39  ;;  %v1029_v12 = vpop.f32.mrf.mxu0  ;;  %v999_v15 = vadd.f32 %v995_v9, %v965_v11  ;;  %v3219_v17 = vpop.permute.xlu2 %2059 }
 0x176   : > { %v1063_v18 = vpop.f32.mrf.mxu1 }
 0x177   : > { %v1033_v20 = vadd.f32 %v1029_v12, %v999_v15 }
 0x178   : > { %2546 = vmatmul.msk.bf16.vlgmr.msra.gmra.mxu2 %vm219_vm0, %v2633_v40 }
 0x179   : > { %v1067_v25 = vadd.f32 %v1063_v18, %v1033_v20 }
 0x17b   : > { %v1978_v47 = vpop.permute.xlu1 %1977  ;;  %v1947_v52 = vpop.permute.xlu0 %1946 }
 0x17c   : > { %v1982_v51 = vsel %vm1981_vm9, %v1978_v47, %v1980_v46  ;;  %v1949_v53 = vsel %vm1948_vm10, %v1945_v31, %v1947_v52  ;;  %v1095_v10 = vpop.f32.mrf.mxu2 }
 0x17d   : > { %1994 = vmatpush.bf16.msrb.mxu0 %v1982_v51  ;;  %1961 = vmatpush.bf16.msra.mxu3 %v1949_v53  ;;  %v1100_v21 = vadd.f32 %v1095_v10, %v1066_v19  ;;  %v1202_v22 = vpop.f32.mrf.mxu0  ;;  %v1112_v32 = vpop.permute.xlu2 %1111 }
 0x180   : > { %2553 = vmatmul.msk.bf16.vlgmr.msra.gmra.mxu3 %vm219_vm0, %v2634_v54  ;;  %2560 = vmatmul.msk.bf16.vlgmr.msrb.gmra.mxu0 %vm219_vm0, %v2635_v55 }
 0x183   : > { %v2013_v63 = vpop.permute.xlu1 %2012  ;;  %v2011_v2 = vpop.permute.xlu0 %2010 }
 0x184   : > { %v2015_v3 = vsel %vm2014_vm11, %v2011_v2, %v2013_v63  ;;  %v1097_v23 = vpop.f32.mrf.mxu2  ;;  %v1174_v27 = vpop.f32.mrf.mxu3 }
 0x185   : > { %2027 = vmatpush.bf16.msrb.mxu1 %v2015_v3  ;;  %v1101_v29 = vadd.f32 %v1097_v23, %v1067_v25  ;;  %v1232_v31 = vpop.f32.mrf.mxu1  ;;  %v1204_v38 = vpop.f32.mrf.mxu0  ;;  %v1203_v52 = vadd.f32 %v1202_v22, %v1174_v27 }
 0x187   : > { %v1115_v34 = vmul.f32 %v1112_v32, %v1101_v29  ;;  %v1237_v55 = vadd.f32 %v1232_v31, %v1203_v52 }
 0x188   : > { %2567 = vmatmul.msk.bf16.vlgmr.msrb.gmra.mxu1 %vm219_vm0, %v2636_v4  ;;  %vm1134_vm0 = vcmask 650240  }
 0x18b   : > { %v3215_v13 = vpop.permute.xlu1 %2054  ;;  %v3217_v16 = vpop.permute.xlu0 %2045 }
 0x18c   : > { %v1176_v40 = vpop.f32.mrf.mxu3 }
 0x18d   : > { %v1234_v43 = vpop.f32.mrf.mxu1  ;;  %v1205_v59 = vadd.f32 %v1204_v38, %v1176_v40 }
 0x18f   : > { %v1238_v1 = vadd.f32 %v1234_v43, %v1205_v59 }
 0x193   : > { %v1107_v24 = vpop.permute.xlu1 %1106  ;;  %v1121_v28 = vpop.permute.xlu0 %1120 }
 0x194   : > { %v1114_v26 = vmul.f32 %v1107_v24, %v1100_v21  ;;  %v1264_v42 = vpop.f32.mrf.mxu2  ;;  %v1296_v45 = vpop.f32.mrf.mxu3 }
 0x195   : > { %v1328_v44 = vpop.f32.mrf.mxu0  ;;  %v1269_v58 = vadd.f32 %v1264_v42, %v1237_v55 }
 0x196   : > { %v1128_v30 = vadd.f32 %v1121_v28, %v1114_v26 }
 0x197   : > { %v1301_v61 = vadd.f32 %v1296_v45, %v1269_v58 }
 0x198   : > { %v1130_v33 = vmax.f32 %v1128_v30, 0.0 }
 0x199   : > { %v1333_v3 = vadd.f32 %v1328_v44, %v1301_v61 }
 0x19a   : > { %v1132_v35 = vpack.c.bf16 %v1130_v33, %v1130_v33 }
 0x19b   : > { %v1126_v36 = vpop.permute.xlu1 %1125 }
 0x19c   : > { %1135 = vst.msk [vmem:[%s3225_s12] sm:$0xf] %vm1134_vm0, %v1132_v35  ;;  %v1129_v37 = vadd.f32 %v1126_v36, %v1115_v34  ;;  %v1266_v46 = vpop.f32.mrf.mxu2  ;;  %v1298_v49 = vpop.f32.mrf.mxu3 }
 0x19d   : > { %v1360_v47 = vpop.f32.mrf.mxu1  ;;  %v1330_v48 = vpop.f32.mrf.mxu0  ;;  %v1270_v4 = vadd.f32 %v1266_v46, %v1238_v1 }
 0x19e   : > { %v1131_v39 = vmax.f32 %v1129_v37, 0.0  ;;  %v1365_v6 = vadd.f32 %v1360_v47, %v1333_v3 }
 0x19f   : > { %v1302_v8 = vadd.f32 %v1298_v49, %v1270_v4 }
 0x1a0   : > { %v1133_v41 = vpack.c.bf16 %v1131_v39, %v1131_v39 }
 0x1a1   : > { %v1334_v12 = vadd.f32 %v1330_v48, %v1302_v8 }
 0x1a2   : > { %1136 = vst.msk [vmem:[%s3225_s12 + $0x8] sm:$0xf] %vm1134_vm0, %v1133_v41 }
 0x1a4   : > { %v1392_v50 = vpop.f32.mrf.mxu2 }
 0x1a5   : > { %v1362_v51 = vpop.f32.mrf.mxu1  ;;  %v1397_v11 = vadd.f32 %v1392_v50, %v1365_v6 }
 0x1a6   : > { %v1366_v18 = vadd.f32 %v1362_v51, %v1334_v12 }
 0x1ab   : > { %v1424_v54 = vpop.f32.mrf.mxu3 }
 0x1ac   : > { %v1394_v56 = vpop.f32.mrf.mxu2  ;;  %v1429_v14 = vadd.f32 %v1424_v54, %v1397_v11 }
 0x1ad   : > { %v1466_v53 = vpop.f32.mrf.mxu0  ;;  %v1498_v57 = vpop.f32.mrf.mxu1  ;;  %v1398_v23 = vadd.f32 %v1394_v56, %v1366_v18 }
 0x1ae   : > { %v1471_v21 = vadd.f32 %v1466_v53, %v1429_v14 }
 0x1b0   : > { %v1503_v24 = vadd.f32 %v1498_v57, %v1471_v21 }
 0x1b3   : > { %v1426_v63 = vpop.f32.mrf.mxu3 }
 0x1b4   : > { %v1430_v25 = vadd.f32 %v1426_v63, %v1398_v23 }
 0x1b5   : > { %v1468_v60 = vpop.f32.mrf.mxu0  ;;  %v1500_v2 = vpop.f32.mrf.mxu1 }
 0x1b6   : > { %v1472_v29 = vadd.f32 %v1468_v60, %v1430_v25 }
 0x1b8   : > { %v1504_v33 = vadd.f32 %v1500_v2, %v1472_v29 }
 0x1bb   : > { %v1530_v0 = vpop.f32.mrf.mxu2 }
 0x1bc   : > { %v1535_v27 = vadd.f32 %v1530_v0, %v1503_v24 }
 0x1bd   : > { %v1594_v5 = vpop.f32.mrf.mxu0 }
 0x1c3   : > { %v1562_v7 = vpop.f32.mrf.mxu3  ;;  %v1532_v9 = vpop.f32.mrf.mxu2 }
 0x1c4   : > { %v1567_v30 = vadd.f32 %v1562_v7, %v1535_v27  ;;  %v1536_v35 = vadd.f32 %v1532_v9, %v1504_v33 }
 0x1c5   : > { %v1626_v10 = vpop.f32.mrf.mxu1  ;;  %v1596_v15 = vpop.f32.mrf.mxu0 }
 0x1c6   : > { %v1599_v34 = vadd.f32 %v1594_v5, %v1567_v30 }
 0x1c8   : > { %v1631_v37 = vadd.f32 %v1626_v10, %v1599_v34 }
 0x1cb   : > { %v1564_v19 = vpop.f32.mrf.mxu3 }
 0x1cc   : > { %v1568_v38 = vadd.f32 %v1564_v19, %v1536_v35 }
 0x1cd   : > { %v1628_v22 = vpop.f32.mrf.mxu1 }
 0x1ce   : > { %v1600_v43 = vadd.f32 %v1596_v15, %v1568_v38 }
 0x1d0   : > { %v1632_v46 = vadd.f32 %v1628_v22, %v1600_v43 }
 0x1d3   : > { %v1658_v20 = vpop.f32.mrf.mxu2  ;;  %v1690_v28 = vpop.f32.mrf.mxu3 }
 0x1d4   : > { %v1663_v40 = vadd.f32 %v1658_v20, %v1631_v37 }
 0x1d5   : > { %v1722_v26 = vpop.f32.mrf.mxu0 }
 0x1d6   : > { %v1695_v44 = vadd.f32 %v1690_v28, %v1663_v40 }
 0x1d8   : > { %v1727_v48 = vadd.f32 %v1722_v26, %v1695_v44 }
 0x1db   : > { %v1660_v31 = vpop.f32.mrf.mxu2  ;;  %v1692_v39 = vpop.f32.mrf.mxu3 }
 0x1dc   : > { %v1664_v49 = vadd.f32 %v1660_v31, %v1632_v46 }
 0x1dd   : > { %v1765_v32 = vpop.f32.mrf.mxu1  ;;  %v1724_v36 = vpop.f32.mrf.mxu0 }
 0x1de   : > { %v1770_v51 = vadd.f32 %v1765_v32, %v1727_v48  ;;  %v1696_v53 = vadd.f32 %v1692_v39, %v1664_v49 }
 0x1e0   : > { %v1728_v57 = vadd.f32 %v1724_v36, %v1696_v53 }
 0x1e3   : > { %v1798_v41 = vpop.f32.mrf.mxu2 }
 0x1e4   : > { %v1803_v54 = vadd.f32 %v1798_v41, %v1770_v51 }
 0x1e5   : > { %v1767_v42 = vpop.f32.mrf.mxu1 }
 0x1e6   : > { %v1771_v59 = vadd.f32 %v1767_v42, %v1728_v57 }
 0x1eb   : > { %v1831_v47 = vpop.f32.mrf.mxu3  ;;  %v1800_v52 = vpop.f32.mrf.mxu2 }
 0x1ec   : > { %v1836_v55 = vadd.f32 %v1831_v47, %v1803_v54  ;;  %v1804_v0 = vadd.f32 %v1800_v52, %v1771_v59 }
 0x1ed   : > { %v1864_v45 = vpop.f32.mrf.mxu0  ;;  %v1897_v50 = vpop.f32.mrf.mxu1 }
 0x1ee   : > { %v1869_v60 = vadd.f32 %v1864_v45, %v1836_v55 }
 0x1f0   : > { %v1902_v1 = vadd.f32 %v1897_v50, %v1869_v60 }
 0x1f3   : > { %v1833_v58 = vpop.f32.mrf.mxu3 }
 0x1f4   : > { %v1837_v2 = vadd.f32 %v1833_v58, %v1804_v0 }
 0x1f5   : > { %v1866_v56 = vpop.f32.mrf.mxu0  ;;  %v1899_v61 = vpop.f32.mrf.mxu1 }
 0x1f6   : > { %v1870_v6 = vadd.f32 %v1866_v56, %v1837_v2 }
 0x1f8   : > { %v1903_v11 = vadd.f32 %v1899_v61, %v1870_v6 }
 0x1fb   : > { %v1930_v63 = vpop.f32.mrf.mxu2 }
 0x1fc   : > { %v1935_v3 = vadd.f32 %v1930_v63, %v1902_v1 }
 0x1fd   : > { %v1996_v5 = vpop.f32.mrf.mxu0 }
 0x203   : > { %v1963_v4 = vpop.f32.mrf.mxu3  ;;  %v1932_v10 = vpop.f32.mrf.mxu2 }
 0x204   : > { %v1968_v7 = vadd.f32 %v1963_v4, %v1935_v3  ;;  %v1936_v14 = vadd.f32 %v1932_v10, %v1903_v11 }
 0x205   : > { %v2029_v8 = vpop.f32.mrf.mxu1  ;;  %v1998_v21 = vpop.f32.mrf.mxu0 }
 0x206   : > { %v2001_v9 = vadd.f32 %v1996_v5, %v1968_v7 }
 0x208   : > { %v2034_v12 = vadd.f32 %v2029_v8, %v2001_v9 }
 0x20a   : > { %v2048_v15 = vmul.f32 %v3209_v62, %v2034_v12 }
 0x20b   : > { %v1965_v18 = vpop.f32.mrf.mxu3 }
 0x20c   : > { %v2062_v19 = vadd.f32 %v3215_v13, %v2048_v15  ;;  %v1969_v20 = vadd.f32 %v1965_v18, %v1936_v14 }
 0x20d   : > { %v2031_v24 = vpop.f32.mrf.mxu1 }
 0x20e   : > { %v2002_v22 = vadd.f32 %v1998_v21, %v1969_v20  ;;  %v2064_v23 = vmax.f32 %v2062_v19, 0.0 }
 0x210   : > { %v2035_v25 = vadd.f32 %v2031_v24, %v2002_v22  ;;  %v2066_v26 = vpack.c.bf16 %v2064_v23, %v2064_v23 }
 0x212   : > { %v2049_v27 = vmul.f32 %v3217_v16, %v2035_v25  ;;  %2070 = vrot.lane.b32.xlu2 %v2066_v26, %s2729_s16 }
 0x214   : > { %v2063_v28 = vadd.f32 %v3219_v17, %v2049_v27 }
 0x216   : > { %v2065_v29 = vmax.f32 %v2063_v28, 0.0 }
 0x218   : > { %v2067_v62 = vpack.c.bf16 %v2065_v29, %v2065_v29 }
 0x21a   : > { %2072 = vrot.lane.b32.xlu0 %v2067_v62, %s2729_s16 }
 0x26c   : > { %v2071_v13 = vpop.permute.xlu2 %2070 }
 0x26d   : > { %v2074_v30 = vrot.slane %v2071_v13, 4 }
 0x26f   : > { %v2077_v31 = vsel %vm2076_vm14, %v2074_v30, %v2071_v13 }
 0x270   : > { %2084 = vst.msk [vmem:[%s3225_s12] sm:$0xff] %vm2083_vm15, %v2077_v31 }
 0x28c   : > { %v2073_v32 = vpop.permute.xlu0 %2072 }
 0x28d   : > { %v2075_v33 = vrot.slane %v2073_v32, 4 }
 0x28f   : > { %v2078_v34 = vsel %vm2076_vm14, %v2075_v33, %v2073_v32 }
 0x290   : > { %2085 = vst.msk [vmem:[%s3225_s12 + $0x8] sm:$0xff] %vm2083_vm15, %v2078_v34 }
 0x291 PF: > { %s14_s15 = sadd.s32 1, %s2691_s15  }
 0x292   : > { %p11_p4 = scmp.ge.s32.totalorder %s14_s15, 4  }
 0x294   :  { %13 = sbr.rel (!%p11_p4) target bundleno = 1 (0x1), region = 92 }

// kernel: basic_block_forward.5
= control target key start
LH: loop header
LB: loop body
LE: loop exit
PB: predicated region body
PF: predicated region fallthrough
CT: control target
= control target key end

     0   :  { %s3511_s24 = smov 0   ;;  %s5024_s0 = inlined_call_operand.vmem [shape: bf16[2,3,8,4,64], index: 0, kind: input, shape index: {}, may-alias: {0,1,2}]   ;;  %s5025_s1 = inlined_call_operand.vmem [shape: bf16[2,3,8,4,64], index: 1, kind: input, shape index: {}, may-alias: {0,1,2}]   ;;  %s5026_s2 = inlined_call_operand.vmem [shape: bf16[2,3,8,4,64], index: 2, kind: input, shape index: {}, may-alias: {0,1,2}]   ;;  %s5027_s3 = inlined_call_operand.vmem [shape: bf16[8,64,4], index: 3, kind: input, shape index: {}]   ;;  %s5028_s4 = inlined_call_operand.vmem [shape: f32[2,8,4,64], index: 4, kind: input, shape index: {}]   ;;  %s5029_s5 = inlined_call_operand.vmem [shape: f32[8,4,1], index: 5, kind: input, shape index: {}]   ;;  %s5030_s6 = inlined_call_operand.vmem [shape: f32[8,4,1], index: 6, kind: input, shape index: {}]   ;;  %s5031_s7 = inlined_call_operand.vmem [shape: f32[2,8,4,64], index: 7, kind: output, shape index: {}]  }
   0x1 LB: > { %s2893_s25 = sadd.s32 4294967295, %s3468_s24   ;;  %p2897_p0 = scmp.ge.s32.totalorder %s3468_s24, 1  ;;  %s3468_s24 = sphi %s3511_s24, %s17_s24  }
   0x2   : > { %p269_p1 = scmp.lt.s32.totalorder %s3468_s24, 3 }
   0x4   : > { %p270_p2 = pnand %p2897_p0, %p269_p1 }
   0x6   : > { %273 = sbr.rel (%p270_p2) target bundleno = 1132 (0x46c), region = 48 }
   0xb   : > { %p318_p3 = scmp.lt.s32.totalorder %s2893_s25, 1  ;;  %vm467_vm0 = vcmask 1041408   ;;  %v3125_v0 = vld [vmem:[%s5027_s3] sm:$0xff]  ;;  %vm454_vm1 = vcmask 31744   ;;  %v3126_v8 = vld [vmem:[%s5027_s3 + $0x8] sm:$0xff]  ;;  %v3127_v11 = vld [vmem:[%s5027_s3 + $0x10] sm:$0xff] }
   0xc   : > { %v3129_v6 = vld [vmem:[%s5027_s3 + $0x20] sm:$0xff]  ;;  %v3130_v10 = vld [vmem:[%s5027_s3 + $0x28] sm:$0xff]  ;;  %v3131_v21 = vld [vmem:[%s5027_s3 + $0x30] sm:$0xff]  ;;  %vm1492_vm2 = vcmask 523264   ;;  %vm2781_vm3 = vcmask 519168  }
   0xd   : > { %s5279_s25 = smov (!%p318_p3, %s2893_s25), 1  ;;  %v3133_v15 = vld [vmem:[%s5027_s3 + $0x40] sm:$0xff]  ;;  %v3128_v22 = vld [vmem:[%s5027_s3 + $0x18] sm:$0xff]  ;;  %v3134_v23 = vld [vmem:[%s5027_s3 + $0x48] sm:$0xff] }
   0xe   : > { %s3522_s26 = smul.u32 48, %s5279_s25  ;;  %v3137_v18 = vld [vmem:[%s5027_s3 + $0x60] sm:$0xff]  ;;  %v3138_v25 = vld [vmem:[%s5027_s3 + $0x68] sm:$0xff]  ;;  %v3132_v27 = vld [vmem:[%s5027_s3 + $0x38] sm:$0xff]  ;;  %s3123_s10 = sshll.u32 %s5279_s25, 5 }
   0xf   : > { %v3141_v28 = vld [vmem:[%s5027_s3 + $0x80] sm:$0xff]  ;;  %v3135_v29 = vld [vmem:[%s5027_s3 + $0x50] sm:$0xff]  ;;  %v3142_v32 = vld [vmem:[%s5027_s3 + $0x88] sm:$0xff]  ;;  %s4989_s12 = scalar_lea.vmem %s5028_s4, %s3123_s10  ;;  %s4996_s13 = scalar_lea.vmem %s5031_s7, %s3123_s10 }
  0x10   : > { %s3528_s29 = scalar_lea.vmem %s5024_s0, %s3522_s26  ;;  %v3139_v30 = vld [vmem:[%s5027_s3 + $0x70] sm:$0xff]  ;;  %v3145_v31 = vld [vmem:[%s5027_s3 + $0xa0] sm:$0xff]  ;;  %v3136_v33 = vld [vmem:[%s5027_s3 + $0x58] sm:$0xff]  ;;  %s3619_s28 = scalar_lea.vmem %s5025_s1, %s3522_s26 }
  0x11   : > { %v346_v1 = vld [vmem:[%s3528_s29] sm:$0x3]  ;;  %v347_v2 = vld [vmem:[%s3528_s29 + $0x2] sm:$0x3]  ;;  %v350_v3 = vld [vmem:[%s3528_s29 + $0x8] sm:$0x3]  ;;  %s4860_s20 = scalar_lea.vmem %s5026_s2, %s3522_s26 }
  0x12   : > { %3167 = vxpose.binary.xlu0.c.b16.start.end [1/2] (short) (narrow) %v347_v2, %v346_v1, 64  ;;  %v469_v4 = vsel %vm467_vm0, %v346_v1, 0  ;;  %v533_v5 = vsel %vm467_vm0, %v347_v2, 0  ;;  %v351_v7 = vld [vmem:[%s3528_s29 + $0xa] sm:$0x3]  ;;  %v725_v13 = vsel %vm467_vm0, %v350_v3, 0 }
  0x13   : > { %478 = vmatpush.bf16.msra.mxu0 %v469_v4  ;;  %542 = vmatpush.bf16.msra.mxu1 %v533_v5  ;;  %v348_v9 = vld [vmem:[%s3528_s29 + $0x4] sm:$0x3]  ;;  %v349_v14 = vld [vmem:[%s3528_s29 + $0x6] sm:$0x3]  ;;  %v789_v17 = vsel %vm467_vm0, %v351_v7, 0  ;;  %v3140_v34 = vld [vmem:[%s5027_s3 + $0x78] sm:$0xff] }
  0x14   : > { %3185 = vxpose.binary.xlu1.c.b16.start.end [1/2] (short) (narrow) %v351_v7, %v350_v3, 64  ;;  %v597_v12 = vsel %vm467_vm0, %v348_v9, 0  ;;  %v661_v16 = vsel %vm467_vm0, %v349_v14, 0  ;;  %v352_v19 = vld [vmem:[%s3528_s29 + $0xc] sm:$0x3]  ;;  %v3143_v38 = vld [vmem:[%s5027_s3 + $0x90] sm:$0xff] }
  0x15   : > { %606 = vmatpush.bf16.msra.mxu2 %v597_v12  ;;  %670 = vmatpush.bf16.msra.mxu3 %v661_v16  ;;  %v853_v20 = vsel %vm467_vm0, %v352_v19, 0  ;;  %v353_v24 = vld [vmem:[%s3528_s29 + $0xe] sm:$0x3]  ;;  %v2905_v35 = vld [vmem:[%s3619_s28 + $0x10] sm:$0x3]  ;;  %v3149_v39 = vld [vmem:[%s5027_s3 + $0xc0] sm:$0xff] }
  0x16   : > { %2937 = vmatmul.msk.bf16.vlgmr.msra.gmra.mxu0 %vm454_vm1, %v3125_v0  ;;  %2957 = vmatmul.msk.bf16.vlgmr.msra.gmra.mxu1 %vm454_vm1, %v3129_v6  ;;  %v917_v26 = vsel %vm467_vm0, %v353_v24, 0  ;;  %v977_v36 = vsel %vm467_vm0, %v2905_v35, 0  ;;  %v3146_v37 = vld [vmem:[%s5027_s3 + $0xa8] sm:$0xff]  ;;  %v2906_v40 = vld [vmem:[%s3619_s28 + $0x12] sm:$0x3]  ;;  %v3144_v43 = vld [vmem:[%s5027_s3 + $0x98] sm:$0xff] }
  0x17   : > { %734 = vmatpush.bf16.msrb.mxu0 %v725_v13  ;;  %798 = vmatpush.bf16.msrb.mxu1 %v789_v17  ;;  %v1037_v41 = vsel %vm467_vm0, %v2906_v40, 0  ;;  %v3147_v42 = vld [vmem:[%s5027_s3 + $0xb0] sm:$0xff]  ;;  %v3148_v44 = vld [vmem:[%s5027_s3 + $0xb8] sm:$0xff]  ;;  %v3153_v46 = vld [vmem:[%s5027_s3 + $0xe0] sm:$0xff] }
  0x18   : > { %2977 = vmatmul.msk.bf16.vlgmr.msra.gmra.mxu2 %vm454_vm1, %v3133_v15  ;;  %2997 = vmatmul.msk.bf16.vlgmr.msra.gmra.mxu3 %vm454_vm1, %v3137_v18  ;;  %v2907_v47 = vld [vmem:[%s3619_s28 + $0x14] sm:$0x3]  ;;  %v3150_v51 = vld [vmem:[%s5027_s3 + $0xc8] sm:$0xff]  ;;  %v2908_v52 = vld [vmem:[%s3619_s28 + $0x16] sm:$0x3] }
  0x19   : > { %862 = vmatpush.bf16.msrb.mxu2 %v853_v20  ;;  %926 = vmatpush.bf16.msrb.mxu3 %v917_v26  ;;  %v1097_v48 = vsel %vm467_vm0, %v2907_v47, 0  ;;  %v1157_v53 = vsel %vm467_vm0, %v2908_v52, 0  ;;  %v3154_v54 = vld [vmem:[%s5027_s3 + $0xe8] sm:$0xff]  ;;  %v3151_v57 = vld [vmem:[%s5027_s3 + $0xd0] sm:$0xff]  ;;  %v3152_v0 = vld [vmem:[%s5027_s3 + $0xd8] sm:$0xff] }
  0x1a   : > { %v3155_v60 = vld [vmem:[%s5027_s3 + $0xf0] sm:$0xff]  ;;  %v3156_v4 = vld [vmem:[%s5027_s3 + $0xf8] sm:$0xff] }
  0x1b   : > { %986 = vmatpush.bf16.msra.mxu0 %v977_v36  ;;  %1046 = vmatpush.bf16.msra.mxu1 %v1037_v41  ;;  %v2910_v13 = vld [vmem:[%s3619_s28 + $0x1a] sm:$0x3] }
  0x1c   : > { %v1277_v15 = vsel %vm467_vm0, %v2910_v13, 0 }
  0x1d   : > { %1106 = vmatpush.bf16.msra.mxu2 %v1097_v48  ;;  %1166 = vmatpush.bf16.msra.mxu3 %v1157_v53 }
  0x26   : > { %2938 = vmatmul.msk.bf16.gmra.mxu0 %vm454_vm1, %v3126_v8  ;;  %2958 = vmatmul.msk.bf16.gmra.mxu1 %vm454_vm1, %v3130_v10 }
  0x28   : > { %2978 = vmatmul.msk.bf16.gmra.mxu2 %vm454_vm1, %v3134_v23  ;;  %2998 = vmatmul.msk.bf16.gmra.mxu3 %vm454_vm1, %v3138_v25 }
  0x36   : > { %2939 = vmatmul.msk.bf16.gmra.mxu0 %vm454_vm1, %v3127_v11  ;;  %2959 = vmatmul.msk.bf16.gmra.mxu1 %vm454_vm1, %v3131_v21 }
  0x38   : > { %2979 = vmatmul.msk.bf16.gmra.mxu2 %vm454_vm1, %v3135_v29  ;;  %2999 = vmatmul.msk.bf16.gmra.mxu3 %vm454_vm1, %v3139_v30 }
  0x46   : > { %2940 = vmatmul.msk.bf16.gmra.mxu0 %vm454_vm1, %v3128_v22  ;;  %2960 = vmatmul.msk.bf16.gmra.mxu1 %vm454_vm1, %v3132_v27 }
  0x48   : > { %2980 = vmatmul.msk.bf16.gmra.mxu2 %vm454_vm1, %v3136_v33  ;;  %3000 = vmatmul.msk.bf16.gmra.mxu3 %vm454_vm1, %v3140_v34 }
  0x52   : > { %3176 = vxpose.binary.xlu0.c.b16.start.end [1/2] (short) (narrow) %v349_v14, %v348_v9, 64  ;;  %v2909_v9 = vld [vmem:[%s3619_s28 + $0x18] sm:$0x3] }
  0x53   : > { %v1217_v10 = vsel %vm467_vm0, %v2909_v9, 0 }
  0x54   : > { %3194 = vxpose.binary.xlu1.c.b16.start.end [1/2] (short) (narrow) %v353_v24, %v352_v19, 64 }
  0x56   : > { %3017 = vmatmul.msk.bf16.vlgmr.msrb.gmra.mxu0 %vm454_vm1, %v3141_v28  ;;  %3037 = vmatmul.msk.bf16.vlgmr.msrb.gmra.mxu1 %vm454_vm1, %v3145_v31 }
  0x57   : > { %1226 = vmatpush.bf16.msrb.mxu0 %v1217_v10  ;;  %1286 = vmatpush.bf16.msrb.mxu1 %v1277_v15 }
  0x58   : > { %3057 = vmatmul.msk.bf16.vlgmr.msrb.gmra.mxu2 %vm454_vm1, %v3149_v39  ;;  %3077 = vmatmul.msk.bf16.vlgmr.msrb.gmra.mxu3 %vm454_vm1, %v3153_v46 }
  0x66   : > { %3018 = vmatmul.msk.bf16.gmra.mxu0 %vm454_vm1, %v3142_v32  ;;  %3038 = vmatmul.msk.bf16.gmra.mxu1 %vm454_vm1, %v3146_v37 }
  0x68   : > { %3058 = vmatmul.msk.bf16.gmra.mxu2 %vm454_vm1, %v3150_v51  ;;  %3078 = vmatmul.msk.bf16.gmra.mxu3 %vm454_vm1, %v3154_v54  ;;  %v2911_v54 = vld [vmem:[%s3619_s28 + $0x1c] sm:$0x3] }
  0x76   : > { %3019 = vmatmul.msk.bf16.gmra.mxu0 %vm454_vm1, %v3143_v38  ;;  %3039 = vmatmul.msk.bf16.gmra.mxu1 %vm454_vm1, %v3147_v42 }
  0x78   : > { %3059 = vmatmul.msk.bf16.gmra.mxu2 %vm454_vm1, %v3151_v57  ;;  %3079 = vmatmul.msk.bf16.gmra.mxu3 %vm454_vm1, %v3155_v60  ;;  %v1337_v57 = vsel %vm467_vm0, %v2911_v54, 0 }
  0x79   : > { %1346 = vmatpush.bf16.msrb.mxu2 %v1337_v57 }
  0x86   : > { %3020 = vmatmul.msk.bf16.gmra.mxu0 %vm454_vm1, %v3144_v43  ;;  %3040 = vmatmul.msk.bf16.gmra.mxu1 %vm454_vm1, %v3148_v44 }
  0x88   : > { %3060 = vmatmul.msk.bf16.gmra.mxu2 %vm454_vm1, %v3152_v0  ;;  %3080 = vmatmul.msk.bf16.gmra.mxu3 %vm454_vm1, %v3156_v4 }
  0x93   : > { %v3656_v45 = vpop.f32.mrf.mxu0  ;;  %v3664_v49 = vpop.f32.mrf.mxu1 }
  0x9b   : > { %v3666_v50 = vpop.f32.mrf.mxu0  ;;  %v3677_v55 = vpop.f32.mrf.mxu1 }
  0x9c   : > { %v3727_v17 = vpop.f32.mrf.mxu2  ;;  %v3734_v22 = vpop.f32.mrf.mxu3 }
  0xa3   : > { %v3679_v56 = vpop.f32.mrf.mxu0  ;;  %v3686_v58 = vpop.f32.mrf.mxu1 }
  0xa4   : > { %v3736_v24 = vpop.f32.mrf.mxu2  ;;  %v3743_v29 = vpop.f32.mrf.mxu3 }
  0xab   : > { %v3688_v59 = vpop.f32.mrf.mxu0  ;;  %v3695_v62 = vpop.f32.mrf.mxu1 }
  0xac   : > { %v3746_v30 = vpop.f32.mrf.mxu2  ;;  %v3754_v35 = vpop.f32.mrf.mxu3 }
  0xb3   : > { %v3697_v63 = vpop.f32.mrf.mxu0  ;;  %v3704_v2 = vpop.f32.mrf.mxu1 }
  0xb4   : > { %v3756_v36 = vpop.f32.mrf.mxu2  ;;  %v3764_v41 = vpop.f32.mrf.mxu3 }
  0xbb   : > { %v3706_v3 = vpop.f32.mrf.mxu0  ;;  %v3713_v7 = vpop.f32.mrf.mxu1 }
  0xbc   : > { %v3766_v42 = vpop.f32.mrf.mxu2  ;;  %v3774_v48 = vpop.f32.mrf.mxu3 }
  0xbe   : > { %v3168_v61 = vpop.trf.xlu0 }
  0xbf   : > { %3081 = vmatmul.msk.bf16.vlgmr.msra.gmra.mxu0 %vm454_vm1, %v3168_v61 }
  0xc0   : > { %v3186_v12 = vpop.trf.xlu1 }
  0xc3   : > { %v3716_v8 = vpop.f32.mrf.mxu0  ;;  %v3722_v14 = vpop.f32.mrf.mxu1 }
  0xc4   : > { %5088 = vst [vmem:[#allocation2_spill] sm:$0xff] %v3722_v14  ;;  %v3776_v52 = vpop.f32.mrf.mxu2 }
  0xc6   : > { %v3169_v1 = vpop.trf.xlu0 }
  0xc7   : > { %3085 = vmatmul.msk.bf16.vlgmr.msra.gmra.mxu1 %vm454_vm1, %v3169_v1  ;;  %v3786_v1 = vpop.f32.mrf.mxu3 }
  0xc8   : > { %v3187_v19 = vpop.trf.xlu1 }
  0xcb   : > { %v3725_v16 = vpop.f32.mrf.mxu0  ;;  %v3730_v20 = vpop.f32.mrf.mxu1 }
  0xcc   : > { %5089 = vst [vmem:[#allocation3_spill] sm:$0xff] %v3725_v16  ;;  %v3790_v4 = vpop.f32.mrf.mxu2 }
  0xcd   : > { %5090 = vst [vmem:[#allocation4_spill] sm:$0xff] %v3730_v20 }
  0xce   : > { %v3170_v5 = vpop.trf.xlu0  ;;  %5096 = vst [vmem:[#allocation10_spill] sm:$0xff] %v3790_v4 }
  0xcf   : > { %3082 = vmatmul.msk.bf16.gmra.mxu0 %vm454_vm1, %v3170_v5  ;;  %v2912_v5 = vld [vmem:[%s3619_s28 + $0x1e] sm:$0x3]  ;;  %v3800_v13 = vpop.f32.mrf.mxu3 }
  0xd0   : > { %v3188_v25 = vpop.trf.xlu1  ;;  %5097 = vst [vmem:[#allocation11_spill] sm:$0xff] %v3800_v13 }
  0xd3   : > { %v3732_v21 = vpop.f32.mrf.mxu0  ;;  %v3739_v26 = vpop.f32.mrf.mxu1 }
  0xd4   : > { %5091 = vst [vmem:[#allocation5_spill] sm:$0xff] %v3732_v21  ;;  %v3802_v15 = vpop.f32.mrf.mxu2 }
  0xd5   : > { %5092 = vst [vmem:[#allocation6_spill] sm:$0xff] %v3739_v26 }
  0xd6   : > { %v3171_v6 = vpop.trf.xlu0  ;;  %5098 = vst [vmem:[#allocation12_spill] sm:$0xff] %v3802_v15 }
  0xd7   : > { %3086 = vmatmul.msk.bf16.gmra.mxu1 %vm454_vm1, %v3171_v6  ;;  %v1397_v6 = vsel %vm467_vm0, %v2912_v5, 0 }
  0xd8   : > { %v3189_v31 = vpop.trf.xlu1  ;;  %1406 = vmatpush.bf16.msrb.mxu3 %v1397_v6 }
  0xdb   : > { %v3741_v27 = vpop.f32.mrf.mxu0  ;;  %v3748_v33 = vpop.f32.mrf.mxu1 }
  0xde   : > { %v3172_v11 = vpop.trf.xlu0 }
  0xdf   : > { %3083 = vmatmul.msk.bf16.gmra.mxu0 %vm454_vm1, %v3172_v11 }
  0xe0   : > { %v3190_v38 = vpop.trf.xlu1 }
  0xe3   : > { %v3752_v34 = vpop.f32.mrf.mxu0  ;;  %v3760_v39 = vpop.f32.mrf.mxu1 }
  0xe4   : > { %5093 = vst [vmem:[#allocation7_spill] sm:$0xff] %v3752_v34 }
  0xe6   : > { %v3173_v18 = vpop.trf.xlu0 }
  0xe7   : > { %3087 = vmatmul.msk.bf16.gmra.mxu1 %vm454_vm1, %v3173_v18 }
  0xe8   : > { %v3191_v44 = vpop.trf.xlu1 }
  0xeb   : > { %v3762_v40 = vpop.f32.mrf.mxu0  ;;  %v3770_v46 = vpop.f32.mrf.mxu1 }
  0xec   : > { %5094 = vst [vmem:[#allocation8_spill] sm:$0xff] %v3770_v46 }
  0xee   : > { %v3174_v23 = vpop.trf.xlu0 }
  0xef   : > { %3084 = vmatmul.msk.bf16.gmra.mxu0 %vm454_vm1, %v3174_v23 }
  0xf0   : > { %v3192_v53 = vpop.trf.xlu1 }
  0xf3   : > { %v3772_v47 = vpop.f32.mrf.mxu0  ;;  %v3782_v60 = vpop.f32.mrf.mxu1 }
  0xf6   : > { %v3175_v28 = vpop.trf.xlu0 }
  0xf7   : > { %3088 = vmatmul.msk.bf16.gmra.mxu1 %vm454_vm1, %v3175_v28  ;;  %v3810_v28 = vpop.f32.mrf.mxu3 }
  0xf8   : > { %v3193_v9 = vpop.trf.xlu1 }
  0xfb   : > { %v3784_v61 = vpop.f32.mrf.mxu0  ;;  %v3794_v11 = vpop.f32.mrf.mxu1 }
  0xfc   : > { %5095 = vst [vmem:[#allocation9_spill] sm:$0xff] %v3784_v61 }
  0xfe   : > { %v3177_v32 = vpop.trf.xlu0 }
  0xff   : > { %3089 = vmatmul.msk.bf16.vlgmr.msra.gmra.mxu2 %vm454_vm1, %v3177_v32  ;;  %3097 = vmatmul.msk.bf16.vlgmr.msrb.gmra.mxu0 %vm454_vm1, %v3186_v12 }
 0x103   : > { %v3798_v12 = vpop.f32.mrf.mxu0  ;;  %v3806_v23 = vpop.f32.mrf.mxu1 }
 0x104   : > { %5099 = vst [vmem:[#allocation13_spill] sm:$0xff] %v3806_v23 }
 0x106   : > { %v3178_v37 = vpop.trf.xlu0 }
 0x107   : > { %3093 = vmatmul.msk.bf16.vlgmr.msra.gmra.mxu3 %vm454_vm1, %v3178_v37  ;;  %3101 = vmatmul.msk.bf16.vlgmr.msrb.gmra.mxu1 %vm454_vm1, %v3187_v19  ;;  %v3195_v19 = vpop.trf.xlu1 }
 0x10e   : > { %v3179_v43 = vpop.trf.xlu0 }
 0x10f   : > { %3090 = vmatmul.msk.bf16.gmra.mxu2 %vm454_vm1, %v3179_v43  ;;  %3098 = vmatmul.msk.bf16.gmra.mxu0 %vm454_vm1, %v3188_v25  ;;  %v3808_v25 = vpop.f32.mrf.mxu0  ;;  %v3196_v37 = vpop.trf.xlu1 }
 0x116   : > { %v3180_v51 = vpop.trf.xlu0 }
 0x117   : > { %3094 = vmatmul.msk.bf16.gmra.mxu3 %vm454_vm1, %v3180_v51  ;;  %3102 = vmatmul.msk.bf16.gmra.mxu1 %vm454_vm1, %v3189_v31  ;;  %v3812_v31 = vpop.f32.mrf.mxu2 }
 0x11e   : > { %v3181_v0 = vpop.trf.xlu0 }
 0x11f   : > { %3091 = vmatmul.msk.bf16.gmra.mxu2 %vm454_vm1, %v3181_v0  ;;  %3099 = vmatmul.msk.bf16.gmra.mxu0 %vm454_vm1, %v3190_v38  ;;  %v3816_v38 = vpop.f32.mrf.mxu1  ;;  %v3197_v0 = vpop.trf.xlu1 }
 0x126   : > { %v3182_v10 = vpop.trf.xlu0 }
 0x127   : > { %3095 = vmatmul.msk.bf16.gmra.mxu3 %vm454_vm1, %v3182_v10  ;;  %3103 = vmatmul.msk.bf16.gmra.mxu1 %vm454_vm1, %v3191_v44  ;;  %v3818_v44 = vpop.f32.mrf.mxu3 }
 0x12e   : > { %v3183_v18 = vpop.trf.xlu0 }
 0x12f   : > { %3092 = vmatmul.msk.bf16.gmra.mxu2 %vm454_vm1, %v3183_v18  ;;  %3100 = vmatmul.msk.bf16.gmra.mxu0 %vm454_vm1, %v3192_v53  ;;  %v3821_v53 = vpop.f32.mrf.mxu2 }
 0x130   : > { %5100 = vst [vmem:[#allocation14_spill] sm:$0xff] %v3821_v53 }
 0x136   : > { %v3184_v32 = vpop.trf.xlu0 }
 0x137   : > { %3096 = vmatmul.msk.bf16.gmra.mxu3 %vm454_vm1, %v3184_v32  ;;  %3104 = vmatmul.msk.bf16.gmra.mxu1 %vm454_vm1, %v3193_v9  ;;  %v3829_v9 = vpop.f32.mrf.mxu3  ;;  %v3198_v32 = vpop.trf.xlu1 }
 0x13c   : > { %v988_v43 = vpop.f32.mrf.mxu0 }
 0x13d   : > { %v989_v51 = vadd.f32 %v988_v43, %v3656_v45  ;;  %v3834_v45 = vpop.f32.mrf.mxu2 }
 0x13f   : > { %v3823_v54 = vmul.f32 0.5, %v989_v51  ;;  %3105 = vmatmul.msk.bf16.vlgmr.msrb.gmra.mxu2 %vm454_vm1, %v3195_v19 }
 0x141   : > { %5101 = vst [vmem:[#allocation15_spill] sm:$0xff] %v3823_v54  ;;  %v1493_v57 = vsel %vm1492_vm2, %v3823_v54, -inf }
 0x142   : > { %1494 = vmax.xlane.f32.xlu2 %v1493_v57 }
 0x144   : > { %v1048_v5 = vpop.f32.mrf.mxu1 }
 0x145   : > { %v1049_v6 = vadd.f32 %v1048_v5, %v3664_v49  ;;  %v3842_v49 = vpop.f32.mrf.mxu3 }
 0x146   : > { %5103 = vst [vmem:[#allocation17_spill] sm:$0xff] %v3842_v49 }
 0x147   : > { %v3831_v10 = vmul.f32 0.5, %v1049_v6  ;;  %3109 = vmatmul.msk.bf16.vlgmr.msrb.gmra.mxu3 %vm454_vm1, %v3196_v37  ;;  %v3846_v37 = vpop.f32.mrf.mxu2 }
 0x149   : > { %v1517_v18 = vsel %vm1492_vm2, %v3831_v10, -inf }
 0x14a   : > { %1518 = vmax.xlane.f32.xlu2 %v1517_v18  ;;  %v3199_v18 = vpop.trf.xlu1 }
 0x14c   : > { %v1050_v19 = vpop.f32.mrf.mxu1 }
 0x14d   : > { %v1051_v43 = vadd.f32 %v1050_v19, %v3677_v55 }
 0x14f   : > { %v3839_v51 = vmul.f32 0.5, %v1051_v43  ;;  %3106 = vmatmul.msk.bf16.gmra.mxu2 %vm454_vm1, %v3197_v0  ;;  %v3854_v0 = vpop.f32.mrf.mxu3  ;;  %v3856_v19 = vpop.f32.mrf.mxu2 }
 0x150   : > { %5105 = vst [vmem:[#allocation19_spill] sm:$0xff] %v3856_v19 }
 0x151   : > { %5102 = vst [vmem:[#allocation16_spill] sm:$0xff] %v3839_v51  ;;  %v1520_v57 = vsel %vm1492_vm2, %v3839_v51, -inf }
 0x152   : > { %1521 = vmax.xlane.f32.xlu0 %v1520_v57  ;;  %v3200_v43 = vpop.trf.xlu1 }
 0x154   : > { %v1053_v5 = vpop.f32.mrf.mxu1 }
 0x155   : > { %v1054_v6 = vadd.f32 %v1053_v5, %v3686_v58 }
 0x157   : > { %v3849_v54 = vmul.f32 0.5, %v1054_v6  ;;  %3110 = vmatmul.msk.bf16.gmra.mxu3 %vm454_vm1, %v3198_v32  ;;  %v3859_v57 = vpop.f32.mrf.mxu3  ;;  %v3861_v51 = vpop.f32.mrf.mxu2 }
 0x159   : > { %5104 = vst [vmem:[#allocation18_spill] sm:$0xff] %v3849_v54  ;;  %v1523_v55 = vsel %vm1492_vm2, %v3849_v54, -inf }
 0x15a   : > { %1524 = vmax.xlane.f32.xlu1 %v1523_v55  ;;  %v3201_v58 = vpop.trf.xlu1  ;;  %v990_v55 = vpop.f32.mrf.mxu0 }
 0x15c   : > { %v1055_v21 = vpop.f32.mrf.mxu1 }
 0x15f   : > { %3107 = vmatmul.msk.bf16.gmra.mxu2 %vm454_vm1, %v3199_v18  ;;  %v3864_v5 = vpop.f32.mrf.mxu3  ;;  %v3867_v32 = vpop.f32.mrf.mxu2 }
 0x160   : > { %5106 = vst [vmem:[#allocation20_spill] sm:$0xff] %v3864_v5 }
 0x162   : > { %v3202_v6 = vpop.trf.xlu1  ;;  %v993_v61 = vpop.f32.mrf.mxu0 }
 0x163   : > { %v994_v4 = vadd.f32 %v993_v61, %v3679_v56 }
 0x167   : > { %3111 = vmatmul.msk.bf16.gmra.mxu3 %vm454_vm1, %v3200_v43  ;;  %v3870_v23 = vpop.f32.mrf.mxu3  ;;  %v3872_v18 = vpop.f32.mrf.mxu2 }
 0x168   : > { %5107 = vst [vmem:[#allocation21_spill] sm:$0xff] %v3872_v18  ;;  %v991_v18 = vadd.f32 %v990_v55, %v3666_v50 }
 0x16a   : > { %v995_v53 = vpop.f32.mrf.mxu0 }
 0x16f   : > { %3108 = vmatmul.msk.bf16.gmra.mxu2 %vm454_vm1, %v3201_v58  ;;  %v3874_v19 = vpop.f32.mrf.mxu3 }
 0x172   : > { %v3889_v20 = vpop.f32.mrf.mxu0 }
 0x177   : > { %3112 = vmatmul.msk.bf16.gmra.mxu3 %vm454_vm1, %v3202_v6 }
 0x182   : > { %v1108_v46 = vpop.f32.mrf.mxu2 }
 0x183   : > { %v1109_v43 = vadd.f32 %v1108_v46, %v3727_v17 }
 0x185   : > { %v3877_v49 = vmul.f32 0.5, %v1109_v43  ;;  %v3887_v43 = vmul.f32 0.5, %v991_v18 }
 0x187   : > { %v1541_v58 = vsel %vm1492_vm2, %v3877_v49, -inf }
 0x188   : > { %1542 = vmax.xlane.f32.xlu2 %v1541_v58 }
 0x18a   : > { %v1110_v5 = vpop.f32.mrf.mxu2  ;;  %v1168_v34 = vpop.f32.mrf.mxu3 }
 0x18b   : > { %v1169_v6 = vadd.f32 %v1168_v34, %v3734_v22  ;;  %v1111_v58 = vadd.f32 %v1110_v5, %v3736_v24  ;;  %v1496_v22 = vsel %vm1492_vm2, %v3887_v43, -inf  ;;  %v3894_v34 = vpop.f32.mrf.mxu1 }
 0x18d   : > { %v3882_v26 = vmul.f32 0.5, %v1169_v6  ;;  %v3898_v6 = vmul.f32 0.5, %v1111_v58 }
 0x18f   : > { %5108 = vst [vmem:[#allocation22_spill] sm:$0xff] %v3882_v26  ;;  %v1565_v15 = vsel %vm1492_vm2, %v3882_v26, -inf  ;;  %v1544_v16 = vsel %vm1492_vm2, %v3898_v6, -inf }
 0x190   : > { %1566 = vmax.xlane.f32.xlu2 %v1565_v15  ;;  %5109 = vst [vmem:[#allocation23_spill] sm:$0xff] %v3898_v6  ;;  %v3900_v15 = vpop.f32.mrf.mxu0 }
 0x192   : > { %v1113_v17 = vpop.f32.mrf.mxu2  ;;  %v1170_v46 = vpop.f32.mrf.mxu3 }
 0x193   : > { %v1171_v18 = vadd.f32 %v1170_v46, %v3743_v29  ;;  %v1114_v26 = vadd.f32 %v1113_v17, %v3746_v30 }
 0x195   : > { %v3911_v13 = vmul.f32 0.5, %v1171_v18 }
 0x197   : > { %5110 = vst [vmem:[#allocation24_spill] sm:$0xff] %v3911_v13  ;;  %v1568_v58 = vsel %vm1492_vm2, %v3911_v13, -inf }
 0x198   : > { %1497 = vmax.xlane.f32.xlu2 %v1496_v22  ;;  %v3909_v22 = vpop.f32.mrf.mxu1  ;;  %v3916_v14 = vpop.f32.mrf.mxu0 }
 0x199   : > { %5111 = vst [vmem:[#allocation25_spill] sm:$0xff] %v3916_v14 }
 0x19a   : > { %v3896_v50 = vpop.f32.mrf.mxu2  ;;  %v1173_v55 = vpop.f32.mrf.mxu3 }
 0x1a0   : > { %1545 = vmax.xlane.f32.xlu2 %v1544_v16  ;;  %v3922_v16 = vmul.f32 0.5, %v994_v4  ;;  %v3924_v6 = vpop.f32.mrf.mxu1  ;;  %v3934_v54 = vpop.f32.mrf.mxu0 }
 0x1a1   : > { %5112 = vst [vmem:[#allocation26_spill] sm:$0xff] %v3924_v6  ;;  %v1174_v6 = vadd.f32 %v1173_v55, %v3754_v35 }
 0x1a2   : > { %v3905_v24 = vpop.f32.mrf.mxu2  ;;  %v3907_v5 = vpop.f32.mrf.mxu3  ;;  %v1499_v18 = vsel %vm1492_vm2, %v3922_v16, -inf  ;;  %5113 = vst [vmem:[#allocation27_spill] sm:$0xff] %v3934_v54 }
 0x1a8   : > { %1569 = vmax.xlane.f32.xlu2 %v1568_v58  ;;  %v3931_v58 = vmul.f32 0.5, %v1114_v26  ;;  %v3938_v4 = vpop.f32.mrf.mxu1 }
 0x1a9   : > { %5115 = vst [vmem:[#allocation29_spill] sm:$0xff] %v3938_v4 }
 0x1aa   : > { %v3918_v29 = vpop.f32.mrf.mxu2  ;;  %v3920_v46 = vpop.f32.mrf.mxu3  ;;  %v1547_v17 = vsel %vm1492_vm2, %v3931_v58, -inf }
 0x1b0   : > { %1500 = vmax.xlane.f32.xlu2 %v1499_v18  ;;  %v3956_v55 = vpop.f32.mrf.mxu1 }
 0x1b1   : > { %5118 = vst [vmem:[#allocation32_spill] sm:$0xff] %v3956_v55 }
 0x1b2   : > { %v3929_v56 = vpop.f32.mrf.mxu2  ;;  %v1180_v61 = vpop.f32.mrf.mxu3 }
 0x1b3   : > { %v1181_v13 = vadd.f32 %v1180_v61, %v3786_v1  ;;  %v3949_v1 = vmul.f32 0.5, %v1174_v6  ;;  %v996_v61 = vadd.f32 %v995_v53, %v3688_v59  ;;  %v1056_v53 = vadd.f32 %v1055_v21, %v3695_v62 }
 0x1b5   : > { %v3936_v14 = vmul.f32 0.5, %v1181_v13  ;;  %v3951_v13 = vpop.f32.mrf.mxu0  ;;  %v1571_v35 = vsel %vm1492_vm2, %v3949_v1, -inf }
 0x1b6   : > { %5117 = vst [vmem:[#allocation31_spill] sm:$0xff] %v3951_v13 }
 0x1b7   : > { %5114 = vst [vmem:[#allocation28_spill] sm:$0xff] %v3936_v14  ;;  %v1580_v30 = vsel %vm1492_vm2, %v3936_v14, -inf }
 0x1b8   : > { %1581 = vmax.xlane.f32.xlu1 %v1580_v30  ;;  %1548 = vmax.xlane.f32.xlu2 %v1547_v17  ;;  %v3958_v30 = vmul.f32 0.5, %v996_v61 }
 0x1ba   : > { %v3945_v26 = vpop.f32.mrf.mxu2  ;;  %v3947_v18 = vpop.f32.mrf.mxu3  ;;  %v1502_v59 = vsel %vm1492_vm2, %v3958_v30, -inf }
 0x1bb   : > { %5116 = vst [vmem:[#allocation30_spill] sm:$0xff] %v3945_v26 }
 0x1c0   : > { %1572 = vmax.xlane.f32.xlu2 %v1571_v35  ;;  %v1230_v35 = vpop.f32.mrf.mxu0 }
 0x1c2   : > { %v1185_v14 = vpop.f32.mrf.mxu3  ;;  %v1348_v4 = vpop.f32.mrf.mxu2 }
 0x1c3   : > { %v1186_v17 = vadd.f32 %v1185_v14, %v3810_v28  ;;  %v1349_v6 = vadd.f32 %v1348_v4, %v3812_v31  ;;  %v3974_v28 = vmul.f32 0.5, %v1056_v53  ;;  %v1290_v31 = vpop.f32.mrf.mxu1 }
 0x1c5   : > { %v3961_v26 = vmul.f32 0.5, %v1186_v17  ;;  %v3971_v54 = vmul.f32 0.5, %v1349_v6  ;;  %v1231_v17 = vadd.f32 %v1230_v35, %v3741_v27 }
 0x1c7   : > { %5119 = vst [vmem:[#allocation33_spill] sm:$0xff] %v3961_v26  ;;  %v1586_v13 = vsel %vm1492_vm2, %v3961_v26, -inf  ;;  %v1291_v26 = vadd.f32 %v1290_v31, %v3748_v33  ;;  %v1637_v21 = vsel %vm1492_vm2, %v3971_v54, -inf }
 0x1c8   : > { %1587 = vmax.xlane.f32.xlu1 %v1586_v13  ;;  %1503 = vmax.xlane.f32.xlu2 %v1502_v59  ;;  %5120 = vst [vmem:[#allocation34_spill] sm:$0xff] %v3971_v54  ;;  %v1116_v13 = vadd.f32 %v3896_v50, %v3756_v36  ;;  %v3988_v6 = vpop.f32.mrf.mxu0  ;;  %v3990_v59 = vmul.f32 0.5, %v1231_v17  ;;  %v1176_v17 = vadd.f32 %v3907_v5, %v3764_v41 }
 0x1c9   : > { %v3992_v33 = vmul.f32 0.5, %v1291_v26 }
 0x1ca   : > { %v3969_v55 = vpop.f32.mrf.mxu2  ;;  %v1408_v61 = vpop.f32.mrf.mxu3  ;;  %5122 = vst [vmem:[#allocation36_spill] sm:$0xff] %v3990_v59  ;;  %v3994_v53 = vmul.f32 0.5, %v1116_v13  ;;  %v4012_v13 = vmul.f32 0.5, %v1176_v17 }
 0x1cb   : > { %v1409_v14 = vadd.f32 %v1408_v61, %v3818_v44  ;;  %v1526_v44 = vsel %vm1492_vm2, %v3974_v28, -inf  ;;  %5123 = vst [vmem:[#allocation37_spill] sm:$0xff] %v3992_v33  ;;  %v1616_v50 = vsel %vm1492_vm2, %v3992_v33, -inf  ;;  %v1293_v31 = vpop.f32.mrf.mxu1 }
 0x1cc   : > { %v1550_v26 = vsel %vm1492_vm2, %v3994_v53, -inf }
 0x1cd   : > { %v3976_v4 = vmul.f32 0.5, %v1409_v14  ;;  %v1592_v14 = vsel %vm1492_vm2, %v3990_v59, -inf }
 0x1cf   : > { %5121 = vst [vmem:[#allocation35_spill] sm:$0xff] %v3976_v4  ;;  %v1661_v62 = vsel %vm1492_vm2, %v3976_v4, -inf }
 0x1d0   : > { %1662 = vmax.xlane.f32.xlu0 %v1661_v62  ;;  %1638 = vmax.xlane.f32.xlu1 %v1637_v21  ;;  %v1235_v21 = vpop.f32.mrf.mxu0 }
 0x1d1   : > { %1527 = vmax.xlane.f32.xlu2 %v1526_v44  ;;  %v1236_v44 = vadd.f32 %v1235_v21, %v3762_v40  ;;  %v1059_v21 = vadd.f32 %v3894_v34, %v3704_v2 }
 0x1d2   : > { %v1410_v27 = vpop.f32.mrf.mxu3  ;;  %v1353_v35 = vpop.f32.mrf.mxu2 }
 0x1d3   : > { %v1354_v61 = vadd.f32 %v1353_v35, %v3834_v45  ;;  %v1411_v36 = vadd.f32 %v1410_v27, %v3829_v9  ;;  %v1294_v27 = vadd.f32 %v1293_v31, %v3760_v39  ;;  %v999_v35 = vadd.f32 %v3889_v20, %v3697_v63 }
 0x1d4   : > { %v4026_v40 = vmul.f32 0.5, %v1236_v44 }
 0x1d5   : > { %v4008_v45 = vmul.f32 0.5, %v1354_v61  ;;  %v4010_v9 = vmul.f32 0.5, %v1411_v36  ;;  %v1574_v36 = vsel %vm1492_vm2, %v4012_v13, -inf  ;;  %v4028_v39 = vmul.f32 0.5, %v1294_v27 }
 0x1d6   : > { %5125 = vst [vmem:[#allocation39_spill] sm:$0xff] %v4026_v40  ;;  %v1598_v20 = vsel %vm1492_vm2, %v4026_v40, -inf }
 0x1d7   : > { %5124 = vst [vmem:[#allocation38_spill] sm:$0xff] %v4010_v9  ;;  %v1643_v41 = vsel %vm1492_vm2, %v4008_v45, -inf  ;;  %v1664_v5 = vsel %vm1492_vm2, %v4010_v9, -inf }
 0x1d8   : > { %1617 = vmax.xlane.f32.xlu0 %v1616_v50  ;;  %1593 = vmax.xlane.f32.xlu1 %v1592_v14  ;;  %v4024_v50 = vpop.f32.mrf.mxu1  ;;  %5126 = vst [vmem:[#allocation40_spill] sm:$0xff] %v4028_v39  ;;  %v4030_v14 = vmul.f32 0.5, %v999_v35  ;;  %v1238_v44 = vpop.f32.mrf.mxu0  ;;  %v4050_v35 = vmul.f32 0.5, %v1059_v21 }
 0x1d9   : > { %1551 = vmax.xlane.f32.xlu2 %v1550_v26  ;;  %v1619_v26 = vsel %vm1492_vm2, %v4028_v39, -inf  ;;  %v1239_v2 = vadd.f32 %v1238_v44, %v3772_v47 }
 0x1da   : > { %v4006_v62 = vpop.f32.mrf.mxu3  ;;  %v1355_v61 = vpop.f32.mrf.mxu2  ;;  %v1505_v27 = vsel %vm1492_vm2, %v4030_v14, -inf }
 0x1db   : > { %v1356_v17 = vadd.f32 %v1355_v61, %v3846_v37  ;;  %v4064_v47 = vmul.f32 0.5, %v1239_v2  ;;  %v1179_v2 = vadd.f32 %v3920_v46, %v3774_v48 }
 0x1e0   : > { %1644 = vmax.xlane.f32.xlu0 %v1643_v41  ;;  %1665 = vmax.xlane.f32.xlu1 %v1664_v5  ;;  %v4042_v41 = vpop.xlane.xlu2 %1494  ;;  %v1298_v61 = vpop.f32.mrf.mxu1 }
 0x1e1   : > { %1575 = vmax.xlane.f32.xlu2 %v1574_v36  ;;  %v1299_v34 = vadd.f32 %v1298_v61, %v3782_v60 }
 0x1e2   : > { %v1415_v31 = vpop.f32.mrf.mxu3  ;;  %v4044_v37 = vpop.f32.mrf.mxu2 }
 0x1e3   : > { %v1416_v63 = vadd.f32 %v1415_v31, %v3854_v0  ;;  %v4046_v0 = vmul.f32 0.5, %v1356_v17  ;;  %v4066_v60 = vmul.f32 0.5, %v1299_v34 }
 0x1e5   : > { %v4048_v5 = vmul.f32 0.5, %v1416_v63  ;;  %v1646_v31 = vsel %vm1492_vm2, %v4046_v0, -inf  ;;  %v1529_v63 = vsel %vm1492_vm2, %v4050_v35, -inf  ;;  %v1625_v61 = vsel %vm1492_vm2, %v4066_v60, -inf }
 0x1e7   : > { %v1670_v36 = vsel %vm1492_vm2, %v4048_v5, -inf }
 0x1e8   : > { %1599 = vmax.xlane.f32.xlu0 %v1598_v20  ;;  %1620 = vmax.xlane.f32.xlu1 %v1619_v26  ;;  %v1119_v20 = vadd.f32 %v3905_v24, %v3766_v42  ;;  %v4062_v26 = vpop.f32.mrf.mxu0  ;;  %v4068_v21 = vpop.xlane.xlu2 %1518 }
 0x1e9   : > { %1506 = vmax.xlane.f32.xlu2 %v1505_v27  ;;  %v1300_v34 = vpop.f32.mrf.mxu1 }
 0x1ea   : > { %v1418_v17 = vpop.f32.mrf.mxu3  ;;  %v4070_v44 = vmul.f32 0.5, %v1119_v20  ;;  %v1360_v27 = vpop.f32.mrf.mxu2  ;;  %v1301_v48 = vadd.f32 %v1300_v34, %v3794_v11 }
 0x1eb   : > { %v1361_v42 = vadd.f32 %v1360_v27, %v3861_v51  ;;  %v1419_v24 = vadd.f32 %v1418_v17, %v3859_v57 }
 0x1ec   : > { %v4104_v11 = vmul.f32 0.5, %v1301_v48 }
 0x1ed   : > { %v4084_v51 = vmul.f32 0.5, %v1361_v42  ;;  %v4086_v57 = vmul.f32 0.5, %v1419_v24  ;;  %v1001_v42 = vadd.f32 %v3900_v15, %v3706_v3 }
 0x1ef   : > { %v1652_v46 = vsel %vm1492_vm2, %v4084_v51, -inf  ;;  %v4108_v34 = vmul.f32 0.5, %v1001_v42 }
 0x1f0   : > { %1671 = vmax.xlane.f32.xlu0 %v1670_v36  ;;  %1647 = vmax.xlane.f32.xlu1 %v1646_v31  ;;  %v1601_v36 = vsel %vm1492_vm2, %v4064_v47, -inf  ;;  %v1553_v31 = vsel %vm1492_vm2, %v4070_v44, -inf  ;;  %v1243_v27 = vpop.f32.mrf.mxu0 }
 0x1f1   : > { %1530 = vmax.xlane.f32.xlu2 %v1529_v63  ;;  %v4088_v63 = vmul.f32 0.5, %v1179_v2  ;;  %v1244_v33 = vadd.f32 %v1243_v27, %v3798_v12  ;;  %v1508_v48 = vsel %vm1492_vm2, %v4108_v34, -inf }
 0x1f2   : > { %v4082_v20 = vpop.f32.mrf.mxu3 }
 0x1f3   : > { %v1577_v24 = vsel %vm1492_vm2, %v4088_v63, -inf  ;;  %v4102_v12 = vmul.f32 0.5, %v1244_v33  ;;  %v1061_v33 = vadd.f32 %v3909_v22, %v3713_v7 }
 0x1f5   : > { %5127 = vst [vmem:[#allocation41_spill] sm:$0xff] %v4102_v12 }
 0x1f8   : > { %1626 = vmax.xlane.f32.xlu0 %v1625_v61  ;;  %1602 = vmax.xlane.f32.xlu1 %v1601_v36  ;;  %v1673_v61 = vsel %vm1492_vm2, %v4086_v57, -inf  ;;  %v4100_v36 = vpop.f32.mrf.mxu1 }
 0x1f9   : > { %1554 = vmax.xlane.f32.xlu2 %v1553_v31  ;;  %v1363_v31 = vpop.f32.mrf.mxu2 }
 0x1fa   : > { %v1423_v27 = vpop.f32.mrf.mxu3  ;;  %v1364_v3 = vadd.f32 %v1363_v31, %v3867_v32  ;;  %v1245_v31 = vpop.f32.mrf.mxu0 }
 0x1fb   : > { %v1543_v17 = vpop.xlane.xlu2 %1542  ;;  %v1424_v15 = vadd.f32 %v1423_v27, %v3870_v23  ;;  %v1246_v4 = vadd.f32 %v1245_v31, %v3808_v25 }
 0x1fc   : > { %v4120_v42 = vmul.f32 0.5, %v1364_v3  ;;  %v1701_v59 = vsub.f32 %v3877_v49, %v1543_v17 }
 0x1fd   : > { %v4122_v32 = vmul.f32 0.5, %v1424_v15  ;;  %v1121_v15 = vadd.f32 %v3918_v29, %v3776_v52  ;;  %v4137_v17 = vmul.f32 0.5, %v1246_v4 }
 0x1fe   : > { %5128 = vst [vmem:[#allocation42_spill] sm:$0xff] %v4120_v42  ;;  %v1655_v3 = vsel %vm1492_vm2, %v4120_v42, -inf  ;;  %v1781_v49 = vmul.f32 1.442695, %v1701_v59  ;;  %v5131_v59 = vld [vmem:[#allocation25_spill] sm:$0xff]  ;;  %v5159_v42 = vld [vmem:[#allocation6_spill] sm:$0xff] }
 0x1ff   : > { %v1679_v22 = vsel %vm1492_vm2, %v4122_v32, -inf  ;;  %5129 = vst [vmem:[#allocation43_spill] sm:$0xff] %v4137_v17  ;;  %v1610_v4 = vsel %vm1492_vm2, %v4137_v17, -inf }
 0x200   : > { %1653 = vmax.xlane.f32.xlu0 %v1652_v46  ;;  %1674 = vmax.xlane.f32.xlu1 %v1673_v61  ;;  %v1607_v46 = vsel %vm1492_vm2, %v4102_v12, -inf  ;;  %v1628_v61 = vsel %vm1492_vm2, %v4104_v11, -inf  ;;  %v1305_v27 = vpop.f32.mrf.mxu1  ;;  %3206 = vpow2.f32 %v1781_v49 }
 0x201   : > { %1578 = vmax.xlane.f32.xlu2 %v1577_v24  ;;  %v4124_v24 = vmul.f32 0.5, %v1061_v33  ;;  %v1306_v7 = vadd.f32 %v1305_v27, %v3816_v38  ;;  %v1004_v27 = vadd.f32 %v5131_v59, %v3716_v8 }
 0x202   : > { %v1425_v33 = vpop.f32.mrf.mxu3 }
 0x203   : > { %v4106_v2 = vpop.xlane.xlu2 %1566  ;;  %v4139_v25 = vmul.f32 0.5, %v1306_v7  ;;  %v1426_v29 = vadd.f32 %v1425_v33, %v3874_v19 }
 0x205   : > { %5130 = vst [vmem:[#allocation44_spill] sm:$0xff] %v4139_v25  ;;  %v1634_v31 = vsel %vm1492_vm2, %v4139_v25, -inf }
 0x208   : > { %1608 = vmax.xlane.f32.xlu0 %v1607_v46  ;;  %1629 = vmax.xlane.f32.xlu1 %v1628_v61  ;;  %v1532_v46 = vsel %vm1492_vm2, %v4124_v24, -inf  ;;  %v4141_v61 = vmul.f32 0.5, %v1121_v15  ;;  %v5133_v15 = vld [vmem:[#allocation18_spill] sm:$0xff] }
 0x209   : > { %1509 = vmax.xlane.f32.xlu2 %v1508_v48  ;;  %v1693_v48 = vsub.f32 %v3831_v10, %v4068_v21  ;;  %v1525_v21 = vpop.xlane.xlu1 %1524 }
 0x20a   : > { %v1556_v7 = vsel %vm1492_vm2, %v4141_v61, -inf  ;;  %v1695_v8 = vsub.f32 %v5133_v15, %v1525_v21 }
 0x20b   : > { %v1498_v23 = vpop.xlane.xlu2 %1497  ;;  %v1765_v10 = vmul.f32 1.442695, %v1693_v48 }
 0x20c   : > { %v1686_v52 = vsub.f32 %v3887_v43, %v1498_v23  ;;  %v4155_v23 = vmul.f32 0.5, %v1426_v29  ;;  %v5136_v29 = vld [vmem:[#allocation26_spill] sm:$0xff]  ;;  %v1769_v59 = vmul.f32 1.442695, %v1695_v8 }
 0x20d   : > { %3208 = vpow2.f32 %v1765_v10  ;;  %v5140_v8 = vld [vmem:[#allocation10_spill] sm:$0xff] }
 0x20e   : > { %v1751_v43 = vmul.f32 1.442695, %v1686_v52  ;;  %5132 = vst [vmem:[#allocation25_spill] sm:$0xff] %v4155_v23  ;;  %v1682_v33 = vsel %vm1492_vm2, %v4155_v23, -inf  ;;  %v5135_v52 = vld [vmem:[#allocation2_spill] sm:$0xff] }
 0x20f   : > { %v5152_v23 = vld [vmem:[#allocation30_spill] sm:$0xff] }
 0x210   : > { %1680 = vmax.xlane.f32.xlu0 %v1679_v22  ;;  %1656 = vmax.xlane.f32.xlu1 %v1655_v3  ;;  %v4159_v22 = vpop.eup %3206  ;;  %v4161_v3 = vmul.f32 0.5, %v1004_v27  ;;  %3210 = vpow2.f32 %v1751_v43  ;;  %v5139_v43 = vld [vmem:[#allocation23_spill] sm:$0xff] }
 0x211   : > { %1533 = vmax.xlane.f32.xlu2 %v1532_v46  ;;  %v5134_v46 = vld [vmem:[#allocation22_spill] sm:$0xff]  ;;  %v1925_v48 = vsel %vm1492_vm2, %v4159_v22, 0.0  ;;  %3212 = vpow2.f32 %v1769_v59 }
 0x212   : > { %v1709_v49 = vsub.f32 %v5134_v46, %v4106_v2 }
 0x213   : > { %v1546_v38 = vpop.xlane.xlu2 %1545 }
 0x214   : > { %v1797_v27 = vmul.f32 1.442695, %v1709_v49  ;;  %v1702_v15 = vsub.f32 %v5139_v43, %v1546_v38  ;;  %v1124_v49 = vadd.f32 %v3929_v56, %v5140_v8  ;;  %v5142_v43 = vld [vmem:[#allocation11_spill] sm:$0xff] }
 0x216   : > { %3214 = vpow2.f32 %v1797_v27 }
 0x218   : > { %1635 = vmax.xlane.f32.xlu0 %v1634_v31  ;;  %1611 = vmax.xlane.f32.xlu1 %v1610_v4  ;;  %v1064_v31 = vadd.f32 %v5136_v29, %v5135_v52  ;;  %v1511_v4 = vsel %vm1492_vm2, %v4161_v3, -inf  ;;  %v1783_v52 = vmul.f32 1.442695, %v1702_v15 }
 0x219   : > { %1557 = vmax.xlane.f32.xlu2 %v1556_v7  ;;  %v4174_v7 = vpop.eup %3208 }
 0x21a   : > { %5137 = vst [vmem:[#allocation18_spill] sm:$0xff] %v4174_v7  ;;  %v4176_v10 = vpop.eup %3210  ;;  %v4178_v21 = vmul.f32 0.5, %v1064_v31  ;;  %v1901_v46 = vsel %vm1492_vm2, %v4174_v7, 0.0  ;;  %3216 = vpow2.f32 %v1783_v52 }
 0x21b   : > { %v4157_v19 = vpop.xlane.xlu2 %1569  ;;  %5138 = vst [vmem:[#allocation22_spill] sm:$0xff] %v4176_v10  ;;  %v4189_v29 = vpop.eup %3212 }
 0x21c   : > { %v4191_v38 = vpop.eup %3214  ;;  %v1907_v27 = vsel %vm1492_vm2, %v4189_v29, 0.0 }
 0x21d   : > { %5141 = vst [vmem:[#allocation2_spill] sm:$0xff] %v4191_v38  ;;  %v1949_v56 = vsel %vm1492_vm2, %v4191_v38, 0.0 }
 0x220   : > { %1683 = vmax.xlane.f32.xlu1 %v1682_v33  ;;  %1926 = vadd.xlane.f32.xlu0 %v1925_v48  ;;  %v1880_v33 = vsel %vm1492_vm2, %v4176_v10, 0.0  ;;  %v1535_v48 = vsel %vm1492_vm2, %v4178_v21, -inf }
 0x221   : > { %1512 = vmax.xlane.f32.xlu2 %v1511_v4  ;;  %v4193_v4 = vmul.f32 0.5, %v1124_v49 }
 0x223   : > { %v1501_v2 = vpop.xlane.xlu2 %1500  ;;  %v1559_v15 = vsel %vm1492_vm2, %v4193_v4, -inf }
 0x224   : > { %v1687_v59 = vsub.f32 %v3922_v16, %v1501_v2  ;;  %v4206_v16 = vpop.eup %3216 }
 0x228   : > { %1902 = vadd.xlane.f32.xlu1 %v1901_v46  ;;  %1881 = vadd.xlane.f32.xlu0 %v1880_v33  ;;  %v1184_v46 = vadd.f32 %v3947_v18, %v5142_v43  ;;  %v1753_v33 = vmul.f32 1.442695, %v1687_v59  ;;  %v1928_v43 = vsel %vm1492_vm2, %v4206_v16, 0.0 }
 0x229   : > { %1536 = vmax.xlane.f32.xlu2 %v1535_v48 }
 0x22a   : > { %v4208_v2 = vmul.f32 0.5, %v1184_v46  ;;  %3218 = vpow2.f32 %v1753_v33  ;;  %v4218_v46 = vpop.xlane.xlu0 %1521 }
 0x22b   : > { %v1549_v31 = vpop.xlane.xlu2 %1548  ;;  %v4204_v8 = vpop.xlane.xlu1 %1581 }
 0x22c   : > { %v1703_v52 = vsub.f32 %v3931_v58, %v1549_v31  ;;  %v1583_v59 = vsel %vm1492_vm2, %v4208_v2, -inf }
 0x22e   : > { %v1785_v38 = vmul.f32 1.442695, %v1703_v52 }
 0x230   : > { %1950 = vadd.xlane.f32.xlu1 %v1949_v56  ;;  %1908 = vadd.xlane.f32.xlu0 %v1907_v27  ;;  %v5143_v56 = vld [vmem:[#allocation3_spill] sm:$0xff]  ;;  %v4224_v58 = vpop.eup %3218 }
 0x231   : > { %1560 = vmax.xlane.f32.xlu2 %v1559_v15  ;;  %v5144_v27 = vld [vmem:[#allocation27_spill] sm:$0xff]  ;;  %5145 = vst [vmem:[#allocation26_spill] sm:$0xff] %v4224_v58 }
 0x232   : > { %v1006_v15 = vadd.f32 %v5144_v27, %v5143_v56  ;;  %v5147_v56 = vld [vmem:[#allocation29_spill] sm:$0xff] }
 0x233   : > { %v1573_v49 = vpop.xlane.xlu2 %1572 }
 0x234   : > { %v1711_v48 = vsub.f32 %v3949_v1, %v1573_v49  ;;  %v4226_v31 = vmul.f32 0.5, %v1006_v15 }
 0x236   : > { %v1801_v18 = vmul.f32 1.442695, %v1711_v48  ;;  %v1883_v48 = vsel %vm1492_vm2, %v4224_v58, 0.0  ;;  %v1514_v27 = vsel %vm1492_vm2, %v4226_v31, -inf }
 0x238   : > { %3220 = vpow2.f32 %v1801_v18  ;;  %1929 = vadd.xlane.f32.xlu1 %v1928_v43  ;;  %v5146_v43 = vld [vmem:[#allocation4_spill] sm:$0xff] }
 0x239   : > { %1584 = vmax.xlane.f32.xlu2 %v1583_v59  ;;  %3222 = vpow2.f32 %v1785_v38  ;;  %v1066_v52 = vadd.f32 %v5147_v56, %v5146_v43  ;;  %v5151_v56 = vld [vmem:[#allocation12_spill] sm:$0xff] }
 0x23b   : > { %v4220_v1 = vpop.xlane.xlu1 %1587  ;;  %v4222_v33 = vpop.xlane.xlu2 %1503  ;;  %v4244_v7 = vmul.f32 0.5, %v1066_v52 }
 0x23e   : > { %v4228_v49 = vpop.eup %3220 }
 0x23f   : > { %v1955_v18 = vsel %vm1492_vm2, %v4228_v49, 0.0  ;;  %v4242_v38 = vpop.eup %3222 }
 0x240   : > { %1884 = vadd.xlane.f32.xlu1 %v1883_v48  ;;  %1956 = vadd.xlane.f32.xlu0 %v1955_v18  ;;  %5150 = vst [vmem:[#allocation11_spill] sm:$0xff] %v4242_v38  ;;  %v1931_v43 = vsel %vm1492_vm2, %v4242_v38, 0.0  ;;  %v1126_v48 = vadd.f32 %v5152_v23, %v5151_v56  ;;  %v1538_v18 = vsel %vm1492_vm2, %v4244_v7, -inf  ;;  %v5156_v38 = vld [vmem:[#allocation31_spill] sm:$0xff] }
 0x241   : > { %1515 = vmax.xlane.f32.xlu2 %v1514_v27 }
 0x243   : > { %v4238_v15 = vpop.xlane.xlu1 %1638  ;;  %v4240_v59 = vpop.xlane.xlu0 %1662 }
 0x244   : > { %5148 = vst [vmem:[#allocation23_spill] sm:$0xff] %v4238_v15  ;;  %v1528_v58 = vpop.xlane.xlu2 %1527 }
 0x245   : > { %5149 = vst [vmem:[#allocation10_spill] sm:$0xff] %v4240_v59  ;;  %v1696_v39 = vsub.f32 %v3974_v28, %v1528_v58  ;;  %v4257_v59 = vmul.f32 0.5, %v1126_v48  ;;  %v5155_v58 = vld [vmem:[#allocation5_spill] sm:$0xff] }
 0x246   : > { %v1229_v9 = vadd.f32 %v5156_v38, %v5155_v58  ;;  %v5160_v38 = vld [vmem:[#allocation32_spill] sm:$0xff] }
 0x247   : > { %v1771_v10 = vmul.f32 1.442695, %v1696_v39  ;;  %v1562_v23 = vsel %vm1492_vm2, %v4257_v59, -inf  ;;  %v1289_v58 = vadd.f32 %v5160_v38, %v5159_v42 }
 0x248   : > { %1932 = vadd.xlane.f32.xlu1 %v1931_v43  ;;  %v4273_v48 = vmul.f32 0.5, %v1229_v9 }
 0x249   : > { %1539 = vmax.xlane.f32.xlu2 %v1538_v18  ;;  %3224 = vpow2.f32 %v1771_v10 }
 0x24a   : > { %5158 = vst [vmem:[#allocation29_spill] sm:$0xff] %v4273_v48 }
 0x24b   : > { %v4253_v27 = vpop.xlane.xlu0 %1617  ;;  %v4255_v52 = vpop.xlane.xlu1 %1593 }
 0x24c   : > { %5153 = vst [vmem:[#allocation3_spill] sm:$0xff] %v4253_v27  ;;  %v4259_v28 = vpop.xlane.xlu2 %1551 }
 0x24d   : > { %5154 = vst [vmem:[#allocation27_spill] sm:$0xff] %v4255_v52 }
 0x24f   : > { %v4261_v39 = vpop.eup %3224 }
 0x250   : > { %v1910_v10 = vsel %vm1492_vm2, %v4261_v39, 0.0 }
 0x251   : > { %1563 = vmax.xlane.f32.xlu2 %v1562_v23  ;;  %1911 = vadd.xlane.f32.xlu1 %v1910_v10  ;;  %v1589_v23 = vsel %vm1492_vm2, %v4273_v48, -inf  ;;  %v4282_v10 = vmul.f32 0.5, %v1289_v58 }
 0x253   : > { %v4269_v43 = vpop.xlane.xlu0 %1644  ;;  %v4271_v56 = vpop.xlane.xlu1 %1665  ;;  %5162 = vst [vmem:[#allocation30_spill] sm:$0xff] %v4282_v10 }
 0x254   : > { %5157 = vst [vmem:[#allocation4_spill] sm:$0xff] %v4271_v56  ;;  %v1576_v18 = vpop.xlane.xlu2 %1575 }
 0x255   : > { %v1712_v27 = vsub.f32 %v4012_v13, %v1576_v18  ;;  %v1613_v18 = vsel %vm1492_vm2, %v4282_v10, -inf }
 0x257   : > { %v1803_v52 = vmul.f32 1.442695, %v1712_v27  ;;  %v5164_v27 = vld [vmem:[#allocation14_spill] sm:$0xff] }
 0x258   : > { %v1351_v42 = vadd.f32 %v3969_v55, %v5164_v27  ;;  %v5167_v55 = vld [vmem:[#allocation7_spill] sm:$0xff] }
 0x259   : > { %1590 = vmax.xlane.f32.xlu2 %v1589_v23  ;;  %3226 = vpow2.f32 %v1803_v52 }
 0x25a   : > { %v4297_v58 = vmul.f32 0.5, %v1351_v42 }
 0x25b   : > { %v4280_v54 = vpop.xlane.xlu1 %1620  ;;  %v4284_v56 = vpop.xlane.xlu0 %1599 }
 0x25c   : > { %5161 = vst [vmem:[#allocation12_spill] sm:$0xff] %v4280_v54  ;;  %v1507_v15 = vpop.xlane.xlu2 %1506  ;;  %v1640_v27 = vsel %vm1492_vm2, %v4297_v58, -inf  ;;  %v5169_v54 = vld [vmem:[#allocation17_spill] sm:$0xff] }
 0x25d   : > { %5163 = vst [vmem:[#allocation5_spill] sm:$0xff] %v4284_v56  ;;  %v1689_v9 = vsub.f32 %v4030_v14, %v1507_v15  ;;  %v1414_v40 = vadd.f32 %v4006_v62, %v5169_v54  ;;  %v5173_v56 = vld [vmem:[#allocation19_spill] sm:$0xff] }
 0x25e   : > { %5165 = vst [vmem:[#allocation31_spill] sm:$0xff] %v4297_v58 }
 0x25f   : > { %v1757_v25 = vmul.f32 1.442695, %v1689_v9  ;;  %v4287_v13 = vpop.eup %3226  ;;  %v1234_v9 = vadd.f32 %v3988_v6, %v5167_v55 }
 0x260   : > { %v1958_v52 = vsel %vm1492_vm2, %v4287_v13, 0.0 }
 0x261   : > { %1614 = vmax.xlane.f32.xlu2 %v1613_v18  ;;  %3228 = vpow2.f32 %v1757_v25  ;;  %1959 = vadd.xlane.f32.xlu1 %v1958_v52  ;;  %v4313_v42 = vmul.f32 0.5, %v1234_v9 }
 0x263   : > { %v4295_v38 = vpop.xlane.xlu1 %1647  ;;  %v4301_v15 = vpop.xlane.xlu0 %1671  ;;  %5168 = vst [vmem:[#allocation32_spill] sm:$0xff] %v4313_v42  ;;  %v1595_v6 = vsel %vm1492_vm2, %v4313_v42, -inf }
 0x264   : > { %v4299_v14 = vpop.xlane.xlu2 %1530 }
 0x267   : > { %v4303_v23 = vpop.eup %3228 }
 0x268   : > { %5166 = vst [vmem:[#allocation6_spill] sm:$0xff] %v4303_v23  ;;  %v1889_v25 = vsel %vm1492_vm2, %v4303_v23, 0.0 }
 0x269   : > { %1641 = vmax.xlane.f32.xlu2 %v1640_v27  ;;  %1890 = vadd.xlane.f32.xlu0 %v1889_v25  ;;  %v4324_v25 = vmul.f32 0.5, %v1414_v40 }
 0x26b   : > { %v4311_v18 = vpop.xlane.xlu1 %1602  ;;  %v4320_v55 = vpop.xlane.xlu0 %1626  ;;  %v1667_v54 = vsel %vm1492_vm2, %v4324_v25, -inf }
 0x26c   : > { %v1555_v52 = vpop.xlane.xlu2 %1554 }
 0x26d   : > { %v1705_v48 = vsub.f32 %v4070_v44, %v1555_v52  ;;  %v5171_v44 = vld [vmem:[#allocation8_spill] sm:$0xff] }
 0x26f   : > { %v1789_v10 = vmul.f32 1.442695, %v1705_v48  ;;  %v1296_v48 = vadd.f32 %v4024_v50, %v5171_v44  ;;  %v1359_v50 = vadd.f32 %v4044_v37, %v5173_v56  ;;  %v5177_v56 = vld [vmem:[#allocation28_spill] sm:$0xff] }
 0x271   : > { %1596 = vmax.xlane.f32.xlu2 %v1595_v6  ;;  %3230 = vpow2.f32 %v1789_v10  ;;  %v4340_v40 = vmul.f32 0.5, %v1296_v48 }
 0x273   : > { %v4322_v27 = vpop.xlane.xlu1 %1674  ;;  %v4336_v10 = vpop.xlane.xlu0 %1653  ;;  %5172 = vst [vmem:[#allocation7_spill] sm:$0xff] %v4340_v40  ;;  %v1622_v44 = vsel %vm1492_vm2, %v4340_v40, -inf  ;;  %v5180_v40 = vld [vmem:[#allocation20_spill] sm:$0xff] }
 0x274   : > { %v4326_v9 = vpop.xlane.xlu2 %1578 }
 0x277   : > { %v4328_v23 = vpop.eup %3230 }
 0x278   : > { %5170 = vst [vmem:[#allocation14_spill] sm:$0xff] %v4328_v23  ;;  %v1937_v62 = vsel %vm1492_vm2, %v4328_v23, 0.0 }
 0x279   : > { %1668 = vmax.xlane.f32.xlu2 %v1667_v54  ;;  %1938 = vadd.xlane.f32.xlu0 %v1937_v62  ;;  %v4349_v62 = vmul.f32 0.5, %v1359_v50 }
 0x27b   : > { %v4338_v52 = vpop.xlane.xlu1 %1629  ;;  %v4351_v17 = vpop.xlane.xlu0 %1608 }
 0x27c   : > { %v1510_v6 = vpop.xlane.xlu2 %1509 }
 0x27d   : > { %v1690_v58 = vsub.f32 %v4108_v34, %v1510_v6  ;;  %v1714_v6 = vsub.f32 %v5177_v56, %v4204_v8 }
 0x27f   : > { %v1759_v42 = vmul.f32 1.442695, %v1690_v58  ;;  %v5176_v58 = vld [vmem:[#allocation9_spill] sm:$0xff] }
 0x280   : > { %v1241_v37 = vadd.f32 %v4062_v26, %v5176_v58 }
 0x281   : > { %1623 = vmax.xlane.f32.xlu2 %v1622_v44  ;;  %3232 = vpow2.f32 %v1759_v42  ;;  %v1649_v42 = vsel %vm1492_vm2, %v4349_v62, -inf }
 0x283   : > { %v4347_v54 = vpop.xlane.xlu1 %1656  ;;  %v4369_v58 = vpop.xlane.xlu0 %1680 }
 0x284   : > { %5174 = vst [vmem:[#allocation17_spill] sm:$0xff] %v4347_v54  ;;  %v1534_v23 = vpop.xlane.xlu2 %1533 }
 0x285   : > { %v1698_v48 = vsub.f32 %v4124_v24, %v1534_v23  ;;  %v4366_v24 = vmul.f32 0.5, %v1241_v37  ;;  %v1807_v23 = vmul.f32 1.442695, %v1714_v6 }
 0x287   : > { %v1775_v12 = vmul.f32 1.442695, %v1698_v48  ;;  %v4354_v34 = vpop.eup %3232  ;;  %5178 = vst [vmem:[#allocation19_spill] sm:$0xff] %v4366_v24 }
 0x288   : > { %5175 = vst [vmem:[#allocation8_spill] sm:$0xff] %v4354_v34  ;;  %v1892_v50 = vsel %vm1492_vm2, %v4354_v34, 0.0 }
 0x289   : > { %1650 = vmax.xlane.f32.xlu2 %v1649_v42  ;;  %3234 = vpow2.f32 %v1775_v12  ;;  %1893 = vadd.xlane.f32.xlu1 %v1892_v50  ;;  %v1421_v42 = vadd.f32 %v4082_v20, %v5180_v40  ;;  %v1604_v12 = vsel %vm1492_vm2, %v4366_v24, -inf  ;;  %v5184_v20 = vld [vmem:[#allocation13_spill] sm:$0xff] }
 0x28a   : > { %3236 = vpow2.f32 %v1807_v23  ;;  %v1304_v40 = vadd.f32 %v4100_v36, %v5184_v20  ;;  %v1365_v36 = vpop.f32.mrf.mxu2 }
 0x28b   : > { %v4364_v44 = vpop.xlane.xlu1 %1611 }
 0x28c   : > { %v1558_v48 = vpop.xlane.xlu2 %1557 }
 0x28d   : > { %v1706_v26 = vsub.f32 %v4141_v61, %v1558_v48  ;;  %v4381_v61 = vmul.f32 0.5, %v1421_v42 }
 0x28f   : > { %v1791_v8 = vmul.f32 1.442695, %v1706_v26  ;;  %v4371_v56 = vpop.eup %3234  ;;  %v1676_v23 = vsel %vm1492_vm2, %v4381_v61, -inf }
 0x290   : > { %5179 = vst [vmem:[#allocation9_spill] sm:$0xff] %v4371_v56  ;;  %v1916_v37 = vsel %vm1492_vm2, %v4371_v56, 0.0  ;;  %v4385_v48 = vpop.eup %3236  ;;  %v4401_v56 = vmul.f32 0.5, %v1304_v40 }
 0x291   : > { %1605 = vmax.xlane.f32.xlu2 %v1604_v12  ;;  %3238 = vpow2.f32 %v1791_v8  ;;  %1917 = vadd.xlane.f32.xlu0 %v1916_v37  ;;  %5182 = vst [vmem:[#allocation20_spill] sm:$0xff] %v4385_v48  ;;  %v4393_v12 = vpop.xlane.xlu0 %1635  ;;  %v1964_v8 = vsel %vm1492_vm2, %v4385_v48, 0.0 }
 0x292   : > { %5185 = vst [vmem:[#allocation13_spill] sm:$0xff] %v4393_v12  ;;  %v5188_v12 = vld [vmem:[#allocation21_spill] sm:$0xff]  ;;  %v1631_v48 = vsel %vm1492_vm2, %v4401_v56, -inf }
 0x293   : > { %v4379_v6 = vpop.xlane.xlu1 %1683  ;;  %v1366_v24 = vadd.f32 %v1365_v36, %v5188_v12 }
 0x294   : > { %5181 = vst [vmem:[#allocation28_spill] sm:$0xff] %v4379_v6  ;;  %v4383_v50 = vpop.xlane.xlu2 %1512  ;;  %v5187_v6 = vld [vmem:[#allocation15_spill] sm:$0xff] }
 0x295   : > { %v1685_v54 = vsub.f32 %v5187_v6, %v4042_v41  ;;  %v4411_v40 = vmul.f32 0.5, %v1366_v24  ;;  %v5191_v41 = vld [vmem:[#allocation16_spill] sm:$0xff] }
 0x297   : > { %v4387_v26 = vpop.eup %3238  ;;  %v1658_v6 = vsel %vm1492_vm2, %v4411_v40, -inf }
 0x298   : > { %5183 = vst [vmem:[#allocation45_spill] sm:$0xff] %v4387_v26  ;;  %v1940_v42 = vsel %vm1492_vm2, %v4387_v26, 0.0 }
 0x299   : > { %1677 = vmax.xlane.f32.xlu2 %v1676_v23  ;;  %1965 = vadd.xlane.f32.xlu0 %v1964_v8  ;;  %v1749_v8 = vmul.f32 1.442695, %v1685_v54 }
 0x29a   : > { %1941 = vadd.xlane.f32.xlu1 %v1940_v42  ;;  %v1927_v42 = vpop.xlane.xlu0 %1926 }
 0x29b   : > { %v4399_v37 = vpop.xlane.xlu1 %1902 }
 0x29c   : > { %5186 = vst [vmem:[#allocation46_spill] sm:$0xff] %v4399_v37  ;;  %v1537_v34 = vpop.xlane.xlu2 %1536 }
 0x29d   : > { %v1699_v20 = vsub.f32 %v4178_v21, %v1537_v34  ;;  %v1694_v34 = vsub.f32 %v5191_v41, %v4218_v46 }
 0x29f   : > { %v1777_v23 = vmul.f32 1.442695, %v1699_v20 }
 0x2a1   : > { %3240 = vpow2.f32 %v1777_v23  ;;  %1632 = vmax.xlane.f32.xlu2 %v1631_v48  ;;  %v1767_v48 = vmul.f32 1.442695, %v1694_v34 }
 0x2a2   : > { %3242 = vrcp.f32 %v1927_v42 }
 0x2a3   : > { %v4409_v26 = vpop.xlane.xlu1 %1950  ;;  %3244 = vpow2.f32 %v1749_v8  ;;  %v5192_v8 = vld [vmem:[#allocation24_spill] sm:$0xff] }
 0x2a4   : > { %5189 = vst [vmem:[#allocation15_spill] sm:$0xff] %v4409_v26  ;;  %v4413_v37 = vpop.xlane.xlu2 %1560  ;;  %v1710_v46 = vsub.f32 %v5192_v8, %v4157_v19 }
 0x2a7   : > { %v4415_v21 = vpop.eup %3240 }
 0x2a8   : > { %5190 = vst [vmem:[#allocation21_spill] sm:$0xff] %v4415_v21  ;;  %v1919_v54 = vsel %vm1492_vm2, %v4415_v21, 0.0  ;;  %v3243_v12 = vpop.eup %3242 }
 0x2a9   : > { %1659 = vmax.xlane.f32.xlu2 %v1658_v6  ;;  %1920 = vadd.xlane.f32.xlu1 %v1919_v54  ;;  %v4423_v20 = vpop.eup %3244  ;;  %v2149_v41 = vmul.f32 %v3243_v12, %v4159_v22  ;;  %v1799_v54 = vmul.f32 1.442695, %v1710_v46 }
 0x2aa   : > { %v1877_v6 = vsel %vm1492_vm2, %v4423_v20, 0.0 }
 0x2ab   : > { %v1930_v24 = vpop.xlane.xlu1 %1929 }
 0x2ac   : > { %3246 = vrcp.f32 %v1930_v24  ;;  %v1585_v36 = vpop.xlane.xlu2 %1584  ;;  %v4431_v24 = vpop.xlane.xlu0 %1881 }
 0x2ad   : > { %v1715_v23 = vsub.f32 %v4208_v2, %v1585_v36  ;;  %3248 = vpow2.f32 %v1767_v48  ;;  %v2213_v36 = vpack.c.bf16 %v2149_v41, %v2149_v41 }
 0x2af   : > { %v1809_v42 = vmul.f32 1.442695, %v1715_v23  ;;  %v1688_v23 = vsub.f32 %v3958_v30, %v4222_v33  ;;  %v4443_v46 = vunpack.c.l.b16 %v2213_v36 }
 0x2b1   : > { %3250 = vpow2.f32 %v1809_v42  ;;  %1878 = vadd.xlane.f32.xlu2 %v1877_v6  ;;  %5193 = vst [vmem:[#allocation16_spill] sm:$0xff] %v4443_v46 }
 0x2b2   : > { %v3247_v34 = vpop.eup %3246  ;;  %3252 = vpow2.f32 %v1799_v54 }
 0x2b3   : > { %v4433_v21 = vpop.xlane.xlu1 %1884  ;;  %v2150_v2 = vmul.f32 %v3247_v34, %v4206_v16  ;;  %v4436_v19 = vpop.eup %3248 }
 0x2b4   : > { %v1516_v26 = vpop.xlane.xlu2 %1515  ;;  %v1904_v16 = vsel %vm1492_vm2, %v4436_v19, 0.0  ;;  %v1909_v34 = vpop.xlane.xlu0 %1908 }
 0x2b5   : > { %v1692_v48 = vsub.f32 %v4226_v31, %v1516_v26  ;;  %v2214_v22 = vpack.c.bf16 %v2150_v2, %v2150_v2  ;;  %v1755_v26 = vmul.f32 1.442695, %v1688_v23  ;;  %v1704_v2 = vsub.f32 %v3994_v53, %v4259_v28 }
 0x2b6   : > { %v1736_v53 = vsub.f32 %v4046_v0, %v4295_v38  ;;  %v1697_v28 = vsub.f32 %v4050_v35, %v4299_v14  ;;  %v1729_v0 = vsub.f32 %v4066_v60, %v4320_v55 }
 0x2b7   : > { %v4439_v12 = vpop.eup %3250  ;;  %v1763_v8 = vmul.f32 1.442695, %v1692_v48  ;;  %v4445_v42 = vunpack.c.l.b16 %v2214_v22  ;;  %v1787_v22 = vmul.f32 1.442695, %v1704_v2 }
 0x2b8   : > { %v1967_v41 = vsel %vm1492_vm2, %v4439_v12, 0.0  ;;  %v4455_v30 = vpop.eup %3252  ;;  %v1773_v31 = vmul.f32 1.442695, %v1697_v28  ;;  %v1837_v60 = vmul.f32 1.442695, %v1729_v0 }
 0x2b9   : > { %3254 = vpow2.f32 %v1763_v8  ;;  %1905 = vadd.xlane.f32.xlu2 %v1904_v16  ;;  %1968 = vadd.xlane.f32.xlu1 %v1967_v41  ;;  %v1952_v36 = vsel %vm1492_vm2, %v4455_v30, 0.0 }
 0x2ba   : > { %3256 = vpow2.f32 %v1755_v26 }
 0x2bb   : > { %v4453_v6 = vpop.xlane.xlu1 %1932  ;;  %3258 = vrcp.f32 %v1909_v34 }
 0x2bc   : > { %v4457_v33 = vpop.xlane.xlu2 %1539  ;;  %v1957_v38 = vpop.xlane.xlu0 %1956 }
 0x2bf   : > { %v4459_v54 = vpop.eup %3254 }
 0x2c0   : > { %v1898_v48 = vsel %vm1492_vm2, %v4459_v54, 0.0  ;;  %v4467_v8 = vpop.eup %3256 }
 0x2c1   : > { %1953 = vadd.xlane.f32.xlu2 %v1952_v36  ;;  %1899 = vadd.xlane.f32.xlu0 %v1898_v48  ;;  %v3259_v26 = vpop.eup %3258  ;;  %v1886_v36 = vsel %vm1492_vm2, %v4467_v8, 0.0  ;;  %v1851_v48 = vmul.f32 1.442695, %v1736_v53 }
 0x2c2   : > { %v2143_v2 = vmul.f32 %v3259_v26, %v4189_v29  ;;  %v1713_v29 = vsub.f32 %v4088_v63, %v4326_v9 }
 0x2c4   : > { %v1564_v23 = vpop.xlane.xlu2 %1563  ;;  %v1912_v16 = vpop.xlane.xlu1 %1911  ;;  %v2207_v14 = vpack.c.bf16 %v2143_v2, %v2143_v2  ;;  %v1805_v53 = vmul.f32 1.442695, %v1713_v29  ;;  %v1691_v2 = vsub.f32 %v4161_v3, %v4383_v50 }
 0x2c5   : > { %v1708_v41 = vsub.f32 %v4257_v59, %v1564_v23  ;;  %3260 = vrcp.f32 %v1912_v16 }
 0x2c6   : > { %3262 = vpow2.f32 %v1787_v22 }
 0x2c7   : > { %v1795_v34 = vmul.f32 1.442695, %v1708_v41 }
 0x2c9   : > { %3264 = vpow2.f32 %v1795_v34  ;;  %1887 = vadd.xlane.f32.xlu2 %v1886_v36 }
 0x2ca   : > { %3266 = vpow2.f32 %v1851_v48 }
 0x2cb   : > { %v3261_v59 = vpop.eup %3260  ;;  %3268 = vpow2.f32 %v1773_v31 }
 0x2cc   : > { %v4477_v23 = vpop.xlane.xlu2 %1590  ;;  %v4479_v46 = vpop.eup %3262  ;;  %v2144_v35 = vmul.f32 %v3261_v59, %v4261_v39  ;;  %3270 = vrcp.f32 %v1957_v38  ;;  %v4492_v39 = vunpack.c.l.b16 %v2207_v14 }
 0x2cd   : > { %v1934_v41 = vsel %vm1492_vm2, %v4479_v46, 0.0  ;;  %3272 = vpow2.f32 %v1837_v60 }
 0x2ce   : > { %v2208_v16 = vpack.c.bf16 %v2144_v35, %v2144_v35  ;;  %v1761_v35 = vmul.f32 1.442695, %v1691_v2 }
 0x2cf   : > { %v4484_v22 = vpop.eup %3264 }
 0x2d0   : > { %v1946_v26 = vsel %vm1492_vm2, %v4484_v22, 0.0  ;;  %v4494_v55 = vunpack.c.l.b16 %v2208_v16  ;;  %v4498_v63 = vpop.eup %3266 }
 0x2d1   : > { %1935 = vadd.xlane.f32.xlu2 %v1934_v41  ;;  %1947 = vadd.xlane.f32.xlu0 %v1946_v26  ;;  %5194 = vst [vmem:[#allocation24_spill] sm:$0xff] %v4498_v63  ;;  %v4502_v28 = vpop.eup %3268  ;;  %v2030_v59 = vsel %vm1492_vm2, %v4498_v63, 0.0  ;;  %v1707_v41 = vsub.f32 %v4193_v4, %v4413_v37  ;;  %v1700_v37 = vsub.f32 %v4244_v7, %v4457_v33 }
 0x2d2   : > { %v3271_v36 = vpop.eup %3270  ;;  %v1913_v48 = vsel %vm1492_vm2, %v4502_v28, 0.0 }
 0x2d3   : > { %v2159_v0 = vmul.f32 %v3271_v36, %v4228_v49  ;;  %v4511_v38 = vpop.eup %3272  ;;  %v1793_v36 = vmul.f32 1.442695, %v1707_v41  ;;  %v1721_v41 = vsub.f32 %v4064_v47, %v4311_v18  ;;  %v1730_v47 = vsub.f32 %v4104_v11, %v4338_v52 }
 0x2d4   : > { %v4500_v9 = vpop.xlane.xlu2 %1614  ;;  %v1960_v34 = vpop.xlane.xlu1 %1959  ;;  %v2009_v49 = vsel %vm1492_vm2, %v4511_v38, 0.0  ;;  %v1744_v11 = vsub.f32 %v4048_v5, %v4301_v15  ;;  %v1738_v52 = vsub.f32 %v4084_v51, %v4336_v10  ;;  %v1745_v51 = vsub.f32 %v4086_v57, %v4322_v27 }
 0x2d5   : > { %3274 = vrcp.f32 %v1960_v34  ;;  %v2223_v50 = vpack.c.bf16 %v2159_v0, %v2159_v0  ;;  %v1747_v10 = vsub.f32 %v4122_v32, %v4369_v58  ;;  %v5198_v32 = vld [vmem:[#allocation41_spill] sm:$0xff] }
 0x2d6   : > { %3276 = vpow2.f32 %v1805_v53  ;;  %v1723_v58 = vsub.f32 %v5198_v32, %v4351_v17 }
 0x2d7   : > { %3278 = vpow2.f32 %v1761_v35  ;;  %v4524_v53 = vunpack.c.l.b16 %v2223_v50  ;;  %v1873_v57 = vmul.f32 1.442695, %v1747_v10  ;;  %v5202_v10 = vld [vmem:[#allocation5_spill] sm:$0xff] }
 0x2d8   : > { %3280 = vpow2.f32 %v1793_v36 }
 0x2d9   : > { %1914 = vadd.xlane.f32.xlu2 %v1913_v48  ;;  %2031 = vadd.xlane.f32.xlu0 %v2030_v59  ;;  %v1779_v59 = vmul.f32 1.442695, %v1700_v37 }
 0x2db   : > { %v3275_v14 = vpop.eup %3274  ;;  %3282 = vpow2.f32 %v1779_v59  ;;  %v1839_v59 = vmul.f32 1.442695, %v1730_v47 }
 0x2dc   : > { %v4513_v29 = vpop.xlane.xlu2 %1641  ;;  %v4515_v16 = vpop.eup %3276  ;;  %v2160_v3 = vmul.f32 %v3275_v14, %v4287_v13 }
 0x2dd   : > { %v1961_v60 = vsel %vm1492_vm2, %v4515_v16, 0.0  ;;  %v4532_v4 = vpop.eup %3278 }
 0x2de   : > { %v2224_v26 = vpack.c.bf16 %v2160_v3, %v2160_v3  ;;  %v1895_v48 = vsel %vm1492_vm2, %v4532_v4, 0.0  ;;  %v4538_v35 = vpop.eup %3280  ;;  %v5195_v3 = vld [vmem:[#allocation33_spill] sm:$0xff] }
 0x2df   : > { %v1716_v50 = vsub.f32 %v5195_v3, %v4220_v1  ;;  %v1943_v7 = vsel %vm1492_vm2, %v4538_v35, 0.0  ;;  %v1735_v1 = vsub.f32 %v4008_v45, %v4269_v43 }
 0x2e0   : > { %v4526_v34 = vunpack.c.l.b16 %v2224_v26 }
 0x2e1   : > { %1962 = vadd.xlane.f32.xlu2 %v1961_v60  ;;  %2010 = vadd.xlane.f32.xlu0 %v2009_v49  ;;  %v1811_v33 = vmul.f32 1.442695, %v1716_v50  ;;  %v1821_v60 = vmul.f32 1.442695, %v1721_v41  ;;  %v4549_v36 = vpop.eup %3282 }
 0x2e2   : > { %v1922_v18 = vsel %vm1492_vm2, %v4549_v36, 0.0 }
 0x2e4   : > { %v4530_v2 = vpop.xlane.xlu2 %1596 }
 0x2e9   : > { %1896 = vadd.xlane.f32.xlu2 %v1895_v48  ;;  %v1849_v48 = vmul.f32 1.442695, %v1735_v1 }
 0x2ec   : > { %v1669_v0 = vpop.xlane.xlu2 %1668 }
 0x2ed   : > { %v1743_v14 = vsub.f32 %v4324_v25, %v1669_v0 }
 0x2ef   : > { %v1865_v26 = vmul.f32 1.442695, %v1743_v14 }
 0x2f1   : > { %3284 = vpow2.f32 %v1865_v26  ;;  %1944 = vadd.xlane.f32.xlu2 %v1943_v7  ;;  %v1867_v26 = vmul.f32 1.442695, %v1744_v11  ;;  %v5200_v11 = vld [vmem:[#allocation19_spill] sm:$0xff] }
 0x2f2   : > { %3286 = vpow2.f32 %v1811_v33 }
 0x2f3   : > { %3288 = vpow2.f32 %v1821_v60 }
 0x2f4   : > { %v4547_v49 = vpop.xlane.xlu2 %1623  ;;  %3290 = vpow2.f32 %v1849_v48 }
 0x2f5   : > { %3292 = vpow2.f32 %v1839_v59 }
 0x2f7   : > { %v4553_v25 = vpop.eup %3284 }
 0x2f8   : > { %5196 = vst [vmem:[#allocation33_spill] sm:$0xff] %v4553_v25  ;;  %v2051_v37 = vsel %vm1492_vm2, %v4553_v25, 0.0  ;;  %v4561_v0 = vpop.eup %3286  ;;  %v5230_v25 = vld [vmem:[#allocation35_spill] sm:$0xff] }
 0x2f9   : > { %1923 = vadd.xlane.f32.xlu2 %v1922_v18  ;;  %2052 = vadd.xlane.f32.xlu1 %v2051_v37  ;;  %v4563_v45 = vpop.eup %3288  ;;  %v1970_v50 = vsel %vm1492_vm2, %v4561_v0, 0.0  ;;  %v1869_v18 = vmul.f32 1.442695, %v1745_v51 }
 0x2fa   : > { %v1985_v41 = vsel %vm1492_vm2, %v4563_v45, 0.0  ;;  %v4574_v7 = vpop.eup %3290 }
 0x2fb   : > { %v4576_v5 = vpop.eup %3292  ;;  %v2027_v60 = vsel %vm1492_vm2, %v4574_v7, 0.0 }
 0x2fc   : > { %v1651_v14 = vpop.xlane.xlu2 %1650  ;;  %v2012_v1 = vsel %vm1492_vm2, %v4576_v5, 0.0 }
 0x2fd   : > { %v1737_v43 = vsub.f32 %v4349_v62, %v1651_v14  ;;  %v1855_v62 = vmul.f32 1.442695, %v1738_v52  ;;  %v5199_v14 = vld [vmem:[#allocation43_spill] sm:$0xff] }
 0x2ff   : > { %v1853_v3 = vmul.f32 1.442695, %v1737_v43  ;;  %v1724_v43 = vsub.f32 %v5199_v14, %v4364_v44 }
 0x301   : > { %3294 = vpow2.f32 %v1853_v3  ;;  %1971 = vadd.xlane.f32.xlu2 %v1970_v50  ;;  %1986 = vadd.xlane.f32.xlu1 %v1985_v41  ;;  %v1827_v17 = vmul.f32 1.442695, %v1724_v43 }
 0x302   : > { %3296 = vpow2.f32 %v1867_v26  ;;  %v1825_v26 = vmul.f32 1.442695, %v1723_v58 }
 0x303   : > { %3298 = vpow2.f32 %v1855_v62 }
 0x304   : > { %v1606_v33 = vpop.xlane.xlu2 %1605  ;;  %3300 = vpow2.f32 %v1869_v18  ;;  %v5205_v18 = vld [vmem:[#allocation13_spill] sm:$0xff] }
 0x305   : > { %3302 = vpow2.f32 %v1873_v57  ;;  %v1722_v52 = vsub.f32 %v5200_v11, %v1606_v33  ;;  %v5203_v33 = vld [vmem:[#allocation39_spill] sm:$0xff]  ;;  %v5206_v57 = vld [vmem:[#allocation44_spill] sm:$0xff] }
 0x306   : > { %v5207_v11 = vld [vmem:[#allocation23_spill] sm:$0xff] }
 0x307   : > { %v4580_v15 = vpop.eup %3294 }
 0x308   : > { %v2033_v47 = vsel %vm1492_vm2, %v4580_v15, 0.0  ;;  %v4590_v27 = vpop.eup %3296 }
 0x309   : > { %2028 = vadd.xlane.f32.xlu2 %v2027_v60  ;;  %2013 = vadd.xlane.f32.xlu1 %v2012_v1  ;;  %5197 = vst [vmem:[#allocation47_spill] sm:$0xff] %v4590_v27  ;;  %v4592_v48 = vpop.eup %3298  ;;  %v2054_v50 = vsel %vm1492_vm2, %v4590_v27, 0.0  ;;  %v1720_v60 = vsub.f32 %v5203_v33, %v5202_v10 }
 0x30a   : > { %2034 = vadd.xlane.f32.xlu0 %v2033_v47  ;;  %v2036_v41 = vsel %vm1492_vm2, %v4592_v48, 0.0  ;;  %v4604_v62 = vpop.eup %3300 }
 0x30b   : > { %5201 = vst [vmem:[#allocation41_spill] sm:$0xff] %v4604_v62  ;;  %v4606_v44 = vpop.eup %3302  ;;  %v2057_v32 = vsel %vm1492_vm2, %v4604_v62, 0.0  ;;  %v1819_v14 = vmul.f32 1.442695, %v1720_v60 }
 0x30c   : > { %v1678_v37 = vpop.xlane.xlu2 %1677  ;;  %v2063_v58 = vsel %vm1492_vm2, %v4606_v44, 0.0 }
 0x30d   : > { %v1746_v59 = vsub.f32 %v4381_v61, %v1678_v37  ;;  %v1823_v61 = vmul.f32 1.442695, %v1722_v52  ;;  %v1732_v37 = vsub.f32 %v5206_v57, %v5205_v18 }
 0x30f   : > { %v1871_v3 = vmul.f32 1.442695, %v1746_v59 }
 0x311   : > { %3304 = vpow2.f32 %v1871_v3  ;;  %2055 = vadd.xlane.f32.xlu2 %v2054_v50  ;;  %2037 = vadd.xlane.f32.xlu1 %v2036_v41  ;;  %v1843_v41 = vmul.f32 1.442695, %v1732_v37 }
 0x312   : > { %3306 = vpow2.f32 %v1825_v26 }
 0x313   : > { %3308 = vpow2.f32 %v1827_v17 }
 0x314   : > { %v1633_v51 = vpop.xlane.xlu2 %1632  ;;  %3310 = vpow2.f32 %v1823_v61  ;;  %v5209_v61 = vld [vmem:[#allocation17_spill] sm:$0xff] }
 0x315   : > { %v1731_v47 = vsub.f32 %v4401_v56, %v1633_v51  ;;  %v5208_v56 = vld [vmem:[#allocation34_spill] sm:$0xff]  ;;  %3312 = vpow2.f32 %v1819_v14 }
 0x316   : > { %v1733_v52 = vsub.f32 %v5208_v56, %v5207_v11  ;;  %v5210_v51 = vld [vmem:[#allocation42_spill] sm:$0xff]  ;;  %3314 = vrcp.f32 %v4431_v24  ;;  %v5211_v24 = vld [vmem:[#allocation4_spill] sm:$0xff] }
 0x317   : > { %v4610_v1 = vpop.eup %3304  ;;  %v1841_v3 = vmul.f32 1.442695, %v1731_v47  ;;  %v1739_v10 = vsub.f32 %v5210_v51, %v5209_v61  ;;  %v5215_v51 = vld [vmem:[#allocation46_spill] sm:$0xff] }
 0x318   : > { %5204 = vst [vmem:[#allocation43_spill] sm:$0xff] %v4610_v1  ;;  %v2060_v59 = vsel %vm1492_vm2, %v4610_v1, 0.0  ;;  %v4621_v43 = vpop.eup %3306  ;;  %v1845_v33 = vmul.f32 1.442695, %v1733_v52  ;;  %v5213_v52 = vld [vmem:[#allocation28_spill] sm:$0xff] }
 0x319   : > { %2058 = vadd.xlane.f32.xlu2 %v2057_v32  ;;  %2064 = vadd.xlane.f32.xlu1 %v2063_v58  ;;  %v4625_v50 = vpop.eup %3308  ;;  %3316 = vpow2.f32 %v1841_v3  ;;  %v1991_v57 = vsel %vm1492_vm2, %v4621_v43, 0.0  ;;  %v1857_v37 = vmul.f32 1.442695, %v1739_v10  ;;  %v5212_v58 = vld [vmem:[#allocation38_spill] sm:$0xff]  ;;  %v5214_v3 = vld [vmem:[#allocation25_spill] sm:$0xff] }
 0x31a   : > { %2061 = vadd.xlane.f32.xlu0 %v2060_v59  ;;  %v4627_v17 = vpop.eup %3310  ;;  %3318 = vpow2.f32 %v1843_v41  ;;  %v1994_v47 = vsel %vm1492_vm2, %v4625_v50, 0.0  ;;  %v1742_v59 = vsub.f32 %v5212_v58, %v5211_v24  ;;  %v1748_v41 = vsub.f32 %v5214_v3, %v5213_v52 }
 0x31b   : > { %v1988_v18 = vsel %vm1492_vm2, %v4627_v17, 0.0  ;;  %v4639_v32 = vpop.eup %3312  ;;  %3320 = vpow2.f32 %v1845_v33 }
 0x31c   : > { %v1660_v26 = vpop.xlane.xlu2 %1659  ;;  %v3315_v14 = vpop.eup %3314  ;;  %v1863_v61 = vmul.f32 1.442695, %v1742_v59  ;;  %v1982_v10 = vsel %vm1492_vm2, %v4639_v32, 0.0  ;;  %v1875_v24 = vmul.f32 1.442695, %v1748_v41  ;;  %v5220_v41 = vld [vmem:[#allocation40_spill] sm:$0xff] }
 0x31d   : > { %v1740_v60 = vsub.f32 %v4411_v40, %v1660_v26 }
 0x31f   : > { %v1859_v40 = vmul.f32 1.442695, %v1740_v60  ;;  %v4643_v56 = vpop.eup %3316 }
 0x320   : > { %v4647_v26 = vpop.eup %3318  ;;  %v2015_v60 = vsel %vm1492_vm2, %v4643_v56, 0.0 }
 0x321   : > { %1995 = vadd.xlane.f32.xlu1 %v1994_v47  ;;  %1989 = vadd.xlane.f32.xlu2 %v1988_v18  ;;  %v5216_v47 = vld [vmem:[#allocation32_spill] sm:$0xff]  ;;  %v5217_v18 = vld [vmem:[#allocation22_spill] sm:$0xff]  ;;  %v4659_v58 = vpop.eup %3320 }
 0x322   : > { %1992 = vadd.xlane.f32.xlu0 %v1991_v57  ;;  %v1719_v33 = vsub.f32 %v5216_v47, %v4530_v2  ;;  %v2134_v57 = vmul.f32 %v3315_v14, %v5217_v18  ;;  %5218 = vst [vmem:[#allocation19_spill] sm:$0xff] %v4659_v58  ;;  %v5219_v14 = vld [vmem:[#allocation12_spill] sm:$0xff]  ;;  %v5221_v18 = vld [vmem:[#allocation15_spill] sm:$0xff] }
 0x324   : > { %v1879_v11 = vpop.xlane.xlu2 %1878  ;;  %v1817_v2 = vmul.f32 1.442695, %v1719_v33  ;;  %v2198_v3 = vpack.c.bf16 %v2134_v57, %v2134_v57  ;;  %v5223_v33 = vld [vmem:[#allocation7_spill] sm:$0xff] }
 0x325   : > { %3322 = vrcp.f32 %v1879_v11  ;;  %v1728_v57 = vsub.f32 %v5223_v33, %v4547_v49  ;;  %v5229_v49 = vld [vmem:[#allocation10_spill] sm:$0xff] }
 0x326   : > { %3324 = vpow2.f32 %v1857_v37  ;;  %v2018_v37 = vsel %vm1492_vm2, %v4647_v26, 0.0 }
 0x327   : > { %3326 = vrcp.f32 %v5215_v51 }
 0x328   : > { %3328 = vpow2.f32 %v1859_v40 }
 0x329   : > { %1983 = vadd.xlane.f32.xlu1 %v1982_v10  ;;  %2016 = vadd.xlane.f32.xlu2 %v2015_v60  ;;  %3330 = vpow2.f32 %v1863_v61  ;;  %v1727_v10 = vsub.f32 %v5220_v41, %v5219_v14  ;;  %v2021_v61 = vsel %vm1492_vm2, %v4659_v58, 0.0  ;;  %v1741_v58 = vsub.f32 %v5230_v25, %v5229_v49 }
 0x32a   : > { %2019 = vadd.xlane.f32.xlu0 %v2018_v37  ;;  %3332 = vpow2.f32 %v1875_v24  ;;  %v5222_v37 = vld [vmem:[#allocation30_spill] sm:$0xff] }
 0x32b   : > { %v3323_v59 = vpop.eup %3322  ;;  %v1725_v13 = vsub.f32 %v5222_v37, %v4500_v9 }
 0x32c   : > { %v4661_v11 = vpop.eup %3324  ;;  %v1906_v40 = vpop.xlane.xlu2 %1905  ;;  %v2133_v52 = vmul.f32 %v3323_v59, %v4423_v20  ;;  %v4679_v59 = vunpack.c.l.b16 %v2198_v3 }
 0x32d   : > { %v3327_v51 = vpop.eup %3326  ;;  %3334 = vrcp.f32 %v1906_v40  ;;  %v2039_v20 = vsel %vm1492_vm2, %v4661_v11, 0.0  ;;  %v1833_v40 = vmul.f32 1.442695, %v1727_v10  ;;  %v1829_v3 = vmul.f32 1.442695, %v1725_v13 }
 0x32e   : > { %v4666_v47 = vpop.eup %3328  ;;  %v2197_v60 = vpack.c.bf16 %v2133_v52, %v2133_v52  ;;  %3336 = vrcp.f32 %v5221_v18  ;;  %v5224_v52 = vld [vmem:[#allocation18_spill] sm:$0xff]  ;;  %v4686_v18 = vpop.xlane.xlu0 %1890  ;;  %v1835_v10 = vmul.f32 1.442695, %v1728_v57 }
 0x32f   : > { %3338 = vpow2.f32 %v1817_v2  ;;  %v2042_v9 = vsel %vm1492_vm2, %v4666_v47, 0.0  ;;  %v2141_v14 = vmul.f32 %v3327_v51, %v5224_v52  ;;  %v4684_v41 = vpop.eup %3330 }
 0x330   : > { %v4677_v24 = vunpack.c.l.b16 %v2197_v60  ;;  %5225 = vst [vmem:[#allocation5_spill] sm:$0xff] %v4684_v41  ;;  %v4690_v2 = vpop.eup %3332  ;;  %3340 = vpow2.f32 %v1833_v40  ;;  %v2048_v13 = vsel %vm1492_vm2, %v4684_v41, 0.0  ;;  %v5237_v41 = vld [vmem:[#allocation36_spill] sm:$0xff] }
 0x331   : > { %2022 = vadd.xlane.f32.xlu1 %v2021_v61  ;;  %2040 = vadd.xlane.f32.xlu2 %v2039_v20  ;;  %5226 = vst [vmem:[#allocation39_spill] sm:$0xff] %v4690_v2  ;;  %v2205_v33 = vpack.c.bf16 %v2141_v14, %v2141_v14  ;;  %v2066_v57 = vsel %vm1492_vm2, %v4690_v2, 0.0 }
 0x332   : > { %2043 = vadd.xlane.f32.xlu0 %v2042_v9  ;;  %v5228_v9 = vld [vmem:[#allocation31_spill] sm:$0xff] }
 0x333   : > { %v3335_v60 = vpop.eup %3334  ;;  %v1734_v52 = vsub.f32 %v5228_v9, %v4513_v29  ;;  %v4705_v40 = vunpack.c.l.b16 %v2205_v33  ;;  %v5231_v29 = vld [vmem:[#allocation2_spill] sm:$0xff] }
 0x334   : > { %v1954_v37 = vpop.xlane.xlu2 %1953  ;;  %v3337_v61 = vpop.eup %3336  ;;  %v2142_v20 = vmul.f32 %v3335_v60, %v4436_v19 }
 0x335   : > { %v4693_v51 = vpop.eup %3338  ;;  %3342 = vrcp.f32 %v1954_v37  ;;  %v1847_v49 = vmul.f32 1.442695, %v1734_v52  ;;  %v5236_v52 = vld [vmem:[#allocation27_spill] sm:$0xff] }
 0x336   : > { %5227 = vst [vmem:[#allocation13_spill] sm:$0xff] %v4693_v51  ;;  %3344 = vpow2.f32 %v1829_v3  ;;  %v2206_v31 = vpack.c.bf16 %v2142_v20, %v2142_v20  ;;  %v1979_v19 = vsel %vm1492_vm2, %v4693_v51, 0.0  ;;  %v2157_v3 = vmul.f32 %v3337_v61, %v5231_v29  ;;  %v4710_v60 = vpop.xlane.xlu0 %1938  ;;  %v4712_v25 = vpop.eup %3340  ;;  %v5235_v61 = vld [vmem:[#allocation29_spill] sm:$0xff] }
 0x337   : > { %3346 = vpow2.f32 %v1835_v10  ;;  %5232 = vst [vmem:[#allocation44_spill] sm:$0xff] %v4712_v25  ;;  %v1861_v20 = vmul.f32 1.442695, %v1741_v58  ;;  %v1717_v29 = vsub.f32 %v5235_v61, %v4477_v23  ;;  %v1718_v27 = vsub.f32 %v5237_v41, %v5236_v52  ;;  %v5240_v52 = vld [vmem:[#allocation3_spill] sm:$0xff] }
 0x338   : > { %v4707_v14 = vunpack.c.l.b16 %v2206_v31  ;;  %v2221_v31 = vpack.c.bf16 %v2157_v3, %v2157_v3  ;;  %3348 = vpow2.f32 %v1847_v49  ;;  %v2003_v10 = vsel %vm1492_vm2, %v4712_v25, 0.0 }
 0x339   : > { %2049 = vadd.xlane.f32.xlu1 %v2048_v13  ;;  %2067 = vadd.xlane.f32.xlu2 %v2066_v57  ;;  %3350 = vpow2.f32 %v1861_v20  ;;  %v1815_v20 = vmul.f32 1.442695, %v1718_v27 }
 0x33a   : > { %1980 = vadd.xlane.f32.xlu0 %v1979_v19  ;;  %v4731_v3 = vunpack.c.l.b16 %v2221_v31 }
 0x33b   : > { %v3343_v37 = vpop.eup %3342 }
 0x33c   : > { %v1888_v9 = vpop.xlane.xlu2 %1887  ;;  %v4716_v13 = vpop.eup %3344  ;;  %v2158_v33 = vmul.f32 %v3343_v37, %v4455_v30  ;;  %v1813_v37 = vmul.f32 1.442695, %v1717_v29 }
 0x33d   : > { %5233 = vst [vmem:[#allocation23_spill] sm:$0xff] %v4716_v13  ;;  %v4719_v57 = vpop.eup %3346  ;;  %v1997_v58 = vsel %vm1492_vm2, %v4716_v13, 0.0 }
 0x33e   : > { %5234 = vst [vmem:[#allocation34_spill] sm:$0xff] %v4719_v57  ;;  %v2222_v19 = vpack.c.bf16 %v2158_v33, %v2158_v33  ;;  %v2006_v30 = vsel %vm1492_vm2, %v4719_v57, 0.0  ;;  %v4735_v49 = vpop.xlane.xlu0 %1917  ;;  %v4741_v61 = vpop.eup %3348  ;;  %3352 = vpow2.f32 %v1813_v37 }
 0x33f   : > { %5238 = vst [vmem:[#allocation17_spill] sm:$0xff] %v4741_v61  ;;  %3354 = vpow2.f32 %v1815_v20 }
 0x340   : > { %v4733_v23 = vunpack.c.l.b16 %v2222_v19  ;;  %v2024_v19 = vsel %vm1492_vm2, %v4741_v61, 0.0 }
 0x341   : > { %1998 = vadd.xlane.f32.xlu1 %v1997_v58  ;;  %2004 = vadd.xlane.f32.xlu2 %v2003_v10  ;;  %v4743_v10 = vpop.eup %3350  ;;  %v5241_v58 = vld [vmem:[#allocation37_spill] sm:$0xff] }
 0x342   : > { %2007 = vadd.xlane.f32.xlu0 %v2006_v30  ;;  %5239 = vst [vmem:[#allocation42_spill] sm:$0xff] %v4743_v10  ;;  %v1726_v31 = vsub.f32 %v5241_v58, %v5240_v52  ;;  %v2045_v29 = vsel %vm1492_vm2, %v4743_v10, 0.0  ;;  %v1894_v30 = vpop.xlane.xlu1 %1893 }
 0x344   : > { %v4739_v33 = vpop.xlane.xlu2 %1935  ;;  %v1831_v27 = vmul.f32 1.442695, %v1726_v31  ;;  %v4753_v25 = vpop.eup %3352 }
 0x345   : > { %5242 = vst [vmem:[#allocation4_spill] sm:$0xff] %v4753_v25  ;;  %v4755_v57 = vpop.eup %3354  ;;  %v1973_v37 = vsel %vm1492_vm2, %v4753_v25, 0.0 }
 0x346   : > { %v4751_v41 = vpop.xlane.xlu0 %1965  ;;  %5243 = vst [vmem:[#allocation38_spill] sm:$0xff] %v4755_v57  ;;  %3356 = vpow2.f32 %v1831_v27  ;;  %v1976_v20 = vsel %vm1492_vm2, %v4755_v57, 0.0 }
 0x349   : > { %2025 = vadd.xlane.f32.xlu2 %v2024_v19 }
 0x34a   : > { %2046 = vadd.xlane.f32.xlu0 %v2045_v29  ;;  %v1942_v52 = vpop.xlane.xlu1 %1941 }
 0x34c   : > { %v1915_v13 = vpop.xlane.xlu2 %1914  ;;  %v4763_v19 = vpop.eup %3356 }
 0x34d   : > { %5244 = vst [vmem:[#allocation28_spill] sm:$0xff] %v4763_v19  ;;  %v2000_v29 = vsel %vm1492_vm2, %v4763_v19, 0.0  ;;  %v5245_v19 = vld [vmem:[#allocation8_spill] sm:$0xff] }
 0x34e   : > { %v1900_v58 = vpop.xlane.xlu0 %1899 }
 0x34f   : > { %3358 = vrcp.f32 %v1900_v58 }
 0x350   : > { %3360 = vrcp.f32 %v1894_v30 }
 0x351   : > { %1974 = vadd.xlane.f32.xlu2 %v1973_v37  ;;  %3362 = vrcp.f32 %v4686_v18 }
 0x352   : > { %1977 = vadd.xlane.f32.xlu0 %v1976_v20  ;;  %v1921_v27 = vpop.xlane.xlu1 %1920 }
 0x354   : > { %v4761_v31 = vpop.xlane.xlu2 %1962 }
 0x355   : > { %v3359_v10 = vpop.eup %3358 }
 0x356   : > { %v1948_v37 = vpop.xlane.xlu0 %1947  ;;  %v3361_v20 = vpop.eup %3360  ;;  %v2140_v57 = vmul.f32 %v3359_v10, %v4459_v54 }
 0x357   : > { %v3363_v61 = vpop.eup %3362 }
 0x358   : > { %v2204_v1 = vpack.c.bf16 %v2140_v57, %v2140_v57 }
 0x359   : > { %2001 = vadd.xlane.f32.xlu2 %v2000_v29  ;;  %v2138_v29 = vmul.f32 %v3361_v20, %v5245_v19 }
 0x35a   : > { %v1969_v30 = vpop.xlane.xlu1 %1968  ;;  %v2276_v19 = vunpack.c.l.b16 %v2204_v1 }
 0x35c   : > { %v1897_v25 = vpop.xlane.xlu2 %1896 }
 0x35d   : > { %3364 = vrcp.f32 %v1897_v25 }
 0x35e   : > { %3366 = vrcp.f32 %v1948_v37  ;;  %v5246_v37 = vld [vmem:[#allocation6_spill] sm:$0xff] }
 0x35f   : > { %3368 = vrcp.f32 %v1942_v52  ;;  %v2137_v62 = vmul.f32 %v3363_v61, %v5246_v37  ;;  %v2202_v52 = vpack.c.bf16 %v2138_v29, %v2138_v29  ;;  %v5249_v37 = vld [vmem:[#allocation14_spill] sm:$0xff] }
 0x360   : > { %3370 = vrcp.f32 %v1888_v9 }
 0x361   : > { %3372 = vrcp.f32 %v4433_v21 }
 0x362   : > { %3374 = vrcp.f32 %v4710_v60  ;;  %v2201_v60 = vpack.c.bf16 %v2137_v62, %v2137_v62 }
 0x363   : > { %v3365_v58 = vpop.eup %3364 }
 0x364   : > { %v2139_v18 = vmul.f32 %v3365_v58, %v4532_v4  ;;  %v1945_v63 = vpop.xlane.xlu2 %1944  ;;  %v3367_v25 = vpop.eup %3366  ;;  %v5247_v58 = vld [vmem:[#allocation45_spill] sm:$0xff] }
 0x365   : > { %3376 = vrcp.f32 %v1945_v63  ;;  %v3369_v10 = vpop.eup %3368  ;;  %v2156_v21 = vmul.f32 %v3367_v25, %v4484_v22  ;;  %v2274_v63 = vunpack.c.l.b16 %v2202_v52  ;;  %v5248_v25 = vld [vmem:[#allocation26_spill] sm:$0xff] }
 0x366   : > { %v2203_v54 = vpack.c.bf16 %v2139_v18, %v2139_v18  ;;  %v3371_v9 = vpop.eup %3370  ;;  %3378 = vrcp.f32 %v1921_v27  ;;  %v2154_v29 = vmul.f32 %v3369_v10, %v5247_v58 }
 0x367   : > { %v3373_v20 = vpop.eup %3372  ;;  %3380 = vrcp.f32 %v4453_v6  ;;  %v2136_v61 = vmul.f32 %v3371_v9, %v4467_v8  ;;  %v2220_v18 = vpack.c.bf16 %v2156_v21, %v2156_v21  ;;  %v2273_v6 = vunpack.c.l.b16 %v2201_v60  ;;  %v5250_v21 = vld [vmem:[#allocation21_spill] sm:$0xff] }
 0x368   : > { %v2275_v2 = vunpack.c.l.b16 %v2203_v54  ;;  %v3375_v51 = vpop.eup %3374  ;;  %3382 = vrcp.f32 %v4739_v33  ;;  %v2135_v8 = vmul.f32 %v3373_v20, %v5248_v25 }
 0x369   : > { %3384 = vrcp.f32 %v1915_v13  ;;  %v2153_v54 = vmul.f32 %v3375_v51, %v5249_v37  ;;  %v2279_v13 = vpack.c.b16 %v2274_v63, %v2273_v6  ;;  %v2372_v9 = vunpack.c.l.b16 %v2220_v18 }
 0x36a   : > { %v2280_v4 = vpack.c.b16 %v2276_v19, %v2275_v2  ;;  %3386 = vrcp.f32 %v4735_v49  ;;  %v2200_v19 = vpack.c.bf16 %v2136_v61, %v2136_v61  ;;  %v2199_v60 = vpack.c.bf16 %v2135_v8, %v2135_v8 }
 0x36b   : > { %v3377_v57 = vpop.eup %3376  ;;  %v2291_v20 = vsel %vm1492_vm2, %v2279_v13, 0 }
 0x36c   : > { %v2155_v27 = vmul.f32 %v3377_v57, %v4538_v35  ;;  %v4780_v22 = vpop.xlane.xlu1 %2052  ;;  %v1924_v1 = vpop.xlane.xlu2 %1923  ;;  %v2294_v62 = vsel %vm1492_vm2, %v2280_v4, 0  ;;  %v2218_v35 = vpack.c.bf16 %v2154_v29, %v2154_v29  ;;  %v2272_v18 = vunpack.c.l.b16 %v2200_v19 }
 0x36d   : > { %2300 = vmatpush.bf16.xpose.msra.mxu0 %v2294_v62  ;;  %v3379_v2 = vpop.eup %3378  ;;  %3388 = vrcp.f32 %v1924_v1  ;;  %v2217_v62 = vpack.c.bf16 %v2153_v54, %v2153_v54  ;;  %v5251_v54 = vld [vmem:[#allocation11_spill] sm:$0xff] }
 0x36e   : > { %v2219_v33 = vpack.c.bf16 %v2155_v27, %v2155_v27  ;;  %3390 = vrcp.f32 %v1969_v30  ;;  %v3381_v10 = vpop.eup %3380  ;;  %v2147_v57 = vmul.f32 %v3379_v2, %v5250_v21  ;;  %v4787_v27 = vpop.xlane.xlu0 %2031  ;;  %v2370_v51 = vunpack.c.l.b16 %v2218_v35 }
 0x36f   : > { %v3383_v4 = vpop.eup %3382  ;;  %3392 = vrcp.f32 %v4761_v31  ;;  %v2271_v31 = vunpack.c.l.b16 %v2199_v60  ;;  %v2369_v37 = vunpack.c.l.b16 %v2217_v62  ;;  %v2151_v13 = vmul.f32 %v3381_v10, %v5251_v54 }
 0x370   : > { %v2371_v52 = vunpack.c.l.b16 %v2219_v33  ;;  %v3385_v49 = vpop.eup %3384  ;;  %v2152_v6 = vmul.f32 %v3383_v4, %v4479_v46  ;;  %3394 = vrcp.f32 %v4751_v41  ;;  %v2211_v25 = vpack.c.bf16 %v2147_v57, %v2147_v57 }
 0x371   : > { %v3387_v1 = vpop.eup %3386  ;;  %v2145_v8 = vmul.f32 %v3385_v49, %v4502_v28  ;;  %v2278_v19 = vpack.c.b16 %v2272_v18, %v2271_v31  ;;  %v2375_v4 = vpack.c.b16 %v2370_v51, %v2369_v37  ;;  %v2215_v57 = vpack.c.bf16 %v2151_v13, %v2151_v13  ;;  %v5253_v37 = vld [vmem:[#allocation20_spill] sm:$0xff] }
 0x372   : > { %v2376_v58 = vpack.c.b16 %v2372_v9, %v2371_v52  ;;  %v5252_v52 = vld [vmem:[#allocation9_spill] sm:$0xff]  ;;  %v2216_v41 = vpack.c.bf16 %v2152_v6, %v2152_v6  ;;  %v2323_v21 = vunpack.c.l.b16 %v2211_v25 }
 0x373   : > { %v3389_v30 = vpop.eup %3388  ;;  %v2146_v9 = vmul.f32 %v3387_v1, %v5252_v52  ;;  %v2288_v1 = vsel %vm1492_vm2, %v2278_v19, 0  ;;  %v2367_v25 = vunpack.c.l.b16 %v2215_v57 }
 0x374   : > { %v4791_v63 = vpop.xlane.xlu1 %1986  ;;  %v1972_v29 = vpop.xlane.xlu2 %1971  ;;  %v2390_v61 = vsel %vm1492_vm2, %v2376_v58, 0  ;;  %v2148_v33 = vmul.f32 %v3389_v30, %v4549_v36  ;;  %v2209_v58 = vpack.c.bf16 %v2145_v8, %v2145_v8 }
 0x375   : > { %v3391_v2 = vpop.eup %3390  ;;  %2301 = vmatpush.bf16.xpose.msra.mxu0 %v2291_v20  ;;  %2396 = vmatpush.bf16.xpose.msra.mxu2 %v2390_v61  ;;  %3396 = vrcp.f32 %v1972_v29  ;;  %v2210_v49 = vpack.c.bf16 %v2146_v9, %v2146_v9  ;;  %v2368_v29 = vunpack.c.l.b16 %v2216_v41 }
 0x376   : > { %v2212_v35 = vpack.c.bf16 %v2148_v33, %v2148_v33  ;;  %v2163_v46 = vmul.f32 %v3391_v2, %v4439_v12  ;;  %v3393_v20 = vpop.eup %3392  ;;  %v2387_v12 = vsel %vm1492_vm2, %v2375_v4, 0  ;;  %v4807_v61 = vpop.xlane.xlu0 %2010  ;;  %v2321_v2 = vunpack.c.l.b16 %v2209_v58 }
 0x377   : > { %v3395_v30 = vpop.eup %3394  ;;  %v2161_v33 = vmul.f32 %v3393_v20, %v4515_v16  ;;  %v2322_v8 = vunpack.c.l.b16 %v2210_v49  ;;  %v2374_v13 = vpack.c.b16 %v2368_v29, %v2367_v25  ;;  %v5254_v16 = vpack.c.b16 %v4679_v59, %v4677_v24  ;;  %v5255_v59 = vld [vmem:[#allocation16_spill] sm:$0xff] }
 0x378   : > { %v2324_v36 = vunpack.c.l.b16 %v2212_v35  ;;  %v2227_v51 = vpack.c.bf16 %v2163_v46, %v2163_v46  ;;  %v2162_v54 = vmul.f32 %v3395_v30, %v5253_v37  ;;  %3398 = vrcp.f32 %v4791_v63  ;;  %v2915_v63 = vld [vmem:[%s4860_s20 + $0x24] sm:$0x3] }
 0x379   : > { %v2327_v35 = vpack.c.b16 %v2322_v8, %v2321_v2  ;;  %v2225_v46 = vpack.c.bf16 %v2161_v33, %v2161_v33  ;;  %v3470_v2 = vmov 0   ;;  %v2645_v33 = vld [vmem:[%s5029_s5] sm:$0xf]  ;;  %v5258_v8 = vpack.c.b16 %v4707_v14, %v4705_v40  ;;  %v2649_v40 = vld [vmem:[%s5029_s5 + $0x10] sm:$0xf] }
 0x37a   : > { %v2328_v28 = vpack.c.b16 %v2324_v36, %v2323_v21  ;;  %v2419_v52 = vunpack.c.l.b16 %v2227_v51  ;;  %v2285_v21 = vsel %vm1492_vm2, %v5254_v16, 0  ;;  %v2384_v36 = vsel %vm1492_vm2, %v2374_v13, 0  ;;  %3204 = vset.pattern.permute.xlu1 %v3470_v2  ;;  %3203 = vset.pattern.permute.xlu0 %v3470_v2 }
 0x37b   : > { %v3397_v60 = vpop.eup %3396  ;;  %v2339_v20 = vsel %vm1492_vm2, %v2327_v35, 0  ;;  %v2417_v30 = vunpack.c.l.b16 %v2225_v46  ;;  %v5257_v51 = vpack.c.b16 %v4494_v55, %v4492_v39  ;;  %2655 = vperm.xlu0 %3203, %v2645_v33   ;;  %3205 = vset.pattern.permute.xlu2 %v3470_v2  ;;  %v5259_v37 = vpack.c.b16 %v4526_v34, %v4524_v53  ;;  %v2647_v53 = vld [vmem:[%s5029_s5 + $0x8] sm:$0xf]  ;;  %v2651_v34 = vld [vmem:[%s5029_s5 + $0x18] sm:$0xf] }
 0x37c   : > { %v4801_v62 = vpop.xlane.xlu1 %2013  ;;  %v4803_v10 = vpop.xlane.xlu2 %2028  ;;  %v2164_v18 = vmul.f32 %v3397_v60, %v4561_v0  ;;  %v2342_v6 = vsel %vm1492_vm2, %v2328_v28, 0  ;;  %v2226_v0 = vpack.c.bf16 %v2162_v54, %v2162_v54  ;;  %2665 = vperm.xlu2 %3205, %v2647_v53   ;;  %v5260_v16 = vpack.c.b16 %v4733_v23, %v4731_v3  ;;  %v2652_v23 = vld [vmem:[%s5029_s5 + $0x1c] sm:$0xf] }
 0x37d   : > { %2302 = vmatpush.bf16.xpose.msra.mxu0 %v2288_v1  ;;  %2397 = vmatpush.bf16.xpose.msra.mxu2 %v2387_v12  ;;  %v5256_v1 = vpack.c.b16 %v4445_v42, %v5255_v59  ;;  %v2646_v42 = vld [vmem:[%s5029_s5 + $0x4] sm:$0xf]  ;;  %v2432_v54 = vsel %vm1492_vm2, %v5259_v37, 0  ;;  %v2703_v37 = vld [vmem:[%s5030_s6 + $0x8] sm:$0xf] }
 0x37e   : > { %2348 = vmatpush.bf16.xpose.msra.mxu1 %v2342_v6  ;;  %v2228_v31 = vpack.c.bf16 %v2164_v18, %v2164_v18  ;;  %v4822_v58 = vpop.xlane.xlu0 %2034  ;;  %v2418_v28 = vunpack.c.l.b16 %v2226_v0  ;;  %v2336_v18 = vsel %vm1492_vm2, %v5257_v51, 0  ;;  %2660 = vperm.xlu1 %3204, %v2646_v42   ;;  %v3399_v14 = vpop.eup %3398 }
 0x37f   : > { %v2381_v12 = vsel %vm1492_vm2, %v5256_v1, 0 }
 0x380   : > { %v2420_v9 = vunpack.c.l.b16 %v2228_v31  ;;  %v2423_v49 = vpack.c.b16 %v2418_v28, %v2417_v30  ;;  %v2333_v31 = vsel %vm1492_vm2, %v5258_v8, 0 }
 0x382   : > { %v2424_v19 = vpack.c.b16 %v2420_v9, %v2419_v52  ;;  %v2435_v6 = vsel %vm1492_vm2, %v2423_v49, 0  ;;  %v2916_v49 = vld [vmem:[%s4860_s20 + $0x26] sm:$0x3] }
 0x383   : > { %2685 = vperm.xlu0 %3203, %v2651_v34  }
 0x384   : > { %v4813_v4 = vpop.xlane.xlu1 %2037  ;;  %v4815_v41 = vpop.xlane.xlu2 %2055  ;;  %v2438_v57 = vsel %vm1492_vm2, %v2424_v19, 0 }
 0x385   : > { %2303 = vmatpush.bf16.xpose.msra.mxu0 %v2285_v21  ;;  %2398 = vmatpush.bf16.xpose.msra.mxu2 %v2384_v36  ;;  %v2429_v21 = vsel %vm1492_vm2, %v5260_v16, 0  ;;  %v2913_v36 = vld [vmem:[%s4860_s20 + $0x20] sm:$0x3] }
 0x386   : > { %2349 = vmatpush.bf16.xpose.msra.mxu1 %v2339_v20  ;;  %2444 = vmatpush.bf16.xpose.msra.mxu3 %v2438_v57  ;;  %v2702_v57 = vld [vmem:[%s5030_s6 + $0x4] sm:$0xf] }
 0x387   : > { %2675 = vperm.xlu1 %3204, %v2649_v40  }
 0x38b   : > { %2716 = vperm.xlu0 %3203, %v2702_v57  }
 0x38c   : > { %v4826_v60 = vpop.xlane.xlu1 %2064  ;;  %v4828_v24 = vpop.xlane.xlu2 %2058  ;;  %3113 = vmatmul.msk.bf16.vlgmr.msra.gmra.mxu0 %vm1492_vm2, %v2913_v36 }
 0x38d   : > { %v4834_v29 = vpop.xlane.xlu0 %2061  ;;  %2399 = vmatpush.bf16.xpose.msra.mxu2 %v2381_v12 }
 0x38e   : > { %2350 = vmatpush.bf16.xpose.msra.mxu1 %v2336_v18  ;;  %2445 = vmatpush.bf16.xpose.msra.mxu3 %v2435_v6 }
 0x38f   : > { %2690 = vperm.xlu1 %3204, %v2652_v23  }
 0x394   : > { %v1996_v39 = vpop.xlane.xlu1 %1995  ;;  %v1990_v55 = vpop.xlane.xlu2 %1989  ;;  %3115 = vmatmul.msk.bf16.vlgmr.msra.gmra.mxu2 %vm1492_vm2, %v2915_v63 }
 0x395   : > { %3400 = vrcp.f32 %v1996_v39  ;;  %v1993_v25 = vpop.xlane.xlu0 %1992 }
 0x396   : > { %3402 = vrcp.f32 %v1993_v25  ;;  %2351 = vmatpush.bf16.xpose.msra.mxu1 %v2333_v31  ;;  %2446 = vmatpush.bf16.xpose.msra.mxu3 %v2432_v54  ;;  %v2914_v25 = vld [vmem:[%s4860_s20 + $0x22] sm:$0x3] }
 0x397   : > { %3404 = vrcp.f32 %v1990_v55  ;;  %2721 = vperm.xlu1 %3204, %v2703_v37   ;;  %v5265_v37 = vld [vmem:[#allocation24_spill] sm:$0xff] }
 0x398   : > { %3406 = vrcp.f32 %v4801_v62 }
 0x399   : > { %3408 = vrcp.f32 %v4807_v61  ;;  %v2169_v61 = vmul.f32 %v3399_v14, %v4563_v45 }
 0x39b   : > { %v3401_v13 = vpop.eup %3400  ;;  %v2233_v1 = vpack.c.bf16 %v2169_v61, %v2169_v61 }
 0x39c   : > { %v3403_v35 = vpop.eup %3402  ;;  %v2172_v52 = vmul.f32 %v3401_v13, %v4625_v50  ;;  %v2017_v9 = vpop.xlane.xlu2 %2016 }
 0x39d   : > { %v3405_v46 = vpop.eup %3404  ;;  %v2171_v19 = vmul.f32 %v3403_v35, %v4621_v43  ;;  %v2020_v0 = vpop.xlane.xlu0 %2019  ;;  %v2648_v43 = vld [vmem:[%s5029_s5 + $0xc] sm:$0xf]  ;;  %3114 = vmatmul.msk.bf16.vlgmr.msra.gmra.mxu1 %vm1492_vm2, %v2914_v25 }
 0x39e   : > { %3410 = vrcp.f32 %v2020_v0  ;;  %2447 = vmatpush.bf16.xpose.msra.mxu3 %v2429_v21  ;;  %v2236_v62 = vpack.c.bf16 %v2172_v52, %v2172_v52  ;;  %v2170_v20 = vmul.f32 %v3405_v46, %v4627_v17  ;;  %v3407_v17 = vpop.eup %3406  ;;  %2670 = vperm.xlu2 %3205, %v2648_v43   ;;  %v1984_v2 = vpop.xlane.xlu1 %1983  ;;  %v2708_v43 = vld [vmem:[%s5030_s6 + $0x1c] sm:$0xf] }
 0x39f   : > { %3412 = vrcp.f32 %v2017_v9  ;;  %v2235_v50 = vpack.c.bf16 %v2171_v19, %v2171_v19  ;;  %v3409_v59 = vpop.eup %3408  ;;  %v2178_v18 = vmul.f32 %v3407_v17, %v4576_v5  ;;  %v2465_v5 = vunpack.c.l.b16 %v2233_v1 }
 0x3a0   : > { %v2468_v3 = vunpack.c.l.b16 %v2236_v62  ;;  %v2234_v28 = vpack.c.bf16 %v2170_v20, %v2170_v20  ;;  %3414 = vrcp.f32 %v4813_v4  ;;  %v2177_v4 = vmul.f32 %v3409_v59, %v4511_v38  ;;  %v2705_v38 = vld [vmem:[%s5030_s6 + $0x10] sm:$0xf] }
 0x3a1   : > { %v2467_v30 = vunpack.c.l.b16 %v2235_v50  ;;  %3416 = vrcp.f32 %v4822_v58  ;;  %v2242_v31 = vpack.c.bf16 %v2178_v18, %v2178_v18  ;;  %2731 = vperm.xlu0 %3203, %v2705_v38   ;;  %v2704_v38 = vld [vmem:[%s5030_s6 + $0xc] sm:$0xf] }
 0x3a2   : > { %v2466_v55 = vunpack.c.l.b16 %v2234_v28  ;;  %v2241_v34 = vpack.c.bf16 %v2177_v4, %v2177_v4  ;;  %v5263_v4 = vld [vmem:[#allocation41_spill] sm:$0xff] }
 0x3a3   : > { %v2472_v45 = vpack.c.b16 %v2468_v3, %v2467_v30  ;;  %v2514_v9 = vunpack.c.l.b16 %v2242_v31 }
 0x3a4   : > { %v3411_v12 = vpop.eup %3410  ;;  %v2041_v51 = vpop.xlane.xlu2 %2040  ;;  %v2471_v54 = vpack.c.b16 %v2466_v55, %v2465_v5  ;;  %v2513_v21 = vunpack.c.l.b16 %v2241_v34 }
 0x3a5   : > { %v3413_v6 = vpop.eup %3412  ;;  %v2180_v42 = vmul.f32 %v3411_v12, %v4647_v26  ;;  %v2044_v33 = vpop.xlane.xlu0 %2043  ;;  %v2486_v39 = vsel %vm1492_vm2, %v2472_v45, 0  ;;  %3116 = vmatmul.msk.bf16.vlgmr.msra.gmra.mxu3 %vm1492_vm2, %v2916_v49 }
 0x3a6   : > { %v2179_v8 = vmul.f32 %v3413_v6, %v4643_v56  ;;  %3418 = vrcp.f32 %v2044_v33  ;;  %2492 = vmatpush.bf16.xpose.msrb.mxu0 %v2486_v39  ;;  %v2650_v56 = vld [vmem:[%s5029_s5 + $0x14] sm:$0xf]  ;;  %v3415_v40 = vpop.eup %3414  ;;  %v2023_v20 = vpop.xlane.xlu1 %2022  ;;  %v5262_v39 = vld [vmem:[#allocation39_spill] sm:$0xff] }
 0x3a7   : > { %3420 = vrcp.f32 %v2041_v51  ;;  %v2244_v58 = vpack.c.bf16 %v2180_v42, %v2180_v42  ;;  %2680 = vperm.xlu2 %3205, %v2650_v56   ;;  %v3417_v14 = vpop.eup %3416  ;;  %v2186_v0 = vmul.f32 %v3415_v40, %v4592_v48  ;;  %v2706_v48 = vld [vmem:[%s5030_s6 + $0x14] sm:$0xf] }
 0x3a8   : > { %3422 = vrcp.f32 %v1984_v2  ;;  %v2243_v26 = vpack.c.bf16 %v2179_v8, %v2179_v8  ;;  %v2185_v61 = vmul.f32 %v3417_v14, %v4580_v15  ;;  %2736 = vperm.xlu1 %3204, %v2706_v48   ;;  %v5261_v2 = vld [vmem:[#allocation13_spill] sm:$0xff] }
 0x3a9   : > { %3424 = vrcp.f32 %v4826_v60  ;;  %v2516_v63 = vunpack.c.l.b16 %v2244_v58  ;;  %v2250_v17 = vpack.c.bf16 %v2186_v0, %v2186_v0  ;;  %2746 = vperm.xlu0 %3203, %v2708_v43  }
 0x3aa   : > { %3426 = vrcp.f32 %v4787_v27  ;;  %v2515_v53 = vunpack.c.l.b16 %v2243_v26  ;;  %v2483_v27 = vsel %vm1492_vm2, %v2471_v54, 0  ;;  %v2249_v51 = vpack.c.bf16 %v2185_v61, %v2185_v61 }
 0x3ab   : > { %3428 = vrcp.f32 %v4803_v10  ;;  %v2562_v33 = vunpack.c.l.b16 %v2250_v17 }
 0x3ac   : > { %v3419_v13 = vpop.eup %3418  ;;  %3430 = vrcp.f32 %v4834_v29  ;;  %v2068_v35 = vpop.xlane.xlu2 %2067  ;;  %v2520_v52 = vpack.c.b16 %v2516_v63, %v2515_v53  ;;  %v2561_v26 = vunpack.c.l.b16 %v2249_v51 }
 0x3ad   : > { %v3421_v60 = vpop.eup %3420  ;;  %3432 = vrcp.f32 %v4828_v24  ;;  %v2188_v46 = vmul.f32 %v3419_v13, %v4666_v47  ;;  %v1981_v19 = vpop.xlane.xlu0 %1980  ;;  %v2519_v47 = vpack.c.b16 %v2514_v9, %v2513_v21  ;;  %v5266_v21 = vld [vmem:[#allocation34_spill] sm:$0xff] }
 0x3ae   : > { %v3423_v16 = vpop.eup %3422  ;;  %v2187_v10 = vmul.f32 %v3421_v60, %v4661_v11  ;;  %3434 = vrcp.f32 %v1981_v19  ;;  %2493 = vmatpush.bf16.xpose.msrb.mxu0 %v2483_v27  ;;  %v2534_v29 = vsel %vm1492_vm2, %v2520_v52, 0  ;;  %v2701_v11 = vld [vmem:[%s5030_s6] sm:$0xf]  ;;  %v2050_v34 = vpop.xlane.xlu1 %2049  ;;  %v2567_v14 = vpack.c.b16 %v2562_v33, %v2561_v26  ;;  %v5271_v33 = vld [vmem:[#allocation17_spill] sm:$0xff] }
 0x3af   : > { %v3425_v36 = vpop.eup %3424  ;;  %3436 = vrcp.f32 %v2068_v35  ;;  %2540 = vmatpush.bf16.xpose.msrb.mxu1 %v2534_v29  ;;  %v2252_v62 = vpack.c.bf16 %v2188_v46, %v2188_v46  ;;  %v2168_v57 = vmul.f32 %v3423_v16, %v4639_v32  ;;  %2711 = vperm.xlu2 %3205, %v2701_v11   ;;  %v2531_v1 = vsel %vm1492_vm2, %v2519_v47, 0 }
 0x3b0   : > { %v3427_v24 = vpop.eup %3426  ;;  %v2251_v50 = vpack.c.bf16 %v2187_v10, %v2187_v10  ;;  %v2195_v15 = vmul.f32 %v3425_v36, %v4606_v44  ;;  %3438 = vrcp.f32 %v4815_v41 }
 0x3b1   : > { %v3429_v3 = vpop.eup %3428  ;;  %v2564_v23 = vunpack.c.l.b16 %v2252_v62  ;;  %3440 = vrcp.f32 %v2023_v20  ;;  %v2232_v44 = vpack.c.bf16 %v2168_v57, %v2168_v57  ;;  %v2184_v56 = vmul.f32 %v3427_v24, %v5265_v37  ;;  %v2707_v57 = vld [vmem:[%s5030_s6 + $0x18] sm:$0xf] }
 0x3b2   : > { %v3431_v30 = vpop.eup %3430  ;;  %v2563_v28 = vunpack.c.l.b16 %v2251_v50  ;;  %v2183_v18 = vmul.f32 %v3429_v3, %v4574_v7  ;;  %v2259_v25 = vpack.c.bf16 %v2195_v15, %v2195_v15  ;;  %v5264_v7 = vld [vmem:[#allocation43_spill] sm:$0xff]  ;;  %v2579_v20 = vsel %vm1492_vm2, %v2567_v14, 0  ;;  %v5267_v50 = vld [vmem:[#allocation44_spill] sm:$0xff] }
 0x3b3   : > { %v3433_v49 = vpop.eup %3432  ;;  %v2194_v58 = vmul.f32 %v3431_v30, %v5264_v7  ;;  %v2464_v40 = vunpack.c.l.b16 %v2232_v44  ;;  %v2248_v0 = vpack.c.bf16 %v2184_v56, %v2184_v56  ;;  %v5268_v3 = vld [vmem:[#allocation47_spill] sm:$0xff] }
 0x3b4   : > { %v3435_v59 = vpop.eup %3434  ;;  %v2005_v45 = vpop.xlane.xlu2 %2004  ;;  %v2568_v12 = vpack.c.b16 %v2564_v23, %v2563_v28  ;;  %v2193_v5 = vmul.f32 %v3433_v49, %v5263_v4  ;;  %v2247_v53 = vpack.c.bf16 %v2183_v18, %v2183_v18  ;;  %v2611_v13 = vunpack.c.l.b16 %v2259_v25  ;;  %v5269_v15 = vld [vmem:[#allocation19_spill] sm:$0xff] }
 0x3b5   : > { %v3437_v32 = vpop.eup %3436  ;;  %v2008_v6 = vpop.xlane.xlu0 %2007  ;;  %v2167_v42 = vmul.f32 %v3435_v59, %v5261_v2  ;;  %v2258_v60 = vpack.c.bf16 %v2194_v58, %v2194_v58  ;;  %v2560_v30 = vunpack.c.l.b16 %v2248_v0  ;;  %v5270_v59 = vld [vmem:[#allocation33_spill] sm:$0xff] }
 0x3b6   : > { %v2196_v55 = vmul.f32 %v3437_v32, %v5262_v39  ;;  %3442 = vrcp.f32 %v2008_v6  ;;  %v2582_v41 = vsel %vm1492_vm2, %v2568_v12, 0  ;;  %v3439_v54 = vpop.eup %3438  ;;  %v2559_v62 = vunpack.c.l.b16 %v2247_v53  ;;  %v1999_v2 = vpop.xlane.xlu1 %1998 }
 0x3b7   : > { %3444 = vrcp.f32 %v2005_v45  ;;  %2541 = vmatpush.bf16.xpose.msrb.mxu1 %v2531_v1  ;;  %2588 = vmatpush.bf16.xpose.msrb.mxu2 %v2582_v41  ;;  %v2231_v8 = vpack.c.bf16 %v2167_v42, %v2167_v42  ;;  %v3441_v52 = vpop.eup %3440  ;;  %v2610_v43 = vunpack.c.l.b16 %v2258_v60  ;;  %v2192_v23 = vmul.f32 %v3439_v54, %v5268_v3 }
 0x3b8   : > { %3446 = vrcp.f32 %v4780_v22  ;;  %v2260_v31 = vpack.c.bf16 %v2196_v55, %v2196_v55  ;;  %2726 = vperm.xlu2 %3205, %v2704_v38   ;;  %v2257_v22 = vpack.c.bf16 %v2193_v5, %v2193_v5  ;;  %v2181_v28 = vmul.f32 %v3441_v52, %v5269_v15 }
 0x3b9   : > { %v2463_v63 = vunpack.c.l.b16 %v2231_v8  ;;  %v2566_v12 = vpack.c.b16 %v2560_v30, %v2559_v62  ;;  %v2256_v32 = vpack.c.bf16 %v2192_v23, %v2192_v23  ;;  %v5276_v62 = vld [vmem:[#allocation23_spill] sm:$0xff] }
 0x3ba   : > { %v2612_v35 = vunpack.c.l.b16 %v2260_v31  ;;  %v2609_v11 = vunpack.c.l.b16 %v2257_v22  ;;  %v2245_v55 = vpack.c.bf16 %v2181_v28, %v2181_v28  ;;  %v5272_v31 = vld [vmem:[#allocation42_spill] sm:$0xff]  ;;  %v5274_v22 = vld [vmem:[#allocation4_spill] sm:$0xff] }
 0x3bb   : > { %v2470_v9 = vpack.c.b16 %v2464_v40, %v2463_v63  ;;  %v2576_v5 = vsel %vm1492_vm2, %v2566_v12, 0  ;;  %v2608_v26 = vunpack.c.l.b16 %v2256_v32  ;;  %v5273_v63 = vld [vmem:[#allocation5_spill] sm:$0xff]  ;;  %v2918_v12 = vld [vmem:[%s4860_s20 + $0x2a] sm:$0x3] }
 0x3bc   : > { %v3443_v46 = vpop.eup %3442  ;;  %v2026_v19 = vpop.xlane.xlu2 %2025  ;;  %v2616_v27 = vpack.c.b16 %v2612_v35, %v2611_v13  ;;  %v2615_v18 = vpack.c.b16 %v2610_v43, %v2609_v11  ;;  %v2557_v56 = vunpack.c.l.b16 %v2245_v55  ;;  %v5277_v43 = vld [vmem:[#allocation28_spill] sm:$0xff] }
 0x3bd   : > { %v3445_v16 = vpop.eup %3444  ;;  %v2047_v10 = vpop.xlane.xlu0 %2046  ;;  %3448 = vrcp.f32 %v2026_v19  ;;  %v2480_v29 = vsel %vm1492_vm2, %v2470_v9, 0  ;;  %v2176_v36 = vmul.f32 %v3443_v46, %v5266_v21  ;;  %v5275_v19 = vld [vmem:[#allocation38_spill] sm:$0xff] }
 0x3be   : > { %v3447_v24 = vpop.eup %3446  ;;  %3450 = vrcp.f32 %v2047_v10  ;;  %2494 = vmatpush.bf16.xpose.msrb.mxu0 %v2480_v29  ;;  %v2630_v47 = vsel %vm1492_vm2, %v2616_v27, 0  ;;  %v2175_v61 = vmul.f32 %v3445_v16, %v5267_v50  ;;  %v2627_v58 = vsel %vm1492_vm2, %v2615_v18, 0 }
 0x3bf   : > { %2589 = vmatpush.bf16.xpose.msrb.mxu2 %v2579_v20  ;;  %2636 = vmatpush.bf16.xpose.msrb.mxu3 %v2630_v47  ;;  %v2240_v48 = vpack.c.bf16 %v2176_v36, %v2176_v36  ;;  %3452 = vrcp.f32 %v2050_v34  ;;  %v2191_v45 = vmul.f32 %v3447_v24, %v5270_v59 }
 0x3c0   : > { %v2239_v17 = vpack.c.bf16 %v2175_v61, %v2175_v61  ;;  %2741 = vperm.xlu2 %3205, %v2707_v57   ;;  %v2919_v61 = vld [vmem:[%s4860_s20 + $0x2c] sm:$0x3] }
 0x3c1   : > { %v2512_v49 = vunpack.c.l.b16 %v2240_v48  ;;  %v2255_v25 = vpack.c.bf16 %v2191_v45, %v2191_v45  ;;  %v2920_v45 = vld [vmem:[%s4860_s20 + $0x2e] sm:$0x3] }
 0x3c2   : > { %v2511_v1 = vunpack.c.l.b16 %v2239_v17 }
 0x3c3   : > { %v3449_v51 = vpop.eup %3448  ;;  %v2607_v54 = vunpack.c.l.b16 %v2255_v25 }
 0x3c4   : > { %v3451_v6 = vpop.eup %3450  ;;  %v1975_v42 = vpop.xlane.xlu2 %1974  ;;  %v2518_v44 = vpack.c.b16 %v2512_v49, %v2511_v1  ;;  %v2182_v39 = vmul.f32 %v3449_v51, %v5271_v33  ;;  %v2917_v49 = vld [vmem:[%s4860_s20 + $0x28] sm:$0x3] }
 0x3c5   : > { %v1978_v41 = vpop.xlane.xlu0 %1977  ;;  %3454 = vrcp.f32 %v1975_v42  ;;  %v3453_v8 = vpop.eup %3452  ;;  %v2189_v37 = vmul.f32 %v3451_v6, %v5272_v31  ;;  %v2614_v14 = vpack.c.b16 %v2608_v26, %v2607_v54 }
 0x3c6   : > { %3456 = vrcp.f32 %v1978_v41  ;;  %v2528_v4 = vsel %vm1492_vm2, %v2518_v44, 0  ;;  %v2246_v7 = vpack.c.bf16 %v2182_v39, %v2182_v39  ;;  %v2190_v40 = vmul.f32 %v3453_v8, %v5273_v63 }
 0x3c7   : > { %3458 = vrcp.f32 %v1999_v2  ;;  %2542 = vmatpush.bf16.xpose.msrb.mxu1 %v2528_v4  ;;  %2590 = vmatpush.bf16.xpose.msrb.mxu2 %v2576_v5  ;;  %v2253_v13 = vpack.c.bf16 %v2189_v37, %v2189_v37  ;;  %v2624_v10 = vsel %vm1492_vm2, %v2614_v14, 0  ;;  %v2757_v4 = vld [vmem:[%s4989_s12] sm:$0xf]  ;;  %v2758_v14 = vld [vmem:[%s4989_s12 + $0x4] sm:$0xf] }
 0x3c8   : > { %2637 = vmatpush.bf16.xpose.msrb.mxu3 %v2627_v58  ;;  %v2558_v38 = vunpack.c.l.b16 %v2246_v7  ;;  %v2254_v0 = vpack.c.bf16 %v2190_v40, %v2190_v40  ;;  %v2759_v7 = vld [vmem:[%s4989_s12 + $0x8] sm:$0xf] }
 0x3c9   : > { %v2605_v21 = vunpack.c.l.b16 %v2253_v13 }
 0x3ca   : > { %v2565_v53 = vpack.c.b16 %v2558_v38, %v2557_v56  ;;  %v2606_v47 = vunpack.c.l.b16 %v2254_v0 }
 0x3cb   : > { %v3455_v34 = vpop.eup %3454 }
 0x3cc   : > { %v3457_v35 = vpop.eup %3456  ;;  %v2002_v52 = vpop.xlane.xlu2 %2001  ;;  %v2573_v9 = vsel %vm1492_vm2, %v2565_v53, 0  ;;  %v2165_v60 = vmul.f32 %v3455_v34, %v5274_v22  ;;  %v2613_v11 = vpack.c.b16 %v2606_v47, %v2605_v21 }
 0x3cd   : > { %v3459_v46 = vpop.eup %3458  ;;  %3460 = vrcp.f32 %v2002_v52  ;;  %v2166_v27 = vmul.f32 %v3457_v35, %v5275_v19 }
 0x3ce   : > { %v2229_v16 = vpack.c.bf16 %v2165_v60, %v2165_v60  ;;  %v2173_v24 = vmul.f32 %v3459_v46, %v5276_v62  ;;  %v2621_v30 = vsel %vm1492_vm2, %v2613_v11, 0  ;;  %v2760_v60 = vld [vmem:[%s4989_s12 + $0xc] sm:$0xf] }
 0x3cf   : > { %2591 = vmatpush.bf16.xpose.msrb.mxu2 %v2573_v9  ;;  %v2230_v29 = vpack.c.bf16 %v2166_v27, %v2166_v27 }
 0x3d0   : > { %2638 = vmatpush.bf16.xpose.msrb.mxu3 %v2624_v10  ;;  %v2461_v36 = vunpack.c.l.b16 %v2229_v16  ;;  %v2237_v23 = vpack.c.bf16 %v2173_v24, %v2173_v24 }
 0x3d1   : > { %v2462_v20 = vunpack.c.l.b16 %v2230_v29 }
 0x3d2   : > { %v2509_v15 = vunpack.c.l.b16 %v2237_v23 }
 0x3d3   : > { %v3461_v50 = vpop.eup %3460  ;;  %v2469_v48 = vpack.c.b16 %v2462_v20, %v2461_v36  ;;  %v2763_v20 = vld [vmem:[%s4989_s12 + $0x18] sm:$0xf] }
 0x3d4   : > { %v2174_v3 = vmul.f32 %v3461_v50, %v5277_v43 }
 0x3d5   : > { %v2477_v57 = vsel %vm1492_vm2, %v2469_v48, 0 }
 0x3d6   : > { %3119 = vmatmul.msk.bf16.vlgmr.msrb.gmra.mxu2 %vm1492_vm2, %v2919_v61  ;;  %2495 = vmatpush.bf16.xpose.msrb.mxu0 %v2477_v57  ;;  %v2238_v17 = vpack.c.bf16 %v2174_v3, %v2174_v3  ;;  %v2666_v51 = vpop.permute.xlu2 %2665  ;;  %v2761_v61 = vld [vmem:[%s4989_s12 + $0x10] sm:$0xf] }
 0x3d8   : > { %2639 = vmatpush.bf16.xpose.msrb.mxu3 %v2621_v30  ;;  %v2510_v28 = vunpack.c.l.b16 %v2238_v17 }
 0x3da   : > { %v2517_v59 = vpack.c.b16 %v2510_v28, %v2509_v15 }
 0x3dc   : > { %v2525_v1 = vsel %vm1492_vm2, %v2517_v59, 0 }
 0x3dd   : > { %3117 = vmatmul.msk.bf16.vlgmr.msrb.gmra.mxu0 %vm1492_vm2, %v2917_v49  ;;  %2543 = vmatpush.bf16.xpose.msrb.mxu1 %v2525_v1 }
 0x3df   : > { %3120 = vmatmul.msk.bf16.vlgmr.msrb.gmra.mxu3 %vm1492_vm2, %v2920_v45  ;;  %v2762_v45 = vld [vmem:[%s4989_s12 + $0x14] sm:$0xf] }
 0x3e4   : > { %3118 = vmatmul.msk.bf16.vlgmr.msrb.gmra.mxu1 %vm1492_vm2, %v2918_v12  ;;  %v2764_v12 = vld [vmem:[%s4989_s12 + $0x1c] sm:$0xf] }
 0x3ed   : > { %v2656_v2 = vpop.permute.xlu0 %2655 }
 0x3f0   : > { %v2661_v18 = vpop.permute.xlu1 %2660 }
 0x3f5   : > { %v2686_v33 = vpop.permute.xlu0 %2685 }
 0x3f8   : > { %v2671_v32 = vpop.permute.xlu2 %2670 }
 0x3f9   : > { %v2676_v6 = vpop.permute.xlu1 %2675 }
 0x3fd   : > { %v2717_v34 = vpop.permute.xlu0 %2716 }
 0x401   : > { %v2681_v42 = vpop.permute.xlu2 %2680  ;;  %v4983_v44 = vpop.permute.xlu1 %2690 }
 0x409   : > { %v2305_v39 = vpop.f32.mrf.mxu0  ;;  %v2712_v8 = vpop.permute.xlu2 %2711 }
 0x40a   : > { %v2693_v41 = vmul.f32 %v2656_v2, %v2305_v39  ;;  %v2722_v5 = vpop.permute.xlu1 %2721 }
 0x40c   : > { %v2749_v58 = vadd.f32 %v2712_v8, %v2693_v41 }
 0x40e   : > { %v2765_v31 = vadd.f32 %v2757_v4, %v2749_v58 }
 0x410   : > { %v2773_v56 = vmax.f32 %v2765_v31, 0.0 }
 0x411   : > { %v2307_v53 = vpop.f32.mrf.mxu0 }
 0x412   : > { %2782 = vst.msk [vmem:[%s4996_s13] sm:$0xf] %vm2781_vm3, %v2773_v56  ;;  %v2727_v22 = vpop.permute.xlu2 %2726 }
 0x413   : > { %v2732_v21 = vpop.permute.xlu0 %2731 }
 0x417   : > { %v2401_v55 = vpop.f32.mrf.mxu2 }
 0x418   : > { %v2695_v25 = vmul.f32 %v2666_v51, %v2401_v55 }
 0x41a   : > { %v2751_v26 = vadd.f32 %v2722_v5, %v2695_v25  ;;  %v2353_v54 = vpop.f32.mrf.mxu1  ;;  %v2742_v24 = vpop.permute.xlu2 %2741 }
 0x41b   : > { %v2694_v40 = vmul.f32 %v2661_v18, %v2353_v54  ;;  %v2737_v49 = vpop.permute.xlu1 %2736  ;;  %v2747_v1 = vpop.permute.xlu0 %2746 }
 0x41c   : > { %v2767_v37 = vadd.f32 %v2759_v7, %v2751_v26 }
 0x41d   : > { %v2750_v13 = vadd.f32 %v2717_v34, %v2694_v40 }
 0x41e   : > { %v2775_v38 = vmax.f32 %v2767_v37, 0.0 }
 0x41f   : > { %v2403_v63 = vpop.f32.mrf.mxu2  ;;  %v2766_v52 = vadd.f32 %v2758_v14, %v2750_v13 }
 0x420   : > { %2784 = vst.msk [vmem:[%s4996_s13 + $0x8] sm:$0xf] %vm2781_vm3, %v2775_v38 }
 0x421   : > { %v2774_v46 = vmax.f32 %v2766_v52, 0.0 }
 0x422   : > { %v2355_v27 = vpop.f32.mrf.mxu1 }
 0x423   : > { %2783 = vst.msk [vmem:[%s4996_s13 + $0x4] sm:$0xf] %vm2781_vm3, %v2774_v46 }
 0x428   : > { %v2449_v35 = vpop.f32.mrf.mxu3 }
 0x429   : > { %v2696_v9 = vmul.f32 %v2671_v32, %v2449_v35 }
 0x42b   : > { %v2752_v19 = vadd.f32 %v2727_v22, %v2696_v9 }
 0x42d   : > { %v2768_v0 = vadd.f32 %v2760_v60, %v2752_v19 }
 0x42f   : > { %v2776_v16 = vmax.f32 %v2768_v0, 0.0 }
 0x430   : > { %v2451_v10 = vpop.f32.mrf.mxu3 }
 0x431   : > { %2785 = vst.msk [vmem:[%s4996_s13 + $0xc] sm:$0xf] %vm2781_vm3, %v2776_v16 }
 0x459   : > { %v2593_v29 = vpop.f32.mrf.mxu2 }
 0x45a   : > { %v2699_v36 = vmul.f32 %v2686_v33, %v2593_v29  ;;  %v2497_v62 = vpop.f32.mrf.mxu0 }
 0x45b   : > { %v2697_v47 = vmul.f32 %v2676_v6, %v2497_v62 }
 0x45c   : > { %v2755_v50 = vadd.f32 %v2742_v24, %v2699_v36 }
 0x45d   : > { %v2753_v48 = vadd.f32 %v2732_v21, %v2697_v47 }
 0x45e   : > { %v2771_v11 = vadd.f32 %v2763_v20, %v2755_v50 }
 0x45f   : > { %v2769_v43 = vadd.f32 %v2761_v61, %v2753_v48 }
 0x460   : > { %v2779_v3 = vmax.f32 %v2771_v11, 0.0 }
 0x461   : > { %v2777_v23 = vmax.f32 %v2769_v43, 0.0  ;;  %v2545_v57 = vpop.f32.mrf.mxu1  ;;  %v2595_v17 = vpop.f32.mrf.mxu2 }
 0x462   : > { %2788 = vst.msk [vmem:[%s4996_s13 + $0x18] sm:$0xf] %vm2781_vm3, %v2779_v3  ;;  %v2641_v30 = vpop.f32.mrf.mxu3  ;;  %v2499_v15 = vpop.f32.mrf.mxu0  ;;  %v2698_v28 = vmul.f32 %v2681_v42, %v2545_v57 }
 0x463   : > { %2786 = vst.msk [vmem:[%s4996_s13 + $0x10] sm:$0xf] %vm2781_vm3, %v2777_v23  ;;  %v2700_v59 = vmul.f32 %v4983_v44, %v2641_v30 }
 0x464   : > { %v2754_v51 = vadd.f32 %v2737_v49, %v2698_v28 }
 0x465   : > { %v2756_v18 = vadd.f32 %v2747_v1, %v2700_v59 }
 0x466   : > { %v2770_v32 = vadd.f32 %v2762_v45, %v2754_v51 }
 0x467   : > { %v2772_v6 = vadd.f32 %v2764_v12, %v2756_v18 }
 0x468   : > { %v2778_v2 = vmax.f32 %v2770_v32, 0.0 }
 0x469   : > { %v2780_v33 = vmax.f32 %v2772_v6, 0.0  ;;  %v2547_v39 = vpop.f32.mrf.mxu1 }
 0x46a   : > { %2787 = vst.msk [vmem:[%s4996_s13 + $0x14] sm:$0xf] %vm2781_vm3, %v2778_v2  ;;  %v2643_v55 = vpop.f32.mrf.mxu3 }
 0x46b   : > { %2789 = vst.msk [vmem:[%s4996_s13 + $0x1c] sm:$0xf] %vm2781_vm3, %v2780_v33 }
 0x46c PF: > { %s17_s24 = sadd.s32 1, %s3468_s24  }
 0x46d   : > { %p14_p4 = scmp.ge.s32.totalorder %s17_s24, 4  }
 0x46f   :  { %16 = sbr.rel (!%p14_p4) target bundleno = 1 (0x1), region = 87 }

</bundles_post_ra>
